<compile_context>
chip_gen: v7x
topology: tpu7x:2x2x1
jax: 0.10.0
libtpu: 0.0.40
codegen_flags: <defaults>
</compile_context>

<pallas_src>
from collections import namedtuple

import numpy as np
import jax
import jax.numpy as jnp
from jax.experimental import pallas as pl
from jax.experimental.pallas import tpu as pltpu

LEAKY_SLOPE = 0.01          # nn.LeakyReLU() default
IN_EPS = 1e-5               # nn.InstanceNorm2d default (affine=False, biased variance)
MXU_DTYPE = jnp.bfloat16    # conv-matmul operand dtype; set to jnp.float32 for exact fp32 parity
HB = 16                     # band height per sample: 15 valid rows + 1 always-zero padding row


# ----------------------------------------------------------------------------- host-side helpers
def hex_mask(k):
    """Hexagonal kernel mask in axial coordinates (7 taps for k=3, 19 taps for k=5)."""
    m = np.ones((k, k), np.float32)
    r = k // 2
    for i in range(k):
        for j in range(k):
            if i + j < r or i + j > 2 * (k - 1) - r:
                m[i, j] = 0.0
    return m


def make_toeplitz_slices(w, Win, Wout, pad, Cin, Cout):
    """w: (KH, KW, Cin, Cout) -> (KH, Win*Cin, Wout*Cout) per-row-offset block-Toeplitz weights.

    W-padding is folded in (padded columns contribute nothing); the H offset of each
    slice is handled in-kernel with a sublane roll of the activation slab.
    """
    KH, KW = w.shape[0], w.shape[1]
    t = np.zeros((KH, Win * Cin, Wout * Cout), np.float32)
    for kh in range(KH):
        for ow in range(Wout):
            for kw in range(KW):
                wi = ow + kw - pad
                if 0 <= wi < Win:
                    t[kh, wi * Cin:(wi + 1) * Cin, ow * Cout:(ow + 1) * Cout] = w[kh, kw]
    return t


def make_norm_mat(H, Wd, C):
    """(Wd*C, Wd*C): (per-lane row sums) @ M = per-channel spatial mean broadcast to all lanes."""
    m = np.zeros((Wd * C, Wd * C), np.float32)
    inv = 1.0 / float(H * Wd)
    for w0 in range(Wd):
        for w1 in range(Wd):
            for c in range(C):
                m[w0 * C + c, w1 * C + c] = inv
    return m


LayerCfg = namedtuple(
    "LayerCfg", "ksize pad h_in w_in h_out cin cout pre_norm post_norm residual")


def _build_model(params, Cin, Cout, H, W):
    """Static layer configs + device arrays (per-kh Toeplitz weights, tiled biases, norm mats)."""
    specs = [
        # name, k, pad, cin, cout, pre_norm, post_norm, residual
        ("l1",   3, 1, Cin,     Cin,     False, False, False),
        ("res0", 3, 1, Cin,     Cin,     True,  False, True),
        ("res1", 3, 1, Cin,     Cin,     True,  False, True),
        ("res2", 3, 1, Cin,     Cin,     True,  True,  True),
        ("d1",   5, 0, Cin,     2 * Cin, False, True,  False),
        ("d2",   5, 0, 2 * Cin, 4 * Cin, False, True,  False),
        ("d3",   5, 0, 4 * Cin, Cout,    False, True,  False),
        ("d4",   3, 0, Cout,    Cout,    False, False, False),
    ]
    cfgs, wb_list = [], []
    norm_index, norm_mats = {}, []

    def _norm_idx(Hn, Wn, C):
        key = (Hn, Wn, C)
        if key not in norm_index:
            norm_index[key] = len(norm_mats)
            norm_mats.append(jnp.asarray(make_norm_mat(Hn, Wn, C)))
        return norm_index[key]

    h_cur, w_cur = H, W
    for name, k, pad, cin, cout, pre, post, res in specs:
        h_out = h_cur + 2 * pad - k + 1
        w_out = w_cur + 2 * pad - k + 1
        pre_i = _norm_idx(h_cur, w_cur, cin) if pre else None
        post_i = _norm_idx(h_out, w_out, cout) if post else None

        wm = np.asarray(params[name + "_w"], np.float32) * hex_mask(k)[:, :, None, None]
        wt = jnp.asarray(make_toeplitz_slices(wm, w_cur, w_out, pad, cin, cout),
                         dtype=MXU_DTYPE)                                   # (KH, Lin, Lout)
        bt = jnp.asarray(
            np.tile(np.asarray(params[name + "_b"], np.float32), w_out)
            .reshape(1, w_out * cout).astype(np.float32))

        cfgs.append(LayerCfg(k, pad, h_cur, w_cur, h_out, cin, cout, pre_i, post_i, res))
        wb_list.append((wt, bt))
        h_cur, w_cur = h_out, w_out
    return cfgs, wb_list, norm_mats


def _num_tensorcores():
    """Best-effort TensorCores-per-chip (2 on v7x-style megacore, else 1).  Only used to keep
    >=2 parallel grid blocks so both cores get work; the kernel is correct either way."""
    try:
        d = jax.devices()[0]
        for attr in ("num_cores", "core_count"):
            n = getattr(d, attr, None)
            if isinstance(n, int) and n > 0:
                return n
    except Exception:
        pass
    return 1


def _choose_block_n(N, target, min_blocks):
    """Samples per grid step: one big block (single-TC chips) capped at `target`;
    split into >= min_blocks blocks when several TensorCores share the grid."""
    if N <= 0:
        return 1
    return max(1, min(target, -(-N // max(1, min_blocks))))


# ----------------------------------------------------------------------------- kernel pieces
def _instance_norm(h, Nb, h_valid, rowb, nm):
    """Per-sample InstanceNorm2d (affine=False, biased variance) on a (Nb*HB, L) slab.

    Rows >= h_valid of every band are zero on entry and are zero again on exit."""
    L = h.shape[-1]
    h3 = h.reshape(Nb, HB, L)
    mask = (rowb < h_valid).astype(jnp.float32)                     # (HB, 1) valid-row mask
    mean = jnp.dot(jnp.sum(h3, axis=1), nm,
                   preferred_element_type=jnp.float32)              # (Nb, L) per-channel mean
    d = (h3 - mean[:, None, :]) * mask                              # centered; pad rows re-zeroed
    var = jnp.dot(jnp.sum(d * d, axis=1), nm,
                  preferred_element_type=jnp.float32)               # (Nb, L) biased variance >= 0
    inv = jax.lax.rsqrt(var + IN_EPS)
    return (d * inv[:, None, :]).reshape(Nb * HB, L)


def _conv_lrelu(h, cfg, w_ref, b, rows, Nb):
    """Hex conv as KH accumulating matmuls over sublane-rolled row windows,
    + bias + LeakyReLU + row mask.  h: (Nb*HB, Win*Cin) f32."""
    n_rows = Nb * HB
    acc = None
    for kh in range(cfg.ksize):
        s = kh - cfg.pad                                            # tap kh reads band row p + s
        xk = h if s == 0 else pltpu.roll(h, (-s) % n_rows, axis=0)  # XLU sublane rotate
        part = jnp.dot(xk.astype(MXU_DTYPE), w_ref[kh],
                       preferred_element_type=jnp.float32)
        acc = part if acc is None else acc + part
    acc = acc + b
    acc = jnp.maximum(acc, LEAKY_SLOPE * acc)                       # LeakyReLU
    return acc * (rows < cfg.h_out).astype(jnp.float32)            # zero invalid band rows


def _make_fused_kernel(cfgs, n_norms, Nb):
    n_layers = len(cfgs)

    def kernel(*refs):
        x_ref = refs[0]
        w_refs = refs[1:1 + 2 * n_layers:2]
        b_refs = refs[2:2 + 2 * n_layers:2]
        nm_refs = refs[1 + 2 * n_layers:1 + 2 * n_layers + n_norms]
        o_ref = refs[1 + 2 * n_layers + n_norms]

        # band-row index of every slab row / of one band (built once, reused by every layer)
        rows = jnp.bitwise_and(
            jax.lax.broadcasted_iota(jnp.int32, (Nb * HB, 1), 0), HB - 1)
        rowb = jax.lax.broadcasted_iota(jnp.int32, (HB, 1), 0)

        h = x_ref[0]                                                # (Nb*HB, W0*Cin) f32

        for li, cfg in enumerate(cfgs):
            skip = h
            t = h
            if cfg.pre_norm is not None:
                t = _instance_norm(t, Nb, cfg.h_in, rowb, nm_refs[cfg.pre_norm][...])
            t = _conv_lrelu(t, cfg, w_refs[li], b_refs[li][...], rows, Nb)
            if cfg.post_norm is not None:
                t = _instance_norm(t, Nb, cfg.h_out, rowb, nm_refs[cfg.post_norm][...])
            h = skip + t if cfg.residual else t

        # final layer is 1x1 spatial: valid data sits at band row 0 of every sample
        out = h.reshape(Nb, HB, cfgs[-1].cout)[:, 0, :]             # (Nb, Cout)
        o_ref[0] = out.astype(o_ref.dtype)

    return kernel


# ----------------------------------------------------------------------------- full model
def resnet_follower_state_cnn(x, params, *, block_target=64):
    """x: (B, T, P, 15, 15) float32 (PyTorch NCHW per frame).  Returns (B, T, out_channels)."""
    B, T, P, H, W = x.shape
    assert (H, W) == (15, 15), "module expects 15x15 spatial input"
    N = B * T
    Cin, Cout = P, params["d3_w"].shape[-1]

    cfgs, wb_list, norm_mats = _build_model(params, Cin, Cout, H, W)

    Nb = _choose_block_n(N, block_target, _num_tensorcores())
    num_blocks = -(-N // Nb)
    N_pad = num_blocks * Nb

    # NCHW -> channels-last interleaved band slab (N, HB, W*Cin):
    # 15 data rows + 1 zero padding row per sample; zero-pad batch to a multiple of Nb.
    h = jnp.transpose(x.reshape(N, P, H, W), (0, 2, 3, 1)).reshape(N, H, W * Cin)
    h = jnp.pad(h, ((0, N_pad - N), (0, HB - H), (0, 0)))
    xin = h.reshape(num_blocks, Nb * HB, W * Cin).astype(jnp.float32)

    inputs = [xin]
    in_specs = [pl.BlockSpec((1, Nb * HB, W * Cin), lambda n: (n, 0, 0))]
    for wt, bt in wb_list:                      # grid-invariant: fetched once, resident in VMEM
        inputs += [wt, bt]
        in_specs += [pl.BlockSpec(wt.shape, lambda n: (0, 0, 0)),
                     pl.BlockSpec(bt.shape, lambda n: (0, 0))]
    for nm in norm_mats:
        inputs.append(nm)
        in_specs.append(pl.BlockSpec(nm.shape, lambda n: (0, 0)))

    kernel = _make_fused_kernel(cfgs, len(norm_mats), Nb)
    out = pl.pallas_call(
        kernel,
        out_shape=jax.ShapeDtypeStruct((num_blocks, Nb, Cout), jnp.float32),
        grid_spec=pltpu.PrefetchScalarGridSpec(
            num_scalar_prefetch=0,
            grid=(num_blocks,),
            in_specs=in_specs,
            out_specs=pl.BlockSpec((1, Nb, Cout), lambda n: (n, 0, 0)),
        ),
        compiler_params=pltpu.CompilerParams(dimension_semantics=("parallel",)),
    )(*inputs)

    return out.reshape(N_pad, Cout)[:N].reshape(B, T, Cout)


def init_params(key, in_channels, out_channels):
    def conv_init(k, ks, cin, cout):
        kw_, kb_ = jax.random.split(k)
        bound = 1.0 / np.sqrt(cin * ks * ks)
        w = jax.random.uniform(kw_, (ks, ks, cin, cout), jnp.float32, -bound, bound)
        b = jax.random.uniform(kb_, (cout,), jnp.float32, -bound, bound)
        return np.asarray(w), np.asarray(b)

    keys = jax.random.split(key, 8)
    p = {}
    p["l1_w"], p["l1_b"] = conv_init(keys[0], 3, in_channels, in_channels)
    for i in range(3):
        p[f"res{i}_w"], p[f"res{i}_b"] = conv_init(keys[1 + i], 3, in_channels, in_channels)
    p["d1_w"], p["d1_b"] = conv_init(keys[4], 5, in_channels, 2 * in_channels)
    p["d2_w"], p["d2_b"] = conv_init(keys[5], 5, 2 * in_channels, 4 * in_channels)
    p["d3_w"], p["d3_b"] = conv_init(keys[6], 5, 4 * in_channels, out_channels)
    p["d4_w"], p["d4_b"] = conv_init(keys[7], 3, out_channels, out_channels)
    return p


if __name__ == "__main__":
    CNN_EMB_DIM = 4    # in_channels (P)
    GPT_EMB_DIM = 8    # out_channels
    B, T, H, W = 2, 2, 15, 15   # module expects 15x15 spatial input

    key = jax.random.PRNGKey(0)
    kx, kp = jax.random.split(key)
    x = jax.random.normal(kx, (B, T, CNN_EMB_DIM, H, W), jnp.float32)
    params = init_params(kp, CNN_EMB_DIM, GPT_EMB_DIM)

    out = resnet_follower_state_cnn(x, params)
    out = jax.block_until_ready(out)
    assert out.shape == (B, T, GPT_EMB_DIM), out.shape
    assert bool(jnp.all(jnp.isfinite(out)))
    print("KERNEL_OK")
</pallas_src>

<mosaic_0001>
module attributes {stable_mosaic.version = 11 : i64} {
  func.func @kernel(%arg0: i32, %arg1: memref<1x64x60xf32, #tpu.memory_space<vmem>>, %arg2: memref<3x60x60xbf16, #tpu.memory_space<vmem>>, %arg3: memref<1x60xf32, #tpu.memory_space<vmem>>, %arg4: memref<3x60x60xbf16, #tpu.memory_space<vmem>>, %arg5: memref<1x60xf32, #tpu.memory_space<vmem>>, %arg6: memref<3x60x60xbf16, #tpu.memory_space<vmem>>, %arg7: memref<1x60xf32, #tpu.memory_space<vmem>>, %arg8: memref<3x60x60xbf16, #tpu.memory_space<vmem>>, %arg9: memref<1x60xf32, #tpu.memory_space<vmem>>, %arg10: memref<5x60x88xbf16, #tpu.memory_space<vmem>>, %arg11: memref<1x88xf32, #tpu.memory_space<vmem>>, %arg12: memref<5x88x112xbf16, #tpu.memory_space<vmem>>, %arg13: memref<1x112xf32, #tpu.memory_space<vmem>>, %arg14: memref<5x112x24xbf16, #tpu.memory_space<vmem>>, %arg15: memref<1x24xf32, #tpu.memory_space<vmem>>, %arg16: memref<3x24x8xbf16, #tpu.memory_space<vmem>>, %arg17: memref<1x8xf32, #tpu.memory_space<vmem>>, %arg18: memref<60x60xf32, #tpu.memory_space<vmem>>, %arg19: memref<88x88xf32, #tpu.memory_space<vmem>>, %arg20: memref<112x112xf32, #tpu.memory_space<vmem>>, %arg21: memref<24x24xf32, #tpu.memory_space<vmem>>, %arg22: memref<1x4x8xf32, #tpu.memory_space<vmem>>) attributes {dimension_semantics = [#tpu.dimension_semantics<parallel>], iteration_bounds = array<i64: 1>, scalar_prefetch = 0 : i64, scratch_operands = 0 : i64, tpu.core_type = #tpu.core_type<tc>, window_params = [{transform_indices = @transform_0, window_bounds = array<i64: 1, 64, 60>}, {pipeline_mode = #tpu.pipeline_mode<synchronous>, transform_indices = @transform_1, window_bounds = array<i64: 3, 60, 60>}, {pipeline_mode = #tpu.pipeline_mode<synchronous>, transform_indices = @transform_2, window_bounds = array<i64: 1, 60>}, {pipeline_mode = #tpu.pipeline_mode<synchronous>, transform_indices = @transform_3, window_bounds = array<i64: 3, 60, 60>}, {pipeline_mode = #tpu.pipeline_mode<synchronous>, transform_indices = @transform_4, window_bounds = array<i64: 1, 60>}, {pipeline_mode = #tpu.pipeline_mode<synchronous>, transform_indices = @transform_5, window_bounds = array<i64: 3, 60, 60>}, {pipeline_mode = #tpu.pipeline_mode<synchronous>, transform_indices = @transform_6, window_bounds = array<i64: 1, 60>}, {pipeline_mode = #tpu.pipeline_mode<synchronous>, transform_indices = @transform_7, window_bounds = array<i64: 3, 60, 60>}, {pipeline_mode = #tpu.pipeline_mode<synchronous>, transform_indices = @transform_8, window_bounds = array<i64: 1, 60>}, {pipeline_mode = #tpu.pipeline_mode<synchronous>, transform_indices = @transform_9, window_bounds = array<i64: 5, 60, 88>}, {pipeline_mode = #tpu.pipeline_mode<synchronous>, transform_indices = @transform_10, window_bounds = array<i64: 1, 88>}, {pipeline_mode = #tpu.pipeline_mode<synchronous>, transform_indices = @transform_11, window_bounds = array<i64: 5, 88, 112>}, {pipeline_mode = #tpu.pipeline_mode<synchronous>, transform_indices = @transform_12, window_bounds = array<i64: 1, 112>}, {pipeline_mode = #tpu.pipeline_mode<synchronous>, transform_indices = @transform_13, window_bounds = array<i64: 5, 112, 24>}, {pipeline_mode = #tpu.pipeline_mode<synchronous>, transform_indices = @transform_14, window_bounds = array<i64: 1, 24>}, {pipeline_mode = #tpu.pipeline_mode<synchronous>, transform_indices = @transform_15, window_bounds = array<i64: 3, 24, 8>}, {pipeline_mode = #tpu.pipeline_mode<synchronous>, transform_indices = @transform_16, window_bounds = array<i64: 1, 8>}, {pipeline_mode = #tpu.pipeline_mode<synchronous>, transform_indices = @transform_17, window_bounds = array<i64: 60, 60>}, {pipeline_mode = #tpu.pipeline_mode<synchronous>, transform_indices = @transform_18, window_bounds = array<i64: 88, 88>}, {pipeline_mode = #tpu.pipeline_mode<synchronous>, transform_indices = @transform_19, window_bounds = array<i64: 112, 112>}, {pipeline_mode = #tpu.pipeline_mode<synchronous>, transform_indices = @transform_20, window_bounds = array<i64: 24, 24>}, {transform_indices = @transform_21, window_bounds = array<i64: 1, 4, 8>}]} {
    %0 = tpu.iota {dimensions = array<i32: 0>} : vector<64x1xi32>
    %c15_i32 = arith.constant 15 : i32
    %1 = vector.broadcast %c15_i32 : i32 to vector<64x1xi32>
    %2 = arith.andi %0, %1 : vector<64x1xi32>
    %3 = tpu.iota {dimensions = array<i32: 0>} : vector<16x1xi32>
    %c0 = arith.constant 0 : index
    %c0_0 = arith.constant 0 : index
    %c0_1 = arith.constant 0 : index
    %4 = vector.load %arg1[%c0, %c0_0, %c0_1] : memref<1x64x60xf32, #tpu.memory_space<vmem>>, vector<1x64x60xf32>
    %5 = vector.shape_cast %4 : vector<1x64x60xf32> to vector<64x60xf32>
    %c0_2 = arith.constant 0 : index
    %c0_3 = arith.constant 0 : index
    %6 = vector.load %arg3[%c0_2, %c0_3] : memref<1x60xf32, #tpu.memory_space<vmem>>, vector<1x60xf32>
    %c1_i32 = arith.constant 1 : i32
    %7 = tpu.dynamic_rotate %5 by %c1_i32 dim 0 : vector<64x60xf32>, i32 -> vector<64x60xf32>
    %8 = arith.truncf %7 : vector<64x60xf32> to vector<64x60xbf16>
    %c0_4 = arith.constant 0 : index
    %c0_5 = arith.constant 0 : index
    %c0_6 = arith.constant 0 : index
    %9 = vector.load %arg2[%c0_4, %c0_5, %c0_6] : memref<3x60x60xbf16, #tpu.memory_space<vmem>>, vector<1x60x60xbf16>
    %10 = vector.shape_cast %9 : vector<1x60x60xbf16> to vector<60x60xbf16>
    %cst = arith.constant dense<0.000000e+00> : vector<64x60xf32>
    %11 = tpu.matmul %8, %10, %cst {dimension_numbers = #tpu.dot_dimension_numbers<[1], [0], [0], [1], [0, 0, 1, 1], [], []>} : vector<64x60xbf16>, vector<60x60xbf16>, vector<64x60xf32> -> vector<64x60xf32>
    %12 = arith.truncf %5 : vector<64x60xf32> to vector<64x60xbf16>
    %c1 = arith.constant 1 : index
    %c0_7 = arith.constant 0 : index
    %c0_8 = arith.constant 0 : index
    %13 = vector.load %arg2[%c1, %c0_7, %c0_8] : memref<3x60x60xbf16, #tpu.memory_space<vmem>>, vector<1x60x60xbf16>
    %14 = vector.shape_cast %13 : vector<1x60x60xbf16> to vector<60x60xbf16>
    %cst_9 = arith.constant dense<0.000000e+00> : vector<64x60xf32>
    %15 = tpu.matmul %12, %14, %cst_9 {dimension_numbers = #tpu.dot_dimension_numbers<[1], [0], [0], [1], [0, 0, 1, 1], [], []>} : vector<64x60xbf16>, vector<60x60xbf16>, vector<64x60xf32> -> vector<64x60xf32>
    %16 = arith.addf %11, %15 : vector<64x60xf32>
    %c63_i32 = arith.constant 63 : i32
    %17 = tpu.dynamic_rotate %5 by %c63_i32 dim 0 : vector<64x60xf32>, i32 -> vector<64x60xf32>
    %18 = arith.truncf %17 : vector<64x60xf32> to vector<64x60xbf16>
    %c2 = arith.constant 2 : index
    %c0_10 = arith.constant 0 : index
    %c0_11 = arith.constant 0 : index
    %19 = vector.load %arg2[%c2, %c0_10, %c0_11] : memref<3x60x60xbf16, #tpu.memory_space<vmem>>, vector<1x60x60xbf16>
    %20 = vector.shape_cast %19 : vector<1x60x60xbf16> to vector<60x60xbf16>
    %cst_12 = arith.constant dense<0.000000e+00> : vector<64x60xf32>
    %21 = tpu.matmul %18, %20, %cst_12 {dimension_numbers = #tpu.dot_dimension_numbers<[1], [0], [0], [1], [0, 0, 1, 1], [], []>} : vector<64x60xbf16>, vector<60x60xbf16>, vector<64x60xf32> -> vector<64x60xf32>
    %22 = arith.addf %16, %21 : vector<64x60xf32>
    %23 = vector.broadcast %6 : vector<1x60xf32> to vector<64x60xf32>
    %24 = arith.addf %22, %23 : vector<64x60xf32>
    %cst_13 = arith.constant 0.00999999977 : f32
    %25 = vector.broadcast %cst_13 : f32 to vector<64x60xf32>
    %26 = arith.mulf %25, %24 : vector<64x60xf32>
    %27 = arith.maximumf %24, %26 : vector<64x60xf32>
    %c15_i32_14 = arith.constant 15 : i32
    %28 = vector.broadcast %c15_i32_14 : i32 to vector<64x1xi32>
    %29 = arith.cmpi slt, %2, %28 : vector<64x1xi32>
    %30 = arith.extui %29 : vector<64x1xi1> to vector<64x1xi32>
    %31 = arith.sitofp %30 : vector<64x1xi32> to vector<64x1xf32>
    %32 = vector.broadcast %31 : vector<64x1xf32> to vector<64x60xf32>
    %33 = arith.mulf %27, %32 : vector<64x60xf32>
    %c0_15 = arith.constant 0 : index
    %c0_16 = arith.constant 0 : index
    %34 = vector.load %arg18[%c0_15, %c0_16] : memref<60x60xf32, #tpu.memory_space<vmem>>, vector<60x60xf32>
    %35 = vector.shape_cast %33 : vector<64x60xf32> to vector<4x16x60xf32>
    %c15_i32_17 = arith.constant 15 : i32
    %36 = vector.broadcast %c15_i32_17 : i32 to vector<16x1xi32>
    %37 = arith.cmpi slt, %3, %36 : vector<16x1xi32>
    %38 = arith.extui %37 : vector<16x1xi1> to vector<16x1xi32>
    %39 = arith.sitofp %38 : vector<16x1xi32> to vector<16x1xf32>
    %cst_18 = arith.constant dense<0.000000e+00> : vector<4x60xf32>
    %40 = vector.multi_reduction <add>, %35, %cst_18 [1] : vector<4x16x60xf32> to vector<4x60xf32>
    %cst_19 = arith.constant dense<0.000000e+00> : vector<4x60xf32>
    %41 = tpu.matmul %40, %34, %cst_19 {dimension_numbers = #tpu.dot_dimension_numbers<[1], [0], [0], [1], [0, 0, 1, 1], [], []>} : vector<4x60xf32>, vector<60x60xf32>, vector<4x60xf32> -> vector<4x60xf32>
    %42 = vector.shape_cast %41 : vector<4x60xf32> to vector<4x1x60xf32>
    %43 = vector.broadcast %42 : vector<4x1x60xf32> to vector<4x16x60xf32>
    %44 = arith.subf %35, %43 : vector<4x16x60xf32>
    %45 = vector.shape_cast %39 : vector<16x1xf32> to vector<1x16x1xf32>
    %46 = vector.broadcast %45 : vector<1x16x1xf32> to vector<4x16x60xf32>
    %47 = arith.mulf %44, %46 : vector<4x16x60xf32>
    %48 = arith.mulf %47, %47 : vector<4x16x60xf32>
    %cst_20 = arith.constant dense<0.000000e+00> : vector<4x60xf32>
    %49 = vector.multi_reduction <add>, %48, %cst_20 [1] : vector<4x16x60xf32> to vector<4x60xf32>
    %cst_21 = arith.constant dense<0.000000e+00> : vector<4x60xf32>
    %50 = tpu.matmul %49, %34, %cst_21 {dimension_numbers = #tpu.dot_dimension_numbers<[1], [0], [0], [1], [0, 0, 1, 1], [], []>} : vector<4x60xf32>, vector<60x60xf32>, vector<4x60xf32> -> vector<4x60xf32>
    %cst_22 = arith.constant 9.99999974E-6 : f32
    %51 = vector.broadcast %cst_22 : f32 to vector<4x60xf32>
    %52 = arith.addf %50, %51 : vector<4x60xf32>
    %53 = math.rsqrt %52 : vector<4x60xf32>
    %54 = vector.shape_cast %53 : vector<4x60xf32> to vector<4x1x60xf32>
    %55 = vector.broadcast %54 : vector<4x1x60xf32> to vector<4x16x60xf32>
    %56 = arith.mulf %47, %55 : vector<4x16x60xf32>
    %57 = vector.shape_cast %56 : vector<4x16x60xf32> to vector<64x60xf32>
    %c0_23 = arith.constant 0 : index
    %c0_24 = arith.constant 0 : index
    %58 = vector.load %arg5[%c0_23, %c0_24] : memref<1x60xf32, #tpu.memory_space<vmem>>, vector<1x60xf32>
    %c1_i32_25 = arith.constant 1 : i32
    %59 = tpu.dynamic_rotate %57 by %c1_i32_25 dim 0 : vector<64x60xf32>, i32 -> vector<64x60xf32>
    %60 = arith.truncf %59 : vector<64x60xf32> to vector<64x60xbf16>
    %c0_26 = arith.constant 0 : index
    %c0_27 = arith.constant 0 : index
    %c0_28 = arith.constant 0 : index
    %61 = vector.load %arg4[%c0_26, %c0_27, %c0_28] : memref<3x60x60xbf16, #tpu.memory_space<vmem>>, vector<1x60x60xbf16>
    %62 = vector.shape_cast %61 : vector<1x60x60xbf16> to vector<60x60xbf16>
    %cst_29 = arith.constant dense<0.000000e+00> : vector<64x60xf32>
    %63 = tpu.matmul %60, %62, %cst_29 {dimension_numbers = #tpu.dot_dimension_numbers<[1], [0], [0], [1], [0, 0, 1, 1], [], []>} : vector<64x60xbf16>, vector<60x60xbf16>, vector<64x60xf32> -> vector<64x60xf32>
    %64 = arith.truncf %57 : vector<64x60xf32> to vector<64x60xbf16>
    %c1_30 = arith.constant 1 : index
    %c0_31 = arith.constant 0 : index
    %c0_32 = arith.constant 0 : index
    %65 = vector.load %arg4[%c1_30, %c0_31, %c0_32] : memref<3x60x60xbf16, #tpu.memory_space<vmem>>, vector<1x60x60xbf16>
    %66 = vector.shape_cast %65 : vector<1x60x60xbf16> to vector<60x60xbf16>
    %cst_33 = arith.constant dense<0.000000e+00> : vector<64x60xf32>
    %67 = tpu.matmul %64, %66, %cst_33 {dimension_numbers = #tpu.dot_dimension_numbers<[1], [0], [0], [1], [0, 0, 1, 1], [], []>} : vector<64x60xbf16>, vector<60x60xbf16>, vector<64x60xf32> -> vector<64x60xf32>
    %68 = arith.addf %63, %67 : vector<64x60xf32>
    %c63_i32_34 = arith.constant 63 : i32
    %69 = tpu.dynamic_rotate %57 by %c63_i32_34 dim 0 : vector<64x60xf32>, i32 -> vector<64x60xf32>
    %70 = arith.truncf %69 : vector<64x60xf32> to vector<64x60xbf16>
    %c2_35 = arith.constant 2 : index
    %c0_36 = arith.constant 0 : index
    %c0_37 = arith.constant 0 : index
    %71 = vector.load %arg4[%c2_35, %c0_36, %c0_37] : memref<3x60x60xbf16, #tpu.memory_space<vmem>>, vector<1x60x60xbf16>
    %72 = vector.shape_cast %71 : vector<1x60x60xbf16> to vector<60x60xbf16>
    %cst_38 = arith.constant dense<0.000000e+00> : vector<64x60xf32>
    %73 = tpu.matmul %70, %72, %cst_38 {dimension_numbers = #tpu.dot_dimension_numbers<[1], [0], [0], [1], [0, 0, 1, 1], [], []>} : vector<64x60xbf16>, vector<60x60xbf16>, vector<64x60xf32> -> vector<64x60xf32>
    %74 = arith.addf %68, %73 : vector<64x60xf32>
    %75 = vector.broadcast %58 : vector<1x60xf32> to vector<64x60xf32>
    %76 = arith.addf %74, %75 : vector<64x60xf32>
    %cst_39 = arith.constant 0.00999999977 : f32
    %77 = vector.broadcast %cst_39 : f32 to vector<64x60xf32>
    %78 = arith.mulf %77, %76 : vector<64x60xf32>
    %79 = arith.maximumf %76, %78 : vector<64x60xf32>
    %c15_i32_40 = arith.constant 15 : i32
    %80 = vector.broadcast %c15_i32_40 : i32 to vector<64x1xi32>
    %81 = arith.cmpi slt, %2, %80 : vector<64x1xi32>
    %82 = arith.extui %81 : vector<64x1xi1> to vector<64x1xi32>
    %83 = arith.sitofp %82 : vector<64x1xi32> to vector<64x1xf32>
    %84 = vector.broadcast %83 : vector<64x1xf32> to vector<64x60xf32>
    %85 = arith.mulf %79, %84 : vector<64x60xf32>
    %86 = arith.addf %33, %85 : vector<64x60xf32>
    %c0_41 = arith.constant 0 : index
    %c0_42 = arith.constant 0 : index
    %87 = vector.load %arg18[%c0_41, %c0_42] : memref<60x60xf32, #tpu.memory_space<vmem>>, vector<60x60xf32>
    %88 = vector.shape_cast %86 : vector<64x60xf32> to vector<4x16x60xf32>
    %c15_i32_43 = arith.constant 15 : i32
    %89 = vector.broadcast %c15_i32_43 : i32 to vector<16x1xi32>
    %90 = arith.cmpi slt, %3, %89 : vector<16x1xi32>
    %91 = arith.extui %90 : vector<16x1xi1> to vector<16x1xi32>
    %92 = arith.sitofp %91 : vector<16x1xi32> to vector<16x1xf32>
    %cst_44 = arith.constant dense<0.000000e+00> : vector<4x60xf32>
    %93 = vector.multi_reduction <add>, %88, %cst_44 [1] : vector<4x16x60xf32> to vector<4x60xf32>
    %cst_45 = arith.constant dense<0.000000e+00> : vector<4x60xf32>
    %94 = tpu.matmul %93, %87, %cst_45 {dimension_numbers = #tpu.dot_dimension_numbers<[1], [0], [0], [1], [0, 0, 1, 1], [], []>} : vector<4x60xf32>, vector<60x60xf32>, vector<4x60xf32> -> vector<4x60xf32>
    %95 = vector.shape_cast %94 : vector<4x60xf32> to vector<4x1x60xf32>
    %96 = vector.broadcast %95 : vector<4x1x60xf32> to vector<4x16x60xf32>
    %97 = arith.subf %88, %96 : vector<4x16x60xf32>
    %98 = vector.shape_cast %92 : vector<16x1xf32> to vector<1x16x1xf32>
    %99 = vector.broadcast %98 : vector<1x16x1xf32> to vector<4x16x60xf32>
    %100 = arith.mulf %97, %99 : vector<4x16x60xf32>
    %101 = arith.mulf %100, %100 : vector<4x16x60xf32>
    %cst_46 = arith.constant dense<0.000000e+00> : vector<4x60xf32>
    %102 = vector.multi_reduction <add>, %101, %cst_46 [1] : vector<4x16x60xf32> to vector<4x60xf32>
    %cst_47 = arith.constant dense<0.000000e+00> : vector<4x60xf32>
    %103 = tpu.matmul %102, %87, %cst_47 {dimension_numbers = #tpu.dot_dimension_numbers<[1], [0], [0], [1], [0, 0, 1, 1], [], []>} : vector<4x60xf32>, vector<60x60xf32>, vector<4x60xf32> -> vector<4x60xf32>
    %cst_48 = arith.constant 9.99999974E-6 : f32
    %104 = vector.broadcast %cst_48 : f32 to vector<4x60xf32>
    %105 = arith.addf %103, %104 : vector<4x60xf32>
    %106 = math.rsqrt %105 : vector<4x60xf32>
    %107 = vector.shape_cast %106 : vector<4x60xf32> to vector<4x1x60xf32>
    %108 = vector.broadcast %107 : vector<4x1x60xf32> to vector<4x16x60xf32>
    %109 = arith.mulf %100, %108 : vector<4x16x60xf32>
    %110 = vector.shape_cast %109 : vector<4x16x60xf32> to vector<64x60xf32>
    %c0_49 = arith.constant 0 : index
    %c0_50 = arith.constant 0 : index
    %111 = vector.load %arg7[%c0_49, %c0_50] : memref<1x60xf32, #tpu.memory_space<vmem>>, vector<1x60xf32>
    %c1_i32_51 = arith.constant 1 : i32
    %112 = tpu.dynamic_rotate %110 by %c1_i32_51 dim 0 : vector<64x60xf32>, i32 -> vector<64x60xf32>
    %113 = arith.truncf %112 : vector<64x60xf32> to vector<64x60xbf16>
    %c0_52 = arith.constant 0 : index
    %c0_53 = arith.constant 0 : index
    %c0_54 = arith.constant 0 : index
    %114 = vector.load %arg6[%c0_52, %c0_53, %c0_54] : memref<3x60x60xbf16, #tpu.memory_space<vmem>>, vector<1x60x60xbf16>
    %115 = vector.shape_cast %114 : vector<1x60x60xbf16> to vector<60x60xbf16>
    %cst_55 = arith.constant dense<0.000000e+00> : vector<64x60xf32>
    %116 = tpu.matmul %113, %115, %cst_55 {dimension_numbers = #tpu.dot_dimension_numbers<[1], [0], [0], [1], [0, 0, 1, 1], [], []>} : vector<64x60xbf16>, vector<60x60xbf16>, vector<64x60xf32> -> vector<64x60xf32>
    %117 = arith.truncf %110 : vector<64x60xf32> to vector<64x60xbf16>
    %c1_56 = arith.constant 1 : index
    %c0_57 = arith.constant 0 : index
    %c0_58 = arith.constant 0 : index
    %118 = vector.load %arg6[%c1_56, %c0_57, %c0_58] : memref<3x60x60xbf16, #tpu.memory_space<vmem>>, vector<1x60x60xbf16>
    %119 = vector.shape_cast %118 : vector<1x60x60xbf16> to vector<60x60xbf16>
    %cst_59 = arith.constant dense<0.000000e+00> : vector<64x60xf32>
    %120 = tpu.matmul %117, %119, %cst_59 {dimension_numbers = #tpu.dot_dimension_numbers<[1], [0], [0], [1], [0, 0, 1, 1], [], []>} : vector<64x60xbf16>, vector<60x60xbf16>, vector<64x60xf32> -> vector<64x60xf32>
    %121 = arith.addf %116, %120 : vector<64x60xf32>
    %c63_i32_60 = arith.constant 63 : i32
    %122 = tpu.dynamic_rotate %110 by %c63_i32_60 dim 0 : vector<64x60xf32>, i32 -> vector<64x60xf32>
    %123 = arith.truncf %122 : vector<64x60xf32> to vector<64x60xbf16>
    %c2_61 = arith.constant 2 : index
    %c0_62 = arith.constant 0 : index
    %c0_63 = arith.constant 0 : index
    %124 = vector.load %arg6[%c2_61, %c0_62, %c0_63] : memref<3x60x60xbf16, #tpu.memory_space<vmem>>, vector<1x60x60xbf16>
    %125 = vector.shape_cast %124 : vector<1x60x60xbf16> to vector<60x60xbf16>
    %cst_64 = arith.constant dense<0.000000e+00> : vector<64x60xf32>
    %126 = tpu.matmul %123, %125, %cst_64 {dimension_numbers = #tpu.dot_dimension_numbers<[1], [0], [0], [1], [0, 0, 1, 1], [], []>} : vector<64x60xbf16>, vector<60x60xbf16>, vector<64x60xf32> -> vector<64x60xf32>
    %127 = arith.addf %121, %126 : vector<64x60xf32>
    %128 = vector.broadcast %111 : vector<1x60xf32> to vector<64x60xf32>
    %129 = arith.addf %127, %128 : vector<64x60xf32>
    %cst_65 = arith.constant 0.00999999977 : f32
    %130 = vector.broadcast %cst_65 : f32 to vector<64x60xf32>
    %131 = arith.mulf %130, %129 : vector<64x60xf32>
    %132 = arith.maximumf %129, %131 : vector<64x60xf32>
    %c15_i32_66 = arith.constant 15 : i32
    %133 = vector.broadcast %c15_i32_66 : i32 to vector<64x1xi32>
    %134 = arith.cmpi slt, %2, %133 : vector<64x1xi32>
    %135 = arith.extui %134 : vector<64x1xi1> to vector<64x1xi32>
    %136 = arith.sitofp %135 : vector<64x1xi32> to vector<64x1xf32>
    %137 = vector.broadcast %136 : vector<64x1xf32> to vector<64x60xf32>
    %138 = arith.mulf %132, %137 : vector<64x60xf32>
    %139 = arith.addf %86, %138 : vector<64x60xf32>
    %c0_67 = arith.constant 0 : index
    %c0_68 = arith.constant 0 : index
    %140 = vector.load %arg18[%c0_67, %c0_68] : memref<60x60xf32, #tpu.memory_space<vmem>>, vector<60x60xf32>
    %141 = vector.shape_cast %139 : vector<64x60xf32> to vector<4x16x60xf32>
    %c15_i32_69 = arith.constant 15 : i32
    %142 = vector.broadcast %c15_i32_69 : i32 to vector<16x1xi32>
    %143 = arith.cmpi slt, %3, %142 : vector<16x1xi32>
    %144 = arith.extui %143 : vector<16x1xi1> to vector<16x1xi32>
    %145 = arith.sitofp %144 : vector<16x1xi32> to vector<16x1xf32>
    %cst_70 = arith.constant dense<0.000000e+00> : vector<4x60xf32>
    %146 = vector.multi_reduction <add>, %141, %cst_70 [1] : vector<4x16x60xf32> to vector<4x60xf32>
    %cst_71 = arith.constant dense<0.000000e+00> : vector<4x60xf32>
    %147 = tpu.matmul %146, %140, %cst_71 {dimension_numbers = #tpu.dot_dimension_numbers<[1], [0], [0], [1], [0, 0, 1, 1], [], []>} : vector<4x60xf32>, vector<60x60xf32>, vector<4x60xf32> -> vector<4x60xf32>
    %148 = vector.shape_cast %147 : vector<4x60xf32> to vector<4x1x60xf32>
    %149 = vector.broadcast %148 : vector<4x1x60xf32> to vector<4x16x60xf32>
    %150 = arith.subf %141, %149 : vector<4x16x60xf32>
    %151 = vector.shape_cast %145 : vector<16x1xf32> to vector<1x16x1xf32>
    %152 = vector.broadcast %151 : vector<1x16x1xf32> to vector<4x16x60xf32>
    %153 = arith.mulf %150, %152 : vector<4x16x60xf32>
    %154 = arith.mulf %153, %153 : vector<4x16x60xf32>
    %cst_72 = arith.constant dense<0.000000e+00> : vector<4x60xf32>
    %155 = vector.multi_reduction <add>, %154, %cst_72 [1] : vector<4x16x60xf32> to vector<4x60xf32>
    %cst_73 = arith.constant dense<0.000000e+00> : vector<4x60xf32>
    %156 = tpu.matmul %155, %140, %cst_73 {dimension_numbers = #tpu.dot_dimension_numbers<[1], [0], [0], [1], [0, 0, 1, 1], [], []>} : vector<4x60xf32>, vector<60x60xf32>, vector<4x60xf32> -> vector<4x60xf32>
    %cst_74 = arith.constant 9.99999974E-6 : f32
    %157 = vector.broadcast %cst_74 : f32 to vector<4x60xf32>
    %158 = arith.addf %156, %157 : vector<4x60xf32>
    %159 = math.rsqrt %158 : vector<4x60xf32>
    %160 = vector.shape_cast %159 : vector<4x60xf32> to vector<4x1x60xf32>
    %161 = vector.broadcast %160 : vector<4x1x60xf32> to vector<4x16x60xf32>
    %162 = arith.mulf %153, %161 : vector<4x16x60xf32>
    %163 = vector.shape_cast %162 : vector<4x16x60xf32> to vector<64x60xf32>
    %c0_75 = arith.constant 0 : index
    %c0_76 = arith.constant 0 : index
    %164 = vector.load %arg9[%c0_75, %c0_76] : memref<1x60xf32, #tpu.memory_space<vmem>>, vector<1x60xf32>
    %c1_i32_77 = arith.constant 1 : i32
    %165 = tpu.dynamic_rotate %163 by %c1_i32_77 dim 0 : vector<64x60xf32>, i32 -> vector<64x60xf32>
    %166 = arith.truncf %165 : vector<64x60xf32> to vector<64x60xbf16>
    %c0_78 = arith.constant 0 : index
    %c0_79 = arith.constant 0 : index
    %c0_80 = arith.constant 0 : index
    %167 = vector.load %arg8[%c0_78, %c0_79, %c0_80] : memref<3x60x60xbf16, #tpu.memory_space<vmem>>, vector<1x60x60xbf16>
    %168 = vector.shape_cast %167 : vector<1x60x60xbf16> to vector<60x60xbf16>
    %cst_81 = arith.constant dense<0.000000e+00> : vector<64x60xf32>
    %169 = tpu.matmul %166, %168, %cst_81 {dimension_numbers = #tpu.dot_dimension_numbers<[1], [0], [0], [1], [0, 0, 1, 1], [], []>} : vector<64x60xbf16>, vector<60x60xbf16>, vector<64x60xf32> -> vector<64x60xf32>
    %170 = arith.truncf %163 : vector<64x60xf32> to vector<64x60xbf16>
    %c1_82 = arith.constant 1 : index
    %c0_83 = arith.constant 0 : index
    %c0_84 = arith.constant 0 : index
    %171 = vector.load %arg8[%c1_82, %c0_83, %c0_84] : memref<3x60x60xbf16, #tpu.memory_space<vmem>>, vector<1x60x60xbf16>
    %172 = vector.shape_cast %171 : vector<1x60x60xbf16> to vector<60x60xbf16>
    %cst_85 = arith.constant dense<0.000000e+00> : vector<64x60xf32>
    %173 = tpu.matmul %170, %172, %cst_85 {dimension_numbers = #tpu.dot_dimension_numbers<[1], [0], [0], [1], [0, 0, 1, 1], [], []>} : vector<64x60xbf16>, vector<60x60xbf16>, vector<64x60xf32> -> vector<64x60xf32>
    %174 = arith.addf %169, %173 : vector<64x60xf32>
    %c63_i32_86 = arith.constant 63 : i32
    %175 = tpu.dynamic_rotate %163 by %c63_i32_86 dim 0 : vector<64x60xf32>, i32 -> vector<64x60xf32>
    %176 = arith.truncf %175 : vector<64x60xf32> to vector<64x60xbf16>
    %c2_87 = arith.constant 2 : index
    %c0_88 = arith.constant 0 : index
    %c0_89 = arith.constant 0 : index
    %177 = vector.load %arg8[%c2_87, %c0_88, %c0_89] : memref<3x60x60xbf16, #tpu.memory_space<vmem>>, vector<1x60x60xbf16>
    %178 = vector.shape_cast %177 : vector<1x60x60xbf16> to vector<60x60xbf16>
    %cst_90 = arith.constant dense<0.000000e+00> : vector<64x60xf32>
    %179 = tpu.matmul %176, %178, %cst_90 {dimension_numbers = #tpu.dot_dimension_numbers<[1], [0], [0], [1], [0, 0, 1, 1], [], []>} : vector<64x60xbf16>, vector<60x60xbf16>, vector<64x60xf32> -> vector<64x60xf32>
    %180 = arith.addf %174, %179 : vector<64x60xf32>
    %181 = vector.broadcast %164 : vector<1x60xf32> to vector<64x60xf32>
    %182 = arith.addf %180, %181 : vector<64x60xf32>
    %cst_91 = arith.constant 0.00999999977 : f32
    %183 = vector.broadcast %cst_91 : f32 to vector<64x60xf32>
    %184 = arith.mulf %183, %182 : vector<64x60xf32>
    %185 = arith.maximumf %182, %184 : vector<64x60xf32>
    %c15_i32_92 = arith.constant 15 : i32
    %186 = vector.broadcast %c15_i32_92 : i32 to vector<64x1xi32>
    %187 = arith.cmpi slt, %2, %186 : vector<64x1xi32>
    %188 = arith.extui %187 : vector<64x1xi1> to vector<64x1xi32>
    %189 = arith.sitofp %188 : vector<64x1xi32> to vector<64x1xf32>
    %190 = vector.broadcast %189 : vector<64x1xf32> to vector<64x60xf32>
    %191 = arith.mulf %185, %190 : vector<64x60xf32>
    %c0_93 = arith.constant 0 : index
    %c0_94 = arith.constant 0 : index
    %192 = vector.load %arg18[%c0_93, %c0_94] : memref<60x60xf32, #tpu.memory_space<vmem>>, vector<60x60xf32>
    %193 = vector.shape_cast %191 : vector<64x60xf32> to vector<4x16x60xf32>
    %c15_i32_95 = arith.constant 15 : i32
    %194 = vector.broadcast %c15_i32_95 : i32 to vector<16x1xi32>
    %195 = arith.cmpi slt, %3, %194 : vector<16x1xi32>
    %196 = arith.extui %195 : vector<16x1xi1> to vector<16x1xi32>
    %197 = arith.sitofp %196 : vector<16x1xi32> to vector<16x1xf32>
    %cst_96 = arith.constant dense<0.000000e+00> : vector<4x60xf32>
    %198 = vector.multi_reduction <add>, %193, %cst_96 [1] : vector<4x16x60xf32> to vector<4x60xf32>
    %cst_97 = arith.constant dense<0.000000e+00> : vector<4x60xf32>
    %199 = tpu.matmul %198, %192, %cst_97 {dimension_numbers = #tpu.dot_dimension_numbers<[1], [0], [0], [1], [0, 0, 1, 1], [], []>} : vector<4x60xf32>, vector<60x60xf32>, vector<4x60xf32> -> vector<4x60xf32>
    %200 = vector.shape_cast %199 : vector<4x60xf32> to vector<4x1x60xf32>
    %201 = vector.broadcast %200 : vector<4x1x60xf32> to vector<4x16x60xf32>
    %202 = arith.subf %193, %201 : vector<4x16x60xf32>
    %203 = vector.shape_cast %197 : vector<16x1xf32> to vector<1x16x1xf32>
    %204 = vector.broadcast %203 : vector<1x16x1xf32> to vector<4x16x60xf32>
    %205 = arith.mulf %202, %204 : vector<4x16x60xf32>
    %206 = arith.mulf %205, %205 : vector<4x16x60xf32>
    %cst_98 = arith.constant dense<0.000000e+00> : vector<4x60xf32>
    %207 = vector.multi_reduction <add>, %206, %cst_98 [1] : vector<4x16x60xf32> to vector<4x60xf32>
    %cst_99 = arith.constant dense<0.000000e+00> : vector<4x60xf32>
    %208 = tpu.matmul %207, %192, %cst_99 {dimension_numbers = #tpu.dot_dimension_numbers<[1], [0], [0], [1], [0, 0, 1, 1], [], []>} : vector<4x60xf32>, vector<60x60xf32>, vector<4x60xf32> -> vector<4x60xf32>
    %cst_100 = arith.constant 9.99999974E-6 : f32
    %209 = vector.broadcast %cst_100 : f32 to vector<4x60xf32>
    %210 = arith.addf %208, %209 : vector<4x60xf32>
    %211 = math.rsqrt %210 : vector<4x60xf32>
    %212 = vector.shape_cast %211 : vector<4x60xf32> to vector<4x1x60xf32>
    %213 = vector.broadcast %212 : vector<4x1x60xf32> to vector<4x16x60xf32>
    %214 = arith.mulf %205, %213 : vector<4x16x60xf32>
    %215 = vector.shape_cast %214 : vector<4x16x60xf32> to vector<64x60xf32>
    %216 = arith.addf %139, %215 : vector<64x60xf32>
    %c0_101 = arith.constant 0 : index
    %c0_102 = arith.constant 0 : index
    %217 = vector.load %arg11[%c0_101, %c0_102] : memref<1x88xf32, #tpu.memory_space<vmem>>, vector<1x88xf32>
    %218 = arith.truncf %216 : vector<64x60xf32> to vector<64x60xbf16>
    %c0_103 = arith.constant 0 : index
    %c0_104 = arith.constant 0 : index
    %c0_105 = arith.constant 0 : index
    %219 = vector.load %arg10[%c0_103, %c0_104, %c0_105] : memref<5x60x88xbf16, #tpu.memory_space<vmem>>, vector<1x60x88xbf16>
    %220 = vector.shape_cast %219 : vector<1x60x88xbf16> to vector<60x88xbf16>
    %cst_106 = arith.constant dense<0.000000e+00> : vector<64x88xf32>
    %221 = tpu.matmul %218, %220, %cst_106 {dimension_numbers = #tpu.dot_dimension_numbers<[1], [0], [0], [1], [0, 0, 1, 1], [], []>} : vector<64x60xbf16>, vector<60x88xbf16>, vector<64x88xf32> -> vector<64x88xf32>
    %c63_i32_107 = arith.constant 63 : i32
    %222 = tpu.dynamic_rotate %216 by %c63_i32_107 dim 0 : vector<64x60xf32>, i32 -> vector<64x60xf32>
    %223 = arith.truncf %222 : vector<64x60xf32> to vector<64x60xbf16>
    %c1_108 = arith.constant 1 : index
    %c0_109 = arith.constant 0 : index
    %c0_110 = arith.constant 0 : index
    %224 = vector.load %arg10[%c1_108, %c0_109, %c0_110] : memref<5x60x88xbf16, #tpu.memory_space<vmem>>, vector<1x60x88xbf16>
    %225 = vector.shape_cast %224 : vector<1x60x88xbf16> to vector<60x88xbf16>
    %cst_111 = arith.constant dense<0.000000e+00> : vector<64x88xf32>
    %226 = tpu.matmul %223, %225, %cst_111 {dimension_numbers = #tpu.dot_dimension_numbers<[1], [0], [0], [1], [0, 0, 1, 1], [], []>} : vector<64x60xbf16>, vector<60x88xbf16>, vector<64x88xf32> -> vector<64x88xf32>
    %227 = arith.addf %221, %226 : vector<64x88xf32>
    %c62_i32 = arith.constant 62 : i32
    %228 = tpu.dynamic_rotate %216 by %c62_i32 dim 0 : vector<64x60xf32>, i32 -> vector<64x60xf32>
    %229 = arith.truncf %228 : vector<64x60xf32> to vector<64x60xbf16>
    %c2_112 = arith.constant 2 : index
    %c0_113 = arith.constant 0 : index
    %c0_114 = arith.constant 0 : index
    %230 = vector.load %arg10[%c2_112, %c0_113, %c0_114] : memref<5x60x88xbf16, #tpu.memory_space<vmem>>, vector<1x60x88xbf16>
    %231 = vector.shape_cast %230 : vector<1x60x88xbf16> to vector<60x88xbf16>
    %cst_115 = arith.constant dense<0.000000e+00> : vector<64x88xf32>
    %232 = tpu.matmul %229, %231, %cst_115 {dimension_numbers = #tpu.dot_dimension_numbers<[1], [0], [0], [1], [0, 0, 1, 1], [], []>} : vector<64x60xbf16>, vector<60x88xbf16>, vector<64x88xf32> -> vector<64x88xf32>
    %233 = arith.addf %227, %232 : vector<64x88xf32>
    %c61_i32 = arith.constant 61 : i32
    %234 = tpu.dynamic_rotate %216 by %c61_i32 dim 0 : vector<64x60xf32>, i32 -> vector<64x60xf32>
    %235 = arith.truncf %234 : vector<64x60xf32> to vector<64x60xbf16>
    %c3 = arith.constant 3 : index
    %c0_116 = arith.constant 0 : index
    %c0_117 = arith.constant 0 : index
    %236 = vector.load %arg10[%c3, %c0_116, %c0_117] : memref<5x60x88xbf16, #tpu.memory_space<vmem>>, vector<1x60x88xbf16>
    %237 = vector.shape_cast %236 : vector<1x60x88xbf16> to vector<60x88xbf16>
    %cst_118 = arith.constant dense<0.000000e+00> : vector<64x88xf32>
    %238 = tpu.matmul %235, %237, %cst_118 {dimension_numbers = #tpu.dot_dimension_numbers<[1], [0], [0], [1], [0, 0, 1, 1], [], []>} : vector<64x60xbf16>, vector<60x88xbf16>, vector<64x88xf32> -> vector<64x88xf32>
    %239 = arith.addf %233, %238 : vector<64x88xf32>
    %c60_i32 = arith.constant 60 : i32
    %240 = tpu.dynamic_rotate %216 by %c60_i32 dim 0 : vector<64x60xf32>, i32 -> vector<64x60xf32>
    %241 = arith.truncf %240 : vector<64x60xf32> to vector<64x60xbf16>
    %c4 = arith.constant 4 : index
    %c0_119 = arith.constant 0 : index
    %c0_120 = arith.constant 0 : index
    %242 = vector.load %arg10[%c4, %c0_119, %c0_120] : memref<5x60x88xbf16, #tpu.memory_space<vmem>>, vector<1x60x88xbf16>
    %243 = vector.shape_cast %242 : vector<1x60x88xbf16> to vector<60x88xbf16>
    %cst_121 = arith.constant dense<0.000000e+00> : vector<64x88xf32>
    %244 = tpu.matmul %241, %243, %cst_121 {dimension_numbers = #tpu.dot_dimension_numbers<[1], [0], [0], [1], [0, 0, 1, 1], [], []>} : vector<64x60xbf16>, vector<60x88xbf16>, vector<64x88xf32> -> vector<64x88xf32>
    %245 = arith.addf %239, %244 : vector<64x88xf32>
    %246 = vector.broadcast %217 : vector<1x88xf32> to vector<64x88xf32>
    %247 = arith.addf %245, %246 : vector<64x88xf32>
    %cst_122 = arith.constant 0.00999999977 : f32
    %248 = vector.broadcast %cst_122 : f32 to vector<64x88xf32>
    %249 = arith.mulf %248, %247 : vector<64x88xf32>
    %250 = arith.maximumf %247, %249 : vector<64x88xf32>
    %c11_i32 = arith.constant 11 : i32
    %251 = vector.broadcast %c11_i32 : i32 to vector<64x1xi32>
    %252 = arith.cmpi slt, %2, %251 : vector<64x1xi32>
    %253 = arith.extui %252 : vector<64x1xi1> to vector<64x1xi32>
    %254 = arith.sitofp %253 : vector<64x1xi32> to vector<64x1xf32>
    %255 = vector.broadcast %254 : vector<64x1xf32> to vector<64x88xf32>
    %256 = arith.mulf %250, %255 : vector<64x88xf32>
    %c0_123 = arith.constant 0 : index
    %c0_124 = arith.constant 0 : index
    %257 = vector.load %arg19[%c0_123, %c0_124] : memref<88x88xf32, #tpu.memory_space<vmem>>, vector<88x88xf32>
    %258 = vector.shape_cast %256 : vector<64x88xf32> to vector<4x16x88xf32>
    %c11_i32_125 = arith.constant 11 : i32
    %259 = vector.broadcast %c11_i32_125 : i32 to vector<16x1xi32>
    %260 = arith.cmpi slt, %3, %259 : vector<16x1xi32>
    %261 = arith.extui %260 : vector<16x1xi1> to vector<16x1xi32>
    %262 = arith.sitofp %261 : vector<16x1xi32> to vector<16x1xf32>
    %cst_126 = arith.constant dense<0.000000e+00> : vector<4x88xf32>
    %263 = vector.multi_reduction <add>, %258, %cst_126 [1] : vector<4x16x88xf32> to vector<4x88xf32>
    %cst_127 = arith.constant dense<0.000000e+00> : vector<4x88xf32>
    %264 = tpu.matmul %263, %257, %cst_127 {dimension_numbers = #tpu.dot_dimension_numbers<[1], [0], [0], [1], [0, 0, 1, 1], [], []>} : vector<4x88xf32>, vector<88x88xf32>, vector<4x88xf32> -> vector<4x88xf32>
    %265 = vector.shape_cast %264 : vector<4x88xf32> to vector<4x1x88xf32>
    %266 = vector.broadcast %265 : vector<4x1x88xf32> to vector<4x16x88xf32>
    %267 = arith.subf %258, %266 : vector<4x16x88xf32>
    %268 = vector.shape_cast %262 : vector<16x1xf32> to vector<1x16x1xf32>
    %269 = vector.broadcast %268 : vector<1x16x1xf32> to vector<4x16x88xf32>
    %270 = arith.mulf %267, %269 : vector<4x16x88xf32>
    %271 = arith.mulf %270, %270 : vector<4x16x88xf32>
    %cst_128 = arith.constant dense<0.000000e+00> : vector<4x88xf32>
    %272 = vector.multi_reduction <add>, %271, %cst_128 [1] : vector<4x16x88xf32> to vector<4x88xf32>
    %cst_129 = arith.constant dense<0.000000e+00> : vector<4x88xf32>
    %273 = tpu.matmul %272, %257, %cst_129 {dimension_numbers = #tpu.dot_dimension_numbers<[1], [0], [0], [1], [0, 0, 1, 1], [], []>} : vector<4x88xf32>, vector<88x88xf32>, vector<4x88xf32> -> vector<4x88xf32>
    %cst_130 = arith.constant 9.99999974E-6 : f32
    %274 = vector.broadcast %cst_130 : f32 to vector<4x88xf32>
    %275 = arith.addf %273, %274 : vector<4x88xf32>
    %276 = math.rsqrt %275 : vector<4x88xf32>
    %277 = vector.shape_cast %276 : vector<4x88xf32> to vector<4x1x88xf32>
    %278 = vector.broadcast %277 : vector<4x1x88xf32> to vector<4x16x88xf32>
    %279 = arith.mulf %270, %278 : vector<4x16x88xf32>
    %280 = vector.shape_cast %279 : vector<4x16x88xf32> to vector<64x88xf32>
    %c0_131 = arith.constant 0 : index
    %c0_132 = arith.constant 0 : index
    %281 = vector.load %arg13[%c0_131, %c0_132] : memref<1x112xf32, #tpu.memory_space<vmem>>, vector<1x112xf32>
    %282 = arith.truncf %280 : vector<64x88xf32> to vector<64x88xbf16>
    %c0_133 = arith.constant 0 : index
    %c0_134 = arith.constant 0 : index
    %c0_135 = arith.constant 0 : index
    %283 = vector.load %arg12[%c0_133, %c0_134, %c0_135] : memref<5x88x112xbf16, #tpu.memory_space<vmem>>, vector<1x88x112xbf16>
    %284 = vector.shape_cast %283 : vector<1x88x112xbf16> to vector<88x112xbf16>
    %cst_136 = arith.constant dense<0.000000e+00> : vector<64x112xf32>
    %285 = tpu.matmul %282, %284, %cst_136 {dimension_numbers = #tpu.dot_dimension_numbers<[1], [0], [0], [1], [0, 0, 1, 1], [], []>} : vector<64x88xbf16>, vector<88x112xbf16>, vector<64x112xf32> -> vector<64x112xf32>
    %c63_i32_137 = arith.constant 63 : i32
    %286 = tpu.dynamic_rotate %280 by %c63_i32_137 dim 0 : vector<64x88xf32>, i32 -> vector<64x88xf32>
    %287 = arith.truncf %286 : vector<64x88xf32> to vector<64x88xbf16>
    %c1_138 = arith.constant 1 : index
    %c0_139 = arith.constant 0 : index
    %c0_140 = arith.constant 0 : index
    %288 = vector.load %arg12[%c1_138, %c0_139, %c0_140] : memref<5x88x112xbf16, #tpu.memory_space<vmem>>, vector<1x88x112xbf16>
    %289 = vector.shape_cast %288 : vector<1x88x112xbf16> to vector<88x112xbf16>
    %cst_141 = arith.constant dense<0.000000e+00> : vector<64x112xf32>
    %290 = tpu.matmul %287, %289, %cst_141 {dimension_numbers = #tpu.dot_dimension_numbers<[1], [0], [0], [1], [0, 0, 1, 1], [], []>} : vector<64x88xbf16>, vector<88x112xbf16>, vector<64x112xf32> -> vector<64x112xf32>
    %291 = arith.addf %285, %290 : vector<64x112xf32>
    %c62_i32_142 = arith.constant 62 : i32
    %292 = tpu.dynamic_rotate %280 by %c62_i32_142 dim 0 : vector<64x88xf32>, i32 -> vector<64x88xf32>
    %293 = arith.truncf %292 : vector<64x88xf32> to vector<64x88xbf16>
    %c2_143 = arith.constant 2 : index
    %c0_144 = arith.constant 0 : index
    %c0_145 = arith.constant 0 : index
    %294 = vector.load %arg12[%c2_143, %c0_144, %c0_145] : memref<5x88x112xbf16, #tpu.memory_space<vmem>>, vector<1x88x112xbf16>
    %295 = vector.shape_cast %294 : vector<1x88x112xbf16> to vector<88x112xbf16>
    %cst_146 = arith.constant dense<0.000000e+00> : vector<64x112xf32>
    %296 = tpu.matmul %293, %295, %cst_146 {dimension_numbers = #tpu.dot_dimension_numbers<[1], [0], [0], [1], [0, 0, 1, 1], [], []>} : vector<64x88xbf16>, vector<88x112xbf16>, vector<64x112xf32> -> vector<64x112xf32>
    %297 = arith.addf %291, %296 : vector<64x112xf32>
    %c61_i32_147 = arith.constant 61 : i32
    %298 = tpu.dynamic_rotate %280 by %c61_i32_147 dim 0 : vector<64x88xf32>, i32 -> vector<64x88xf32>
    %299 = arith.truncf %298 : vector<64x88xf32> to vector<64x88xbf16>
    %c3_148 = arith.constant 3 : index
    %c0_149 = arith.constant 0 : index
    %c0_150 = arith.constant 0 : index
    %300 = vector.load %arg12[%c3_148, %c0_149, %c0_150] : memref<5x88x112xbf16, #tpu.memory_space<vmem>>, vector<1x88x112xbf16>
    %301 = vector.shape_cast %300 : vector<1x88x112xbf16> to vector<88x112xbf16>
    %cst_151 = arith.constant dense<0.000000e+00> : vector<64x112xf32>
    %302 = tpu.matmul %299, %301, %cst_151 {dimension_numbers = #tpu.dot_dimension_numbers<[1], [0], [0], [1], [0, 0, 1, 1], [], []>} : vector<64x88xbf16>, vector<88x112xbf16>, vector<64x112xf32> -> vector<64x112xf32>
    %303 = arith.addf %297, %302 : vector<64x112xf32>
    %c60_i32_152 = arith.constant 60 : i32
    %304 = tpu.dynamic_rotate %280 by %c60_i32_152 dim 0 : vector<64x88xf32>, i32 -> vector<64x88xf32>
    %305 = arith.truncf %304 : vector<64x88xf32> to vector<64x88xbf16>
    %c4_153 = arith.constant 4 : index
    %c0_154 = arith.constant 0 : index
    %c0_155 = arith.constant 0 : index
    %306 = vector.load %arg12[%c4_153, %c0_154, %c0_155] : memref<5x88x112xbf16, #tpu.memory_space<vmem>>, vector<1x88x112xbf16>
    %307 = vector.shape_cast %306 : vector<1x88x112xbf16> to vector<88x112xbf16>
    %cst_156 = arith.constant dense<0.000000e+00> : vector<64x112xf32>
    %308 = tpu.matmul %305, %307, %cst_156 {dimension_numbers = #tpu.dot_dimension_numbers<[1], [0], [0], [1], [0, 0, 1, 1], [], []>} : vector<64x88xbf16>, vector<88x112xbf16>, vector<64x112xf32> -> vector<64x112xf32>
    %309 = arith.addf %303, %308 : vector<64x112xf32>
    %310 = vector.broadcast %281 : vector<1x112xf32> to vector<64x112xf32>
    %311 = arith.addf %309, %310 : vector<64x112xf32>
    %cst_157 = arith.constant 0.00999999977 : f32
    %312 = vector.broadcast %cst_157 : f32 to vector<64x112xf32>
    %313 = arith.mulf %312, %311 : vector<64x112xf32>
    %314 = arith.maximumf %311, %313 : vector<64x112xf32>
    %c7_i32 = arith.constant 7 : i32
    %315 = vector.broadcast %c7_i32 : i32 to vector<64x1xi32>
    %316 = arith.cmpi slt, %2, %315 : vector<64x1xi32>
    %317 = arith.extui %316 : vector<64x1xi1> to vector<64x1xi32>
    %318 = arith.sitofp %317 : vector<64x1xi32> to vector<64x1xf32>
    %319 = vector.broadcast %318 : vector<64x1xf32> to vector<64x112xf32>
    %320 = arith.mulf %314, %319 : vector<64x112xf32>
    %c0_158 = arith.constant 0 : index
    %c0_159 = arith.constant 0 : index
    %321 = vector.load %arg20[%c0_158, %c0_159] : memref<112x112xf32, #tpu.memory_space<vmem>>, vector<112x112xf32>
    %322 = vector.shape_cast %320 : vector<64x112xf32> to vector<4x16x112xf32>
    %c7_i32_160 = arith.constant 7 : i32
    %323 = vector.broadcast %c7_i32_160 : i32 to vector<16x1xi32>
    %324 = arith.cmpi slt, %3, %323 : vector<16x1xi32>
    %325 = arith.extui %324 : vector<16x1xi1> to vector<16x1xi32>
    %326 = arith.sitofp %325 : vector<16x1xi32> to vector<16x1xf32>
    %cst_161 = arith.constant dense<0.000000e+00> : vector<4x112xf32>
    %327 = vector.multi_reduction <add>, %322, %cst_161 [1] : vector<4x16x112xf32> to vector<4x112xf32>
    %cst_162 = arith.constant dense<0.000000e+00> : vector<4x112xf32>
    %328 = tpu.matmul %327, %321, %cst_162 {dimension_numbers = #tpu.dot_dimension_numbers<[1], [0], [0], [1], [0, 0, 1, 1], [], []>} : vector<4x112xf32>, vector<112x112xf32>, vector<4x112xf32> -> vector<4x112xf32>
    %329 = vector.shape_cast %328 : vector<4x112xf32> to vector<4x1x112xf32>
    %330 = vector.broadcast %329 : vector<4x1x112xf32> to vector<4x16x112xf32>
    %331 = arith.subf %322, %330 : vector<4x16x112xf32>
    %332 = vector.shape_cast %326 : vector<16x1xf32> to vector<1x16x1xf32>
    %333 = vector.broadcast %332 : vector<1x16x1xf32> to vector<4x16x112xf32>
    %334 = arith.mulf %331, %333 : vector<4x16x112xf32>
    %335 = arith.mulf %334, %334 : vector<4x16x112xf32>
    %cst_163 = arith.constant dense<0.000000e+00> : vector<4x112xf32>
    %336 = vector.multi_reduction <add>, %335, %cst_163 [1] : vector<4x16x112xf32> to vector<4x112xf32>
    %cst_164 = arith.constant dense<0.000000e+00> : vector<4x112xf32>
    %337 = tpu.matmul %336, %321, %cst_164 {dimension_numbers = #tpu.dot_dimension_numbers<[1], [0], [0], [1], [0, 0, 1, 1], [], []>} : vector<4x112xf32>, vector<112x112xf32>, vector<4x112xf32> -> vector<4x112xf32>
    %cst_165 = arith.constant 9.99999974E-6 : f32
    %338 = vector.broadcast %cst_165 : f32 to vector<4x112xf32>
    %339 = arith.addf %337, %338 : vector<4x112xf32>
    %340 = math.rsqrt %339 : vector<4x112xf32>
    %341 = vector.shape_cast %340 : vector<4x112xf32> to vector<4x1x112xf32>
    %342 = vector.broadcast %341 : vector<4x1x112xf32> to vector<4x16x112xf32>
    %343 = arith.mulf %334, %342 : vector<4x16x112xf32>
    %344 = vector.shape_cast %343 : vector<4x16x112xf32> to vector<64x112xf32>
    %c0_166 = arith.constant 0 : index
    %c0_167 = arith.constant 0 : index
    %345 = vector.load %arg15[%c0_166, %c0_167] : memref<1x24xf32, #tpu.memory_space<vmem>>, vector<1x24xf32>
    %346 = arith.truncf %344 : vector<64x112xf32> to vector<64x112xbf16>
    %c0_168 = arith.constant 0 : index
    %c0_169 = arith.constant 0 : index
    %c0_170 = arith.constant 0 : index
    %347 = vector.load %arg14[%c0_168, %c0_169, %c0_170] : memref<5x112x24xbf16, #tpu.memory_space<vmem>>, vector<1x112x24xbf16>
    %348 = vector.shape_cast %347 : vector<1x112x24xbf16> to vector<112x24xbf16>
    %cst_171 = arith.constant dense<0.000000e+00> : vector<64x24xf32>
    %349 = tpu.matmul %346, %348, %cst_171 {dimension_numbers = #tpu.dot_dimension_numbers<[1], [0], [0], [1], [0, 0, 1, 1], [], []>} : vector<64x112xbf16>, vector<112x24xbf16>, vector<64x24xf32> -> vector<64x24xf32>
    %c63_i32_172 = arith.constant 63 : i32
    %350 = tpu.dynamic_rotate %344 by %c63_i32_172 dim 0 : vector<64x112xf32>, i32 -> vector<64x112xf32>
    %351 = arith.truncf %350 : vector<64x112xf32> to vector<64x112xbf16>
    %c1_173 = arith.constant 1 : index
    %c0_174 = arith.constant 0 : index
    %c0_175 = arith.constant 0 : index
    %352 = vector.load %arg14[%c1_173, %c0_174, %c0_175] : memref<5x112x24xbf16, #tpu.memory_space<vmem>>, vector<1x112x24xbf16>
    %353 = vector.shape_cast %352 : vector<1x112x24xbf16> to vector<112x24xbf16>
    %cst_176 = arith.constant dense<0.000000e+00> : vector<64x24xf32>
    %354 = tpu.matmul %351, %353, %cst_176 {dimension_numbers = #tpu.dot_dimension_numbers<[1], [0], [0], [1], [0, 0, 1, 1], [], []>} : vector<64x112xbf16>, vector<112x24xbf16>, vector<64x24xf32> -> vector<64x24xf32>
    %355 = arith.addf %349, %354 : vector<64x24xf32>
    %c62_i32_177 = arith.constant 62 : i32
    %356 = tpu.dynamic_rotate %344 by %c62_i32_177 dim 0 : vector<64x112xf32>, i32 -> vector<64x112xf32>
    %357 = arith.truncf %356 : vector<64x112xf32> to vector<64x112xbf16>
    %c2_178 = arith.constant 2 : index
    %c0_179 = arith.constant 0 : index
    %c0_180 = arith.constant 0 : index
    %358 = vector.load %arg14[%c2_178, %c0_179, %c0_180] : memref<5x112x24xbf16, #tpu.memory_space<vmem>>, vector<1x112x24xbf16>
    %359 = vector.shape_cast %358 : vector<1x112x24xbf16> to vector<112x24xbf16>
    %cst_181 = arith.constant dense<0.000000e+00> : vector<64x24xf32>
    %360 = tpu.matmul %357, %359, %cst_181 {dimension_numbers = #tpu.dot_dimension_numbers<[1], [0], [0], [1], [0, 0, 1, 1], [], []>} : vector<64x112xbf16>, vector<112x24xbf16>, vector<64x24xf32> -> vector<64x24xf32>
    %361 = arith.addf %355, %360 : vector<64x24xf32>
    %c61_i32_182 = arith.constant 61 : i32
    %362 = tpu.dynamic_rotate %344 by %c61_i32_182 dim 0 : vector<64x112xf32>, i32 -> vector<64x112xf32>
    %363 = arith.truncf %362 : vector<64x112xf32> to vector<64x112xbf16>
    %c3_183 = arith.constant 3 : index
    %c0_184 = arith.constant 0 : index
    %c0_185 = arith.constant 0 : index
    %364 = vector.load %arg14[%c3_183, %c0_184, %c0_185] : memref<5x112x24xbf16, #tpu.memory_space<vmem>>, vector<1x112x24xbf16>
    %365 = vector.shape_cast %364 : vector<1x112x24xbf16> to vector<112x24xbf16>
    %cst_186 = arith.constant dense<0.000000e+00> : vector<64x24xf32>
    %366 = tpu.matmul %363, %365, %cst_186 {dimension_numbers = #tpu.dot_dimension_numbers<[1], [0], [0], [1], [0, 0, 1, 1], [], []>} : vector<64x112xbf16>, vector<112x24xbf16>, vector<64x24xf32> -> vector<64x24xf32>
    %367 = arith.addf %361, %366 : vector<64x24xf32>
    %c60_i32_187 = arith.constant 60 : i32
    %368 = tpu.dynamic_rotate %344 by %c60_i32_187 dim 0 : vector<64x112xf32>, i32 -> vector<64x112xf32>
    %369 = arith.truncf %368 : vector<64x112xf32> to vector<64x112xbf16>
    %c4_188 = arith.constant 4 : index
    %c0_189 = arith.constant 0 : index
    %c0_190 = arith.constant 0 : index
    %370 = vector.load %arg14[%c4_188, %c0_189, %c0_190] : memref<5x112x24xbf16, #tpu.memory_space<vmem>>, vector<1x112x24xbf16>
    %371 = vector.shape_cast %370 : vector<1x112x24xbf16> to vector<112x24xbf16>
    %cst_191 = arith.constant dense<0.000000e+00> : vector<64x24xf32>
    %372 = tpu.matmul %369, %371, %cst_191 {dimension_numbers = #tpu.dot_dimension_numbers<[1], [0], [0], [1], [0, 0, 1, 1], [], []>} : vector<64x112xbf16>, vector<112x24xbf16>, vector<64x24xf32> -> vector<64x24xf32>
    %373 = arith.addf %367, %372 : vector<64x24xf32>
    %374 = vector.broadcast %345 : vector<1x24xf32> to vector<64x24xf32>
    %375 = arith.addf %373, %374 : vector<64x24xf32>
    %cst_192 = arith.constant 0.00999999977 : f32
    %376 = vector.broadcast %cst_192 : f32 to vector<64x24xf32>
    %377 = arith.mulf %376, %375 : vector<64x24xf32>
    %378 = arith.maximumf %375, %377 : vector<64x24xf32>
    %c3_i32 = arith.constant 3 : i32
    %379 = vector.broadcast %c3_i32 : i32 to vector<64x1xi32>
    %380 = arith.cmpi slt, %2, %379 : vector<64x1xi32>
    %381 = arith.extui %380 : vector<64x1xi1> to vector<64x1xi32>
    %382 = arith.sitofp %381 : vector<64x1xi32> to vector<64x1xf32>
    %383 = vector.broadcast %382 : vector<64x1xf32> to vector<64x24xf32>
    %384 = arith.mulf %378, %383 : vector<64x24xf32>
    %c0_193 = arith.constant 0 : index
    %c0_194 = arith.constant 0 : index
    %385 = vector.load %arg21[%c0_193, %c0_194] : memref<24x24xf32, #tpu.memory_space<vmem>>, vector<24x24xf32>
    %386 = vector.shape_cast %384 : vector<64x24xf32> to vector<4x16x24xf32>
    %c3_i32_195 = arith.constant 3 : i32
    %387 = vector.broadcast %c3_i32_195 : i32 to vector<16x1xi32>
    %388 = arith.cmpi slt, %3, %387 : vector<16x1xi32>
    %389 = arith.extui %388 : vector<16x1xi1> to vector<16x1xi32>
    %390 = arith.sitofp %389 : vector<16x1xi32> to vector<16x1xf32>
    %cst_196 = arith.constant dense<0.000000e+00> : vector<4x24xf32>
    %391 = vector.multi_reduction <add>, %386, %cst_196 [1] : vector<4x16x24xf32> to vector<4x24xf32>
    %cst_197 = arith.constant dense<0.000000e+00> : vector<4x24xf32>
    %392 = tpu.matmul %391, %385, %cst_197 {dimension_numbers = #tpu.dot_dimension_numbers<[1], [0], [0], [1], [0, 0, 1, 1], [], []>} : vector<4x24xf32>, vector<24x24xf32>, vector<4x24xf32> -> vector<4x24xf32>
    %393 = vector.shape_cast %392 : vector<4x24xf32> to vector<4x1x24xf32>
    %394 = vector.broadcast %393 : vector<4x1x24xf32> to vector<4x16x24xf32>
    %395 = arith.subf %386, %394 : vector<4x16x24xf32>
    %396 = vector.shape_cast %390 : vector<16x1xf32> to vector<1x16x1xf32>
    %397 = vector.broadcast %396 : vector<1x16x1xf32> to vector<4x16x24xf32>
    %398 = arith.mulf %395, %397 : vector<4x16x24xf32>
    %399 = arith.mulf %398, %398 : vector<4x16x24xf32>
    %cst_198 = arith.constant dense<0.000000e+00> : vector<4x24xf32>
    %400 = vector.multi_reduction <add>, %399, %cst_198 [1] : vector<4x16x24xf32> to vector<4x24xf32>
    %cst_199 = arith.constant dense<0.000000e+00> : vector<4x24xf32>
    %401 = tpu.matmul %400, %385, %cst_199 {dimension_numbers = #tpu.dot_dimension_numbers<[1], [0], [0], [1], [0, 0, 1, 1], [], []>} : vector<4x24xf32>, vector<24x24xf32>, vector<4x24xf32> -> vector<4x24xf32>
    %cst_200 = arith.constant 9.99999974E-6 : f32
    %402 = vector.broadcast %cst_200 : f32 to vector<4x24xf32>
    %403 = arith.addf %401, %402 : vector<4x24xf32>
    %404 = math.rsqrt %403 : vector<4x24xf32>
    %405 = vector.shape_cast %404 : vector<4x24xf32> to vector<4x1x24xf32>
    %406 = vector.broadcast %405 : vector<4x1x24xf32> to vector<4x16x24xf32>
    %407 = arith.mulf %398, %406 : vector<4x16x24xf32>
    %408 = vector.shape_cast %407 : vector<4x16x24xf32> to vector<64x24xf32>
    %c0_201 = arith.constant 0 : index
    %c0_202 = arith.constant 0 : index
    %409 = vector.load %arg17[%c0_201, %c0_202] : memref<1x8xf32, #tpu.memory_space<vmem>>, vector<1x8xf32>
    %410 = arith.truncf %408 : vector<64x24xf32> to vector<64x24xbf16>
    %c0_203 = arith.constant 0 : index
    %c0_204 = arith.constant 0 : index
    %c0_205 = arith.constant 0 : index
    %411 = vector.load %arg16[%c0_203, %c0_204, %c0_205] : memref<3x24x8xbf16, #tpu.memory_space<vmem>>, vector<1x24x8xbf16>
    %412 = vector.shape_cast %411 : vector<1x24x8xbf16> to vector<24x8xbf16>
    %cst_206 = arith.constant dense<0.000000e+00> : vector<64x8xf32>
    %413 = tpu.matmul %410, %412, %cst_206 {dimension_numbers = #tpu.dot_dimension_numbers<[1], [0], [0], [1], [0, 0, 1, 1], [], []>} : vector<64x24xbf16>, vector<24x8xbf16>, vector<64x8xf32> -> vector<64x8xf32>
    %c63_i32_207 = arith.constant 63 : i32
    %414 = tpu.dynamic_rotate %408 by %c63_i32_207 dim 0 : vector<64x24xf32>, i32 -> vector<64x24xf32>
    %415 = arith.truncf %414 : vector<64x24xf32> to vector<64x24xbf16>
    %c1_208 = arith.constant 1 : index
    %c0_209 = arith.constant 0 : index
    %c0_210 = arith.constant 0 : index
    %416 = vector.load %arg16[%c1_208, %c0_209, %c0_210] : memref<3x24x8xbf16, #tpu.memory_space<vmem>>, vector<1x24x8xbf16>
    %417 = vector.shape_cast %416 : vector<1x24x8xbf16> to vector<24x8xbf16>
    %cst_211 = arith.constant dense<0.000000e+00> : vector<64x8xf32>
    %418 = tpu.matmul %415, %417, %cst_211 {dimension_numbers = #tpu.dot_dimension_numbers<[1], [0], [0], [1], [0, 0, 1, 1], [], []>} : vector<64x24xbf16>, vector<24x8xbf16>, vector<64x8xf32> -> vector<64x8xf32>
    %419 = arith.addf %413, %418 : vector<64x8xf32>
    %c62_i32_212 = arith.constant 62 : i32
    %420 = tpu.dynamic_rotate %408 by %c62_i32_212 dim 0 : vector<64x24xf32>, i32 -> vector<64x24xf32>
    %421 = arith.truncf %420 : vector<64x24xf32> to vector<64x24xbf16>
    %c2_213 = arith.constant 2 : index
    %c0_214 = arith.constant 0 : index
    %c0_215 = arith.constant 0 : index
    %422 = vector.load %arg16[%c2_213, %c0_214, %c0_215] : memref<3x24x8xbf16, #tpu.memory_space<vmem>>, vector<1x24x8xbf16>
    %423 = vector.shape_cast %422 : vector<1x24x8xbf16> to vector<24x8xbf16>
    %cst_216 = arith.constant dense<0.000000e+00> : vector<64x8xf32>
    %424 = tpu.matmul %421, %423, %cst_216 {dimension_numbers = #tpu.dot_dimension_numbers<[1], [0], [0], [1], [0, 0, 1, 1], [], []>} : vector<64x24xbf16>, vector<24x8xbf16>, vector<64x8xf32> -> vector<64x8xf32>
    %425 = arith.addf %419, %424 : vector<64x8xf32>
    %426 = vector.broadcast %409 : vector<1x8xf32> to vector<64x8xf32>
    %427 = arith.addf %425, %426 : vector<64x8xf32>
    %cst_217 = arith.constant 0.00999999977 : f32
    %428 = vector.broadcast %cst_217 : f32 to vector<64x8xf32>
    %429 = arith.mulf %428, %427 : vector<64x8xf32>
    %430 = arith.maximumf %427, %429 : vector<64x8xf32>
    %c1_i32_218 = arith.constant 1 : i32
    %431 = vector.broadcast %c1_i32_218 : i32 to vector<64x1xi32>
    %432 = arith.cmpi slt, %2, %431 : vector<64x1xi32>
    %433 = arith.extui %432 : vector<64x1xi1> to vector<64x1xi32>
    %434 = arith.sitofp %433 : vector<64x1xi32> to vector<64x1xf32>
    %435 = vector.broadcast %434 : vector<64x1xf32> to vector<64x8xf32>
    %436 = arith.mulf %430, %435 : vector<64x8xf32>
    %437 = vector.shape_cast %436 : vector<64x8xf32> to vector<4x16x8xf32>
    %438 = vector.extract_strided_slice %437 {offsets = [0, 0, 0], sizes = [4, 1, 8], strides = [1, 1, 1]} : vector<4x16x8xf32> to vector<4x1x8xf32>
    %439 = vector.shape_cast %438 : vector<4x1x8xf32> to vector<4x8xf32>
    %c0_219 = arith.constant 0 : index
    %c0_220 = arith.constant 0 : index
    %c0_221 = arith.constant 0 : index
    %440 = vector.load %arg22[%c0_219, %c0_220, %c0_221] : memref<1x4x8xf32, #tpu.memory_space<vmem>>, vector<1x4x8xf32>
    %441 = vector.shape_cast %440 : vector<1x4x8xf32> to vector<4x8xf32>
    %442 = vector.shape_cast %439 : vector<4x8xf32> to vector<1x4x8xf32>
    tpu.vector_store %arg22[%c0_219, %c0_220, %c0_221], %442 {strides = array<i32>} : memref<1x4x8xf32, #tpu.memory_space<vmem>>, vector<1x4x8xf32>,
    return
  }
  func.func @transform_0(%arg0: i32) -> (i32, i32, i32) {
    %c0_i32 = arith.constant 0 : i32
    %c0_i32_0 = arith.constant 0 : i32
    %c0_i32_1 = arith.constant 0 : i32
    return %arg0, %c0_i32, %c0_i32_0 : i32, i32, i32
  }
  func.func @transform_1(%arg0: i32) -> (i32, i32, i32) {
    %c0_i32 = arith.constant 0 : i32
    %c0_i32_0 = arith.constant 0 : i32
    %c0_i32_1 = arith.constant 0 : i32
    %c0_i32_2 = arith.constant 0 : i32
    return %c0_i32, %c0_i32_0, %c0_i32_1 : i32, i32, i32
  }
  func.func @transform_2(%arg0: i32) -> (i32, i32) {
    %c0_i32 = arith.constant 0 : i32
    %c0_i32_0 = arith.constant 0 : i32
    %c0_i32_1 = arith.constant 0 : i32
    return %c0_i32, %c0_i32_0 : i32, i32
  }
  func.func @transform_3(%arg0: i32) -> (i32, i32, i32) {
    %c0_i32 = arith.constant 0 : i32
    %c0_i32_0 = arith.constant 0 : i32
    %c0_i32_1 = arith.constant 0 : i32
    %c0_i32_2 = arith.constant 0 : i32
    return %c0_i32, %c0_i32_0, %c0_i32_1 : i32, i32, i32
  }
  func.func @transform_4(%arg0: i32) -> (i32, i32) {
    %c0_i32 = arith.constant 0 : i32
    %c0_i32_0 = arith.constant 0 : i32
    %c0_i32_1 = arith.constant 0 : i32
    return %c0_i32, %c0_i32_0 : i32, i32
  }
  func.func @transform_5(%arg0: i32) -> (i32, i32, i32) {
    %c0_i32 = arith.constant 0 : i32
    %c0_i32_0 = arith.constant 0 : i32
    %c0_i32_1 = arith.constant 0 : i32
    %c0_i32_2 = arith.constant 0 : i32
    return %c0_i32, %c0_i32_0, %c0_i32_1 : i32, i32, i32
  }
  func.func @transform_6(%arg0: i32) -> (i32, i32) {
    %c0_i32 = arith.constant 0 : i32
    %c0_i32_0 = arith.constant 0 : i32
    %c0_i32_1 = arith.constant 0 : i32
    return %c0_i32, %c0_i32_0 : i32, i32
  }
  func.func @transform_7(%arg0: i32) -> (i32, i32, i32) {
    %c0_i32 = arith.constant 0 : i32
    %c0_i32_0 = arith.constant 0 : i32
    %c0_i32_1 = arith.constant 0 : i32
    %c0_i32_2 = arith.constant 0 : i32
    return %c0_i32, %c0_i32_0, %c0_i32_1 : i32, i32, i32
  }
  func.func @transform_8(%arg0: i32) -> (i32, i32) {
    %c0_i32 = arith.constant 0 : i32
    %c0_i32_0 = arith.constant 0 : i32
    %c0_i32_1 = arith.constant 0 : i32
    return %c0_i32, %c0_i32_0 : i32, i32
  }
  func.func @transform_9(%arg0: i32) -> (i32, i32, i32) {
    %c0_i32 = arith.constant 0 : i32
    %c0_i32_0 = arith.constant 0 : i32
    %c0_i32_1 = arith.constant 0 : i32
    %c0_i32_2 = arith.constant 0 : i32
    return %c0_i32, %c0_i32_0, %c0_i32_1 : i32, i32, i32
  }
  func.func @transform_10(%arg0: i32) -> (i32, i32) {
    %c0_i32 = arith.constant 0 : i32
    %c0_i32_0 = arith.constant 0 : i32
    %c0_i32_1 = arith.constant 0 : i32
    return %c0_i32, %c0_i32_0 : i32, i32
  }
  func.func @transform_11(%arg0: i32) -> (i32, i32, i32) {
    %c0_i32 = arith.constant 0 : i32
    %c0_i32_0 = arith.constant 0 : i32
    %c0_i32_1 = arith.constant 0 : i32
    %c0_i32_2 = arith.constant 0 : i32
    return %c0_i32, %c0_i32_0, %c0_i32_1 : i32, i32, i32
  }
  func.func @transform_12(%arg0: i32) -> (i32, i32) {
    %c0_i32 = arith.constant 0 : i32
    %c0_i32_0 = arith.constant 0 : i32
    %c0_i32_1 = arith.constant 0 : i32
    return %c0_i32, %c0_i32_0 : i32, i32
  }
  func.func @transform_13(%arg0: i32) -> (i32, i32, i32) {
    %c0_i32 = arith.constant 0 : i32
    %c0_i32_0 = arith.constant 0 : i32
    %c0_i32_1 = arith.constant 0 : i32
    %c0_i32_2 = arith.constant 0 : i32
    return %c0_i32, %c0_i32_0, %c0_i32_1 : i32, i32, i32
  }
  func.func @transform_14(%arg0: i32) -> (i32, i32) {
    %c0_i32 = arith.constant 0 : i32
    %c0_i32_0 = arith.constant 0 : i32
    %c0_i32_1 = arith.constant 0 : i32
    return %c0_i32, %c0_i32_0 : i32, i32
  }
  func.func @transform_15(%arg0: i32) -> (i32, i32, i32) {
    %c0_i32 = arith.constant 0 : i32
    %c0_i32_0 = arith.constant 0 : i32
    %c0_i32_1 = arith.constant 0 : i32
    %c0_i32_2 = arith.constant 0 : i32
    return %c0_i32, %c0_i32_0, %c0_i32_1 : i32, i32, i32
  }
  func.func @transform_16(%arg0: i32) -> (i32, i32) {
    %c0_i32 = arith.constant 0 : i32
    %c0_i32_0 = arith.constant 0 : i32
    %c0_i32_1 = arith.constant 0 : i32
    return %c0_i32, %c0_i32_0 : i32, i32
  }
  func.func @transform_17(%arg0: i32) -> (i32, i32) {
    %c0_i32 = arith.constant 0 : i32
    %c0_i32_0 = arith.constant 0 : i32
    %c0_i32_1 = arith.constant 0 : i32
    return %c0_i32, %c0_i32_0 : i32, i32
  }
  func.func @transform_18(%arg0: i32) -> (i32, i32) {
    %c0_i32 = arith.constant 0 : i32
    %c0_i32_0 = arith.constant 0 : i32
    %c0_i32_1 = arith.constant 0 : i32
    return %c0_i32, %c0_i32_0 : i32, i32
  }
  func.func @transform_19(%arg0: i32) -> (i32, i32) {
    %c0_i32 = arith.constant 0 : i32
    %c0_i32_0 = arith.constant 0 : i32
    %c0_i32_1 = arith.constant 0 : i32
    return %c0_i32, %c0_i32_0 : i32, i32
  }
  func.func @transform_20(%arg0: i32) -> (i32, i32) {
    %c0_i32 = arith.constant 0 : i32
    %c0_i32_0 = arith.constant 0 : i32
    %c0_i32_1 = arith.constant 0 : i32
    return %c0_i32, %c0_i32_0 : i32, i32
  }
  func.func @transform_21(%arg0: i32) -> (i32, i32, i32) {
    %c0_i32 = arith.constant 0 : i32
    %c0_i32_0 = arith.constant 0 : i32
    %c0_i32_1 = arith.constant 0 : i32
    return %arg0, %c0_i32, %c0_i32_0 : i32, i32, i32
  }
}

</mosaic_0001>

<bundles_post_ra>
// kernel: tpu_custom_call.1
= control target key start
LH: loop header
LB: loop body
LE: loop exit
PB: predicated region body
PF: predicated region fallthrough
CT: control target
= control target key end

     0   :  { %s12755_s0 = inlined_call_operand.vmem [shape: f32[1,64,60], index: 0, kind: input, shape index: {}]   ;;  %s12756_s1 = inlined_call_operand.hbm [shape: bf16[3,60,60], index: 1, kind: input, shape index: {}]   ;;  %s12757_s2 = inlined_call_operand.hbm [shape: f32[1,60], index: 2, kind: input, shape index: {}]   ;;  %s12758_s3 = inlined_call_operand.hbm [shape: bf16[3,60,60], index: 3, kind: input, shape index: {}]   ;;  %s12759_s4 = inlined_call_operand.hbm [shape: f32[1,60], index: 4, kind: input, shape index: {}]   ;;  %s12760_s5 = inlined_call_operand.hbm [shape: bf16[3,60,60], index: 5, kind: input, shape index: {}]   ;;  %s12761_s6 = inlined_call_operand.hbm [shape: f32[1,60], index: 6, kind: input, shape index: {}]   ;;  %s12762_s7 = inlined_call_operand.hbm [shape: bf16[3,60,60], index: 7, kind: input, shape index: {}]   ;;  %s12763_s8 = inlined_call_operand.hbm [shape: f32[1,60], index: 8, kind: input, shape index: {}]   ;;  %s12764_s9 = inlined_call_operand.vmem [shape: bf16[5,60,88], index: 9, kind: input, shape index: {}]   ;;  %s12765_s10 = inlined_call_operand.hbm [shape: f32[1,88], index: 10, kind: input, shape index: {}]   ;;  %s12766_s11 = inlined_call_operand.vmem [shape: bf16[5,88,112], index: 11, kind: input, shape index: {}]   ;;  %s12767_s12 = inlined_call_operand.hbm [shape: f32[1,112], index: 12, kind: input, shape index: {}]   ;;  %s12768_s13 = inlined_call_operand.vmem [shape: bf16[5,112,24], index: 13, kind: input, shape index: {}]   ;;  %s12769_s14 = inlined_call_operand.hbm [shape: f32[1,24], index: 14, kind: input, shape index: {}]   ;;  %s12770_s15 = inlined_call_operand.vmem [shape: bf16[3,24,8], index: 15, kind: input, shape index: {}]   ;;  %s12771_s16 = inlined_call_operand.hbm [shape: f32[1,8], index: 16, kind: input, shape index: {}]   ;;  %s12772_s17 = inlined_call_operand.hbm [shape: f32[60,60], index: 17, kind: input, shape index: {}]   ;;  %s12773_s18 = inlined_call_operand.vmem [shape: f32[88,88], index: 18, kind: input, shape index: {}]   ;;  %s12774_s19 = inlined_call_operand.vmem [shape: f32[112,112], index: 19, kind: input, shape index: {}]   ;;  %s12775_s20 = inlined_call_operand.hbm [shape: f32[24,24], index: 20, kind: input, shape index: {}]   ;;  %s12776_s21 = inlined_call_operand.hbm [shape: f32[1,4,8], index: 21, kind: output, shape index: {}]  }
   0x1   :  { %12785 = sst [smem:[#allocation35_spill]] %s12755_s0 }
   0x2   :  { %12786 = sst [smem:[#allocation36_spill]] %s12756_s1 }
   0x3   :  { %12787 = sst [smem:[#allocation37_spill]] %s12757_s2 }
   0x4   :  { %12788 = sst [smem:[#allocation38_spill]] %s12758_s3 }
   0x5   :  { %12789 = sst [smem:[#allocation39_spill]] %s12759_s4 }
   0x6   :  { %12790 = sst [smem:[#allocation40_spill]] %s12760_s5 }
   0x7   :  { %26 = vsyncpa [#allocation3], 0 }
   0x8   :  { %27 = vsyncpa [#allocation6], 0 }
   0x9   :  { %28 = vsyncpa [#allocation9], 0 }
   0xa   :  { %29 = vsyncpa [#allocation12], 0 }
   0xb   :  { %30 = vsyncpa [#allocation15], 0 }
   0xc   :  { %31 = vsyncpa [#allocation18], 0 }
   0xd   :  { %32 = vsyncpa [#allocation21], 0 }
   0xe   :  { %33 = vsyncpa [#allocation24], 0 }
   0xf   :  { %34 = vsyncpa [#allocation4], 0  ;;  %s9853_s2 = smov [#allocation5]   ;;  %s9854_s26 = smov [#allocation8]  }
  0x10   :  { %s55_s25 = sshll.u32 %s9853_s2, 4  ;;  %s77_s27 = sshll.u32 %s9854_s26, 4  ;;  %s56_s25 = int_to_ptr.vmem [resolvable:$true] %s55_s25  ;;  %s78_s27 = int_to_ptr.vmem [resolvable:$true] %s77_s27 }
  0x11   :  { %s12791_s29 = sld [smem:[#allocation37_spill]] }
  0x17   :  { %s9505_s0 = scalar_lea.hbm %s12791_s29, 16 }
  0x18   :  { %p9506_p0 = scmp.ne.s32.totalorder %s12791_s29, %s9505_s0  ;;  %p9509_p1 = scmp.lt.u32.totalorder %s9505_s0, %s12791_s29 }
  0x1a   :  { %p9511_p2 = pnand %p9509_p1, %p9506_p0 }
  0x1c   :  { %9514 = shalt.err (!%p9511_p2)
}
  0x1d   :  { %s9515_s23 = scalar_lea.vmem %s56_s25, 16  ;;  %s9519_s1 = scalar_lea.vmem %s56_s25, 32 }
  0x1e   :  { %p9516_p3 = scmp.ne.s32.totalorder %s56_s25, %s9515_s23  ;;  %p9520_p4 = scmp.lt.s32.totalorder %s56_s25, %s56_s25 }
  0x1f   :  { %p9521_p5 = scmp.lt.s32.totalorder %s9519_s1, %s9515_s23 }
  0x21   :  { %p9522_p6 = por %p9521_p5, %p9520_p4 }
  0x23   :  { %p9523_p7 = pnand %p9522_p6, %p9516_p3 }
  0x25   :  { %9526 = shalt.err (!%p9523_p7)
}
  0x26   :  { %58 = dma.hbm_to_vmem [thread:$0]  %s12791_s29, 16, %s56_s25, [#allocation6]  }
  0x27   :  { %s12792_s28 = sld [smem:[#allocation39_spill]] }
  0x2d   :  { %s9527_s4 = scalar_lea.hbm %s12792_s28, 16 }
  0x2e   :  { %p9528_p8 = scmp.ne.s32.totalorder %s12792_s28, %s9527_s4  ;;  %p9531_p9 = scmp.lt.u32.totalorder %s9527_s4, %s12792_s28 }
  0x30   :  { %p9533_p10 = pnand %p9531_p9, %p9528_p8 }
  0x32   :  { %9536 = shalt.err (!%p9533_p10)
}
  0x33   :  { %s9537_s23 = scalar_lea.vmem %s78_s27, 16  ;;  %s9541_s1 = scalar_lea.vmem %s78_s27, 32 }
  0x34   :  { %p9538_p11 = scmp.ne.s32.totalorder %s78_s27, %s9537_s23  ;;  %p9542_p12 = scmp.lt.s32.totalorder %s78_s27, %s78_s27 }
  0x35   :  { %p9543_p13 = scmp.lt.s32.totalorder %s9541_s1, %s9537_s23 }
  0x37   :  { %p9544_p0 = por %p9543_p13, %p9542_p12 }
  0x39   :  { %p9545_p1 = pnand %p9544_p0, %p9538_p11 }
  0x3b   :  { %9548 = shalt.err (!%p9545_p1)
}
  0x3c   :  { %80 = dma.hbm_to_vmem [thread:$0]  %s12792_s28, 16, %s78_s27, [#allocation9]  }
  0x3d   :  { %s9855_s24 = smov [#allocation11]   ;;  %s9856_s26 = smov [#allocation14]  }
  0x3e   :  { %s99_s2 = sshll.u32 %s9855_s24, 4  ;;  %s121_s3 = sshll.u32 %s9856_s26, 4  ;;  %s100_s2 = int_to_ptr.vmem [resolvable:$true] %s99_s2  ;;  %s122_s3 = int_to_ptr.vmem [resolvable:$true] %s121_s3 }
  0x3f   :  { %s9549_s0 = scalar_lea.hbm %s12761_s6, 16 }
  0x40   :  { %p9550_p2 = scmp.ne.s32.totalorder %s12761_s6, %s9549_s0  ;;  %p9553_p3 = scmp.lt.u32.totalorder %s9549_s0, %s12761_s6 }
  0x42   :  { %p9555_p4 = pnand %p9553_p3, %p9550_p2 }
  0x44   :  { %9558 = shalt.err (!%p9555_p4)
}
  0x45   :  { %s9559_s27 = scalar_lea.vmem %s100_s2, 16  ;;  %s9563_s28 = scalar_lea.vmem %s100_s2, 32 }
  0x46   :  { %p9560_p5 = scmp.ne.s32.totalorder %s100_s2, %s9559_s27  ;;  %p9564_p6 = scmp.lt.s32.totalorder %s100_s2, %s100_s2 }
  0x47   :  { %p9565_p7 = scmp.lt.s32.totalorder %s9563_s28, %s9559_s27 }
  0x49   :  { %p9566_p8 = por %p9565_p7, %p9564_p6 }
  0x4b   :  { %p9567_p9 = pnand %p9566_p8, %p9560_p5 }
  0x4d   :  { %9570 = shalt.err (!%p9567_p9)
}
  0x4e   :  { %102 = dma.hbm_to_vmem [thread:$0]  %s12761_s6, 16, %s100_s2, [#allocation12]  }
  0x4f   :  { %s9571_s4 = scalar_lea.hbm %s12763_s8, 16 }
  0x50   :  { %p9572_p10 = scmp.ne.s32.totalorder %s12763_s8, %s9571_s4  ;;  %p9575_p11 = scmp.lt.u32.totalorder %s9571_s4, %s12763_s8 }
  0x52   :  { %p9577_p12 = pnand %p9575_p11, %p9572_p10 }
  0x54   :  { %9580 = shalt.err (!%p9577_p12)
}
  0x55   :  { %s9581_s23 = scalar_lea.vmem %s122_s3, 16  ;;  %s9585_s1 = scalar_lea.vmem %s122_s3, 32 }
  0x56   :  { %p9582_p13 = scmp.ne.s32.totalorder %s122_s3, %s9581_s23  ;;  %p9586_p0 = scmp.lt.s32.totalorder %s122_s3, %s122_s3 }
  0x57   :  { %p9587_p1 = scmp.lt.s32.totalorder %s9585_s1, %s9581_s23 }
  0x59   :  { %p9588_p2 = por %p9587_p1, %p9586_p0 }
  0x5b   :  { %p9589_p3 = pnand %p9588_p2, %p9582_p13 }
  0x5d   :  { %9592 = shalt.err (!%p9589_p3)
}
  0x5e   :  { %124 = dma.hbm_to_vmem [thread:$0]  %s12763_s8, 16, %s122_s3, [#allocation15]  }
  0x5f   :  { %s9857_s27 = smov [#allocation17]   ;;  %s9858_s25 = smov [#allocation20]  }
  0x60   :  { %s145_s28 = sshll.u32 %s9857_s27, 4  ;;  %s169_s29 = sshll.u32 %s9858_s25, 4  ;;  %s146_s28 = int_to_ptr.vmem [resolvable:$true] %s145_s28  ;;  %s170_s29 = int_to_ptr.vmem [resolvable:$true] %s169_s29 }
  0x61   :  { %s9593_s4 = scalar_lea.hbm %s12767_s12, 16 }
  0x62   :  { %p9594_p4 = scmp.ne.s32.totalorder %s12767_s12, %s9593_s4  ;;  %p9597_p5 = scmp.lt.u32.totalorder %s9593_s4, %s12767_s12 }
  0x64   :  { %p9599_p6 = pnand %p9597_p5, %p9594_p4 }
  0x66   :  { %9602 = shalt.err (!%p9599_p6)
}
  0x67   :  { %s9603_s8 = scalar_lea.vmem %s146_s28, 16  ;;  %s9607_s3 = scalar_lea.vmem %s146_s28, 32 }
  0x68   :  { %p9604_p7 = scmp.ne.s32.totalorder %s146_s28, %s9603_s8  ;;  %p9608_p8 = scmp.lt.s32.totalorder %s146_s28, %s146_s28 }
  0x69   :  { %p9609_p9 = scmp.lt.s32.totalorder %s9607_s3, %s9603_s8 }
  0x6b   :  { %p9610_p10 = por %p9609_p9, %p9608_p8 }
  0x6d   :  { %p9611_p11 = pnand %p9610_p10, %p9604_p7 }
  0x6f   :  { %9614 = shalt.err (!%p9611_p11)
}
  0x70   :  { %148 = dma.hbm_to_vmem [thread:$0]  %s12767_s12, 16, %s146_s28, [#allocation18]  }
  0x71   :  { %s9615_s27 = scalar_lea.hbm %s12771_s16, 16 }
  0x72   :  { %p9616_p12 = scmp.ne.s32.totalorder %s12771_s16, %s9615_s27  ;;  %p9619_p13 = scmp.lt.u32.totalorder %s9615_s27, %s12771_s16 }
  0x74   :  { %p9621_p0 = pnand %p9619_p13, %p9616_p12 }
  0x76   :  { %9624 = shalt.err (!%p9621_p0)
}
  0x77   :  { %s9625_s30 = scalar_lea.vmem %s170_s29, 16  ;;  %s9629_s0 = scalar_lea.vmem %s170_s29, 32 }
  0x78   :  { %p9626_p1 = scmp.ne.s32.totalorder %s170_s29, %s9625_s30  ;;  %p9630_p2 = scmp.lt.s32.totalorder %s170_s29, %s170_s29 }
  0x79   :  { %p9631_p3 = scmp.lt.s32.totalorder %s9629_s0, %s9625_s30 }
  0x7b   :  { %p9632_p4 = por %p9631_p3, %p9630_p2 }
  0x7d   :  { %p9633_p5 = pnand %p9632_p4, %p9626_p1 }
  0x7f   :  { %9636 = shalt.err (!%p9633_p5)
}
  0x80   :  { %172 = dma.hbm_to_vmem [thread:$0]  %s12771_s16, 16, %s170_s29, [#allocation21]  }
  0x81   :  { %s9859_s5 = smov [#allocation2]   ;;  %s12793_s23 = sld [smem:[#allocation36_spill]] }
  0x82   :  { %s42_s22 = sshll.u32 %s9859_s5, 4  ;;  %s43_s22 = int_to_ptr.vmem [resolvable:$true] %s42_s22 }
  0x87   :  { %s9637_s1 = scalar_lea.hbm %s12793_s23, 1536 }
  0x88   :  { %p9638_p6 = scmp.ne.s32.totalorder %s12793_s23, %s9637_s1  ;;  %p9641_p7 = scmp.lt.u32.totalorder %s9637_s1, %s12793_s23 }
  0x8a   :  { %p9643_p8 = pnand %p9641_p7, %p9638_p6 }
  0x8c   :  { %9646 = shalt.err (!%p9643_p8)
}
  0x8d   :  { %s9647_s24 = scalar_lea.vmem %s43_s22, 1536  ;;  %p9652_p10 = scmp.lt.s32.totalorder %s43_s22, %s43_s22 }
  0x8e   :  { %p9648_p9 = scmp.ne.s32.totalorder %s43_s22, %s9647_s24  ;;  %p9653_p11 = scmp.lt.s32.totalorder %s9647_s24, %s9647_s24 }
  0x90   :  { %p9654_p12 = por %p9653_p11, %p9652_p10 }
  0x92   :  { %p9655_p13 = pnand %p9654_p12, %p9648_p9 }
  0x94   :  { %9658 = shalt.err (!%p9655_p13)
}
  0x95   :  { %s9860_s16 = smov 64   ;;  %s9861_s29 = smov 4  }
  0x96   :  { %48 = dma.hbm_to_vmem [thread:$0]  %s12793_s23, 1536, %s43_s22, [#allocation3], %s9860_s16, %s9860_s16, %s9861_s29  }
  0x97   :  { %s9862_s30 = smov [#allocation7]   ;;  %s9863_s12 = smov [#allocation10]  }
  0x98   :  { %s64_s0 = sshll.u32 %s9862_s30, 4  ;;  %s86_s28 = sshll.u32 %s9863_s12, 4  ;;  %s65_s0 = int_to_ptr.vmem [resolvable:$true] %s64_s0  ;;  %s87_s28 = int_to_ptr.vmem [resolvable:$true] %s86_s28 }
  0x99   :  { %s12794_s3 = sld [smem:[#allocation38_spill]] }
  0x9f   :  { %s9659_s1 = scalar_lea.hbm %s12794_s3, 1536 }
  0xa0   :  { %p9660_p0 = scmp.ne.s32.totalorder %s12794_s3, %s9659_s1  ;;  %p9663_p1 = scmp.lt.u32.totalorder %s9659_s1, %s12794_s3 }
  0xa2   :  { %p9665_p2 = pnand %p9663_p1, %p9660_p0 }
  0xa4   :  { %9668 = shalt.err (!%p9665_p2)
}
  0xa5   :  { %s9669_s22 = scalar_lea.vmem %s65_s0, 1536  ;;  %p9674_p4 = scmp.lt.s32.totalorder %s65_s0, %s65_s0 }
  0xa6   :  { %p9670_p3 = scmp.ne.s32.totalorder %s65_s0, %s9669_s22  ;;  %p9675_p5 = scmp.lt.s32.totalorder %s9669_s22, %s9669_s22 }
  0xa8   :  { %p9676_p6 = por %p9675_p5, %p9674_p4 }
  0xaa   :  { %p9677_p7 = pnand %p9676_p6, %p9670_p3 }
  0xac   :  { %9680 = shalt.err (!%p9677_p7)
}
  0xad   :  { %70 = dma.hbm_to_vmem [thread:$0]  %s12794_s3, 1536, %s65_s0, [#allocation6], %s9860_s16, %s9860_s16, %s9861_s29  }
  0xae   :  { %s12795_s30 = sld [smem:[#allocation40_spill]] }
  0xb4   :  { %s9681_s12 = scalar_lea.hbm %s12795_s30, 1536 }
  0xb5   :  { %p9682_p8 = scmp.ne.s32.totalorder %s12795_s30, %s9681_s12  ;;  %p9685_p9 = scmp.lt.u32.totalorder %s9681_s12, %s12795_s30 }
  0xb7   :  { %p9687_p10 = pnand %p9685_p9, %p9682_p8 }
  0xb9   :  { %9690 = shalt.err (!%p9687_p10)
}
  0xba   :  { %s9691_s2 = scalar_lea.vmem %s87_s28, 1536  ;;  %p9696_p12 = scmp.lt.s32.totalorder %s87_s28, %s87_s28 }
  0xbb   :  { %p9692_p11 = scmp.ne.s32.totalorder %s87_s28, %s9691_s2  ;;  %p9697_p13 = scmp.lt.s32.totalorder %s9691_s2, %s9691_s2 }
  0xbd   :  { %p9698_p0 = por %p9697_p13, %p9696_p12 }
  0xbf   :  { %p9699_p1 = pnand %p9698_p0, %p9692_p11 }
  0xc1   :  { %9702 = shalt.err (!%p9699_p1)
}
  0xc2   :  { %92 = dma.hbm_to_vmem [thread:$0]  %s12795_s30, 1536, %s87_s28, [#allocation9], %s9860_s16, %s9860_s16, %s9861_s29  }
  0xc3   :  { %s9864_s27 = smov [#allocation13]   ;;  %s9865_s22 = smov [#allocation16]  }
  0xc4   :  { %s108_s25 = sshll.u32 %s9864_s27, 4  ;;  %s133_s23 = sshll.u32 %s9865_s22, 4  ;;  %s109_s25 = int_to_ptr.vmem [resolvable:$true] %s108_s25  ;;  %s134_s23 = int_to_ptr.vmem [resolvable:$true] %s133_s23 }
  0xc5   :  { %s9703_s4 = scalar_lea.hbm %s12762_s7, 1536 }
  0xc6   :  { %p9704_p2 = scmp.ne.s32.totalorder %s12762_s7, %s9703_s4  ;;  %p9707_p3 = scmp.lt.u32.totalorder %s9703_s4, %s12762_s7 }
  0xc8   :  { %p9709_p4 = pnand %p9707_p3, %p9704_p2 }
  0xca   :  { %9712 = shalt.err (!%p9709_p4)
}
  0xcb   :  { %s9713_s28 = scalar_lea.vmem %s109_s25, 1536  ;;  %p9718_p6 = scmp.lt.s32.totalorder %s109_s25, %s109_s25 }
  0xcc   :  { %p9714_p5 = scmp.ne.s32.totalorder %s109_s25, %s9713_s28  ;;  %p9719_p7 = scmp.lt.s32.totalorder %s9713_s28, %s9713_s28 }
  0xce   :  { %p9720_p8 = por %p9719_p7, %p9718_p6 }
  0xd0   :  { %p9721_p9 = pnand %p9720_p8, %p9714_p5 }
  0xd2   :  { %9724 = shalt.err (!%p9721_p9)
}
  0xd3   :  { %114 = dma.hbm_to_vmem [thread:$0]  %s12762_s7, 1536, %s109_s25, [#allocation12], %s9860_s16, %s9860_s16, %s9861_s29  }
  0xd4   :  { %s9725_s3 = scalar_lea.hbm %s12765_s10, 16 }
  0xd5   :  { %p9726_p10 = scmp.ne.s32.totalorder %s12765_s10, %s9725_s3  ;;  %p9729_p11 = scmp.lt.u32.totalorder %s9725_s3, %s12765_s10 }
  0xd7   :  { %p9731_p12 = pnand %p9729_p11, %p9726_p10 }
  0xd9   :  { %9734 = shalt.err (!%p9731_p12)
}
  0xda   :  { %s9735_s4 = scalar_lea.vmem %s134_s23, 16  ;;  %s9739_s12 = scalar_lea.vmem %s134_s23, 32 }
  0xdb   :  { %p9736_p13 = scmp.ne.s32.totalorder %s134_s23, %s9735_s4  ;;  %p9740_p0 = scmp.lt.s32.totalorder %s134_s23, %s134_s23 }
  0xdc   :  { %p9741_p1 = scmp.lt.s32.totalorder %s9739_s12, %s9735_s4 }
  0xde   :  { %p9742_p2 = por %p9741_p1, %p9740_p0 }
  0xe0   :  { %p9743_p3 = pnand %p9742_p2, %p9736_p13 }
  0xe2   :  { %9746 = shalt.err (!%p9743_p3)
}
  0xe3   :  { %136 = dma.hbm_to_vmem [thread:$0]  %s12765_s10, 16, %s134_s23, [#allocation15]  }
  0xe4   :  { %s9866_s29 = smov [#allocation19]   ;;  %s9867_s5 = smov [#allocation22]  }
  0xe5   :  { %s157_s25 = sshll.u32 %s9866_s29, 4  ;;  %s178_s8 = sshll.u32 %s9867_s5, 4  ;;  %s158_s25 = int_to_ptr.vmem [resolvable:$true] %s157_s25  ;;  %s179_s8 = int_to_ptr.vmem [resolvable:$true] %s178_s8 }
  0xe6   :  { %s9747_s30 = scalar_lea.hbm %s12769_s14, 16 }
  0xe7   :  { %p9748_p4 = scmp.ne.s32.totalorder %s12769_s14, %s9747_s30  ;;  %p9751_p5 = scmp.lt.u32.totalorder %s9747_s30, %s12769_s14 }
  0xe9   :  { %p9753_p6 = pnand %p9751_p5, %p9748_p4 }
  0xeb   :  { %9756 = shalt.err (!%p9753_p6)
}
  0xec   :  { %s9757_s10 = scalar_lea.vmem %s158_s25, 16  ;;  %s9761_s23 = scalar_lea.vmem %s158_s25, 32 }
  0xed   :  { %p9758_p7 = scmp.ne.s32.totalorder %s158_s25, %s9757_s10  ;;  %p9762_p8 = scmp.lt.s32.totalorder %s158_s25, %s158_s25 }
  0xee   :  { %p9763_p9 = scmp.lt.s32.totalorder %s9761_s23, %s9757_s10 }
  0xf0   :  { %p9764_p10 = por %p9763_p9, %p9762_p8 }
  0xf2   :  { %p9765_p11 = pnand %p9764_p10, %p9758_p7 }
  0xf4   :  { %9768 = shalt.err (!%p9765_p11)
}
  0xf5   :  { %160 = dma.hbm_to_vmem [thread:$0]  %s12769_s14, 16, %s158_s25, [#allocation18]  }
  0xf6   :  { %s9769_s4 = scalar_lea.hbm %s12772_s17, 1024 }
  0xf7   :  { %p9770_p12 = scmp.ne.s32.totalorder %s12772_s17, %s9769_s4  ;;  %p9773_p13 = scmp.lt.u32.totalorder %s9769_s4, %s12772_s17 }
  0xf9   :  { %p9775_p0 = pnand %p9773_p13, %p9770_p12 }
  0xfb   :  { %9778 = shalt.err (!%p9775_p0)
}
  0xfc   :  { %s9779_s5 = scalar_lea.vmem %s179_s8, 1024  ;;  %p9784_p2 = scmp.lt.s32.totalorder %s179_s8, %s179_s8 }
  0xfd   :  { %p9780_p1 = scmp.ne.s32.totalorder %s179_s8, %s9779_s5  ;;  %p9785_p3 = scmp.lt.s32.totalorder %s9779_s5, %s9779_s5 }
  0xff   :  { %p9786_p4 = por %p9785_p3, %p9784_p2 }
 0x101   :  { %p9787_p5 = pnand %p9786_p4, %p9780_p1 }
 0x103   :  { %9790 = shalt.err (!%p9787_p5)
}
 0x104   :  { %s9868_s14 = smov 128   ;;  %s9869_s25 = smov 8  }
 0x105   :  { %184 = dma.hbm_to_vmem [thread:$0]  %s12772_s17, 1024, %s179_s8, [#allocation21], %s9868_s14, %s9868_s14, %s9869_s25  }
 0x106   :  { %s9870_s30 = smov [#allocation23]   ;;  %s9791_s3 = scalar_lea.hbm %s12775_s20, 384 }
 0x107   :  { %s194_s6 = sshll.u32 %s9870_s30, 4  ;;  %p9792_p6 = scmp.ne.s32.totalorder %s12775_s20, %s9791_s3  ;;  %s195_s6 = int_to_ptr.vmem [resolvable:$true] %s194_s6 }
 0x108   :  { %p9795_p7 = scmp.lt.u32.totalorder %s9791_s3, %s12775_s20 }
 0x10a   :  { %p9797_p8 = pnand %p9795_p7, %p9792_p6 }
 0x10c   :  { %9800 = shalt.err (!%p9797_p8)
}
 0x10d   :  { %s9801_s24 = scalar_lea.vmem %s195_s6, 384  ;;  %p9806_p10 = scmp.lt.s32.totalorder %s195_s6, %s195_s6 }
 0x10e   :  { %p9802_p9 = scmp.ne.s32.totalorder %s195_s6, %s9801_s24  ;;  %p9807_p11 = scmp.lt.s32.totalorder %s9801_s24, %s9801_s24 }
 0x110   :  { %p9808_p12 = por %p9807_p11, %p9806_p10 }
 0x112   :  { %p9809_p13 = pnand %p9808_p12, %p9802_p9 }
 0x114   :  { %9812 = shalt.err (!%p9809_p13)
}
 0x115   :  { %200 = dma.hbm_to_vmem [thread:$0]  %s12775_s20, 384, %s195_s6, [#allocation24], %s9868_s14, %s9868_s14, %s9869_s25  }
 0x116   :  { %9835 = dma.done.wait [#allocation3], 1536  }
 0x117   :  { %9836 = vsyncadd [#allocation3], 4294965760 }
 0x118   :  { %9837 = dma.done.wait [#allocation6], 1552  }
 0x119   :  { %9838 = vsyncadd [#allocation6], 4294965744 }
 0x11a   :  { %9839 = dma.done.wait [#allocation9], 1552  }
 0x11b   :  { %9840 = vsyncadd [#allocation9], 4294965744 }
 0x11c   :  { %9841 = dma.done.wait [#allocation12], 1552  }
 0x11d   :  { %9842 = vsyncadd [#allocation12], 4294965744 }
 0x11e   :  { %9843 = dma.done.wait [#allocation15], 32  }
 0x11f   :  { %9844 = vsyncadd [#allocation15], 4294967264 }
 0x120   :  { %9845 = dma.done.wait [#allocation18], 32  }
 0x121   :  { %9846 = vsyncadd [#allocation18], 4294967264 }
 0x122   :  { %9847 = dma.done.wait [#allocation21], 1040  }
 0x123   :  { %9848 = vsyncadd [#allocation21], 4294966256 }
 0x124   :  { %9849 = dma.done.wait [#allocation24], 384  }
 0x125   :  { %9850 = vsyncadd [#allocation24], 4294966912  ;;  %v9352_v0 = vld [vmem:[#allocation2 + $0x20] sm:$0xff]   ;;  %v9353_v1 = vld [vmem:[#allocation2 + $0x28] sm:$0xff]   ;;  %v244_v2 = vlaneseq  ;;  %s12796_s4 = sld [smem:[#allocation35_spill]]  ;;  %vm335_vm0 = vcmask 490496  }
 0x126   :  { %8161 = vmatprep.subr.bf16.mxu0 %v9352_v0  ;;  %v9354_v3 = vld [vmem:[#allocation2 + $0x30] sm:$0xff]   ;;  %v9355_v4 = vld [vmem:[#allocation2 + $0x38] sm:$0x3f]   ;;  %vm348_vm1 = vcmask 1045504   ;;  %v9356_v22 = vld [vmem:[#allocation2] sm:$0xff]   ;;  %vm785_vm4 = vcmask 1043456  }
 0x127   :  { %8162 = vmatpush3.bf16.msra.mxu0 %v9352_v0  ;;  %v10179_v8 = vshrl.u32 %v244_v2, 7  ;;  %v350_v9 = vsel %vm348_vm1, %v9355_v4, 0  ;;  %v9357_v30 = vld [vmem:[#allocation2 + $0x8] sm:$0xff]   ;;  %v9359_v31 = vld [vmem:[#allocation2 + $0x18] sm:$0x3f]   ;;  %v9358_v38 = vld [vmem:[#allocation2 + $0x10] sm:$0xff]  }
 0x128   :  { %8163 = vmatprep.subr.bf16.mxu0 %v9353_v1  ;;  %v9363_v37 = vld [vmem:[#allocation2 + $0x58] sm:$0x3f]   ;;  %v453_v39 = vsel %vm348_vm1, %v9359_v31, 0  ;;  %v9360_v45 = vld [vmem:[#allocation2 + $0x40] sm:$0xff]   ;;  %v9361_v51 = vld [vmem:[#allocation2 + $0x48] sm:$0xff]   ;;  %vm9872_vm5 = vmmov 0  }
 0x129   :  { %vm278_vm2 = vcmp.lt.s32.totalorder %v10179_v8, 1  ;;  %v586_v40 = vsel %vm348_vm1, %v9363_v37, 0  ;;  %vm528_vm3 = vcmp.lt.s32.totalorder %v10179_v8, 7  ;;  %v9362_v53 = vld [vmem:[#allocation2 + $0x50] sm:$0xff]   ;;  %vm9874_vm6 = vmmov 1  }
 0x12a   :  { %vm10335_vm7 = vmpackc.low %vm785_vm4, %vm9874_vm6  ;;  %vm777_vm12 = vcmask 1041409   ;;  %vm779_vm13 = vcmask 1042434   ;;  %vm781_vm14 = vcmask 1043459   ;;  %vm3714_vm6 = vcmp.lt.s32.totalorder %v10179_v8, 6 }
 0x12b   :  { %v10170_v5 = vld [vmem:[%s12796_s4] sm:$0xff]  ;;  %v10175_v6 = vld [vmem:[%s12796_s4 + $0x8] sm:$0xff]  ;;  %8164 = vmatpush3.bf16.msra.mxu0 %v9353_v1  ;;  %v10188_v12 = vld [vmem:[%s12796_s4 + $0x10] sm:$0xff] }
 0x12c   :  { %v299_v7 = vpack.c.bf16 %v10175_v6, %v10170_v5  ;;  %8165 = vmatprep.subr.bf16.mxu0 %v9354_v3  ;;  %v270_v10 = vrot.slane %v10170_v5, 7  ;;  %v271_v11 = vrot.slane %v10175_v6, 7  ;;  %v520_v13 = vrot.slane %v10170_v5, 1  ;;  %v10195_v15 = vld [vmem:[%s12796_s4 + $0x18] sm:$0xff]  ;;  %v10204_v19 = vld [vmem:[%s12796_s4 + $0x20] sm:$0xff]  ;;  %v10209_v20 = vld [vmem:[%s12796_s4 + $0x28] sm:$0xff] }
 0x12d   :  { %v521_v14 = vrot.slane %v10175_v6, 1  ;;  %v272_v16 = vrot.slane %v10188_v12, 7  ;;  %v273_v17 = vrot.slane %v10195_v15, 7  ;;  %v522_v18 = vrot.slane %v10188_v12, 1  ;;  %v10220_v27 = vld [vmem:[%s12796_s4 + $0x30] sm:$0xff]  ;;  %v10225_v28 = vld [vmem:[%s12796_s4 + $0x38] sm:$0xff] }
 0x12e   :  { %8169 = vmatprep.mubr.msk.bf16.mxu0 %vm335_vm0, %v299_v7  ;;  %v523_v21 = vrot.slane %v10195_v15, 1  ;;  %v274_v23 = vrot.slane %v10204_v19, 7  ;;  %v275_v24 = vrot.slane %v10209_v20, 7  ;;  %v524_v25 = vrot.slane %v10204_v19, 1  ;;  %v723_v6 = vld [vmem:[#allocation22] sm:$0xff]  ;;  %v724_v7 = vld [vmem:[#allocation22 + $0x8] sm:$0xff] }
 0x12f   :  { %8166 = vmatpush3.bf16.msra.mxu0 %v9354_v3  ;;  %v525_v26 = vrot.slane %v10209_v20, 1  ;;  %v300_v29 = vpack.c.bf16 %v10195_v15, %v10188_v12  ;;  %v301_v32 = vpack.c.bf16 %v10209_v20, %v10204_v19  ;;  %v276_v33 = vrot.slane %v10220_v27, 7  ;;  %v725_v5 = vld [vmem:[#allocation22 + $0x10] sm:$0xff] }
 0x130   :  { %9303 = vmatprep.subr.msk.bf16.mxu0 %vm348_vm1, %v9355_v4  ;;  %v277_v34 = vrot.slane %v10225_v28, 7  ;;  %v526_v35 = vrot.slane %v10220_v27, 1  ;;  %v527_v36 = vrot.slane %v10225_v28, 1  ;;  %v285_v41 = vsel %vm278_vm2, %v270_v10, %v271_v11  ;;  %v729_v15 = vld [vmem:[#allocation22 + $0x30] sm:$0xff] }
 0x131   :  { %v302_v43 = vpack.c.bf16 %v10225_v28, %v10220_v27  ;;  %v283_v46 = vsel %vm278_vm2, %v272_v16, %v273_v17  ;;  %v284_v47 = vsel %vm278_vm2, %v271_v11, %v272_v16  ;;  %v281_v48 = vsel %vm278_vm2, %v274_v23, %v275_v24  ;;  %v726_v11 = vld [vmem:[#allocation22 + $0x18] sm:$0xff] }
 0x132   :  { %v286_v42 = vsel %vm278_vm2, %v277_v34, %v270_v10  ;;  %v282_v49 = vsel %vm278_vm2, %v273_v17, %v274_v23  ;;  %v288_v50 = vpack.c.bf16 %v283_v46, %v284_v47  ;;  %v279_v54 = vsel %vm278_vm2, %v276_v33, %v277_v34  ;;  %v730_v17 = vld [vmem:[#allocation22 + $0x38] sm:$0xf]  ;;  %v7341_v23 = vld [vmem:[#allocation5] ss:$0 sm:$0xff] }
 0x133   :  { %8168 = vmatpush3.bf16.msra.mxu0 %v350_v9  ;;  %v287_v44 = vpack.c.bf16 %v285_v41, %v286_v42  ;;  %v289_v52 = vpack.c.bf16 %v281_v48, %v282_v49  ;;  %v280_v55 = vsel %vm278_vm2, %v275_v24, %v276_v33  ;;  %v534_v56 = vsel %vm528_vm3, %v521_v14, %v522_v18 }
 0x134   :  { %8177 = vmatprep.subr.bf16.mxu0 %v9356_v22  ;;  %v535_v57 = vsel %vm528_vm3, %v520_v13, %v521_v14  ;;  %v290_v58 = vpack.c.bf16 %v279_v54, %v280_v55  ;;  %v533_v60 = vsel %vm528_vm3, %v522_v18, %v523_v21  ;;  %v532_v61 = vsel %vm528_vm3, %v523_v21, %v524_v25  ;;  %v728_v14 = vld [vmem:[#allocation22 + $0x28] sm:$0xff] }
 0x135   :  { %v537_v59 = vpack.c.bf16 %v534_v56, %v535_v57  ;;  %v530_v62 = vsel %vm528_vm3, %v525_v26, %v526_v35  ;;  %v531_v63 = vsel %vm528_vm3, %v524_v25, %v525_v26  ;;  %v538_v0 = vpack.c.bf16 %v532_v61, %v533_v60 }
 0x136   :  { %8170 = vmatmul.mubr.msk.bf16.vlgmr.msra.gmra.mrb[0].mxu0 %vm335_vm0, %v300_v29  ;;  %v539_v1 = vpack.c.bf16 %v530_v62, %v531_v63  ;;  %v529_v2 = vsel %vm528_vm3, %v526_v35, %v527_v36  ;;  %v536_v3 = vsel %vm528_vm3, %v527_v36, %v520_v13  ;;  %v10309_v9 = vpack.c.bf16 %v724_v7, %v723_v6  ;;  %v727_v13 = vld [vmem:[#allocation22 + $0x20] sm:$0xff] }
 0x137   :  { %8178 = vmatpush3.bf16.msra.mxu0 %v9356_v22  ;;  %8173 = vmatprep.mubr.msk.bf16.mxu0 %vm335_vm0, %v301_v32  ;;  %v540_v4 = vpack.c.bf16 %v536_v3, %v529_v2  ;;  %v9871_v10 = vmov 0.0|0.0   ;;  %v10317_v12 = vpack.c.bf16 %v726_v11, %v725_v5  ;;  %v10323_v16 = vpack.c.bf16 %v728_v14, %v727_v13 }
 0x138   :  { %8179 = vmatprep.subr.bf16.mxu0 %v9357_v30  ;;  %8961 = vmatprep.subr.bf16.mxu1 %v9871_v10  ;;  %v9873_v18 = vmov 0.0   ;;  %v10330_v19 = vpack.c.bf16 %v730_v17, %v729_v15  ;;  %v10349_v21 = vadd.s32 24, %v10179_v8  ;;  %v10352_v22 = vadd.s32 8, %v10179_v8 }
 0x139   :  { %8963 = vmatpush3.bf16.msra.mxu1 %v10309_v9  ;;  %8225 = vmatprep.mubr.msk.f32.mxu1 %vm9872_vm5, %v9873_v18  ;;  %v10357_v29 = vadd.s32 56, %v10179_v8  ;;  %v10360_v32 = vadd.s32 40, %v10179_v8 }
 0x13a   :  { %8964 = vmatprep.subr.bf16.mxu1 %v9871_v10  ;;  %v256_v24 = vand.u32 15, %v10349_v21  ;;  %v254_v26 = vand.u32 15, %v10352_v22  ;;  %vm732_vm15 = vcmp.lt.s32.totalorder %v10352_v22, 15 }
 0x13b   :  { %8180 = vmatpush3.bf16.msra.mxu0 %v9357_v30 }
 0x13c   :  { %8181 = vmatprep.subr.bf16.mxu0 %v9358_v38  ;;  %vm694_vm8 = vcmp.lt.s32.totalorder %v256_v24, 15  ;;  %vm692_vm9 = vcmp.lt.s32.totalorder %v254_v26, 15 }
 0x13d   :  { %8966 = vmatpush3.bf16.msra.mxu1 %v10317_v12  ;;  %v10370_v41 = vsel %vm694_vm8, 1.0, %v9873_v18  ;;  %v10376_v46 = vsel %vm692_vm9, 1.0, %v9873_v18  ;;  %vm4208_vm8 = vcmask 719872  }
 0x13e   :  { %8174 = vmatmul.mubr.msk.bf16.gmra.mrb[4].mxu0 %vm335_vm0, %v302_v43  ;;  %8967 = vmatprep.subr.bf16.mxu1 %v9871_v10  ;;  %v12783_v43 = vand.u32 15, %v10360_v32 }
 0x13f   :  { %8182 = vmatpush3.bf16.msra.mxu0 %v9358_v38  ;;  %8185 = vmatprep.mubr.msk.bf16.mxu0 %vm335_vm0, %v287_v44 }
 0x140   :  { %9304 = vmatprep.subr.msk.bf16.mxu0 %vm348_vm1, %v9359_v31  ;;  %vm10394_vm11 = vcmp.lt.s32.totalorder %v12783_v43, 15 }
 0x141   :  { %8969 = vmatpush3.bf16.msra.mxu1 %v10323_v16  ;;  %v10414_v15 = vsel %vm10394_vm11, 1.0, %v9873_v18  ;;  %vm4203_vm11 = vcmp.lt.s32.totalorder %v10352_v22, 11 }
 0x142   :  { %8970 = vmatprep.subr.bf16.mxu1 %v9871_v10 }
 0x143   :  { %8184 = vmatpush3.bf16.msra.mxu0 %v453_v39  ;;  %v12784_v39 = vand.u32 15, %v10357_v29 }
 0x144   :  { %8193 = vmatprep.subr.bf16.mxu0 %v9360_v45 }
 0x145   :  { %8973 = vmatpush3.bf16.msk.msra.mxu1 %vm10335_vm7, %v10330_v19  ;;  %vm10383_vm10 = vcmp.lt.s32.totalorder %v12784_v39, 15 }
 0x146   :  { %8186 = vmatmul.mubr.msk.bf16.vlgmr.msra.gmra.mrb[0].mxu0 %vm335_vm0, %v288_v50  ;;  %8974 = vmatprep.subr.bf16.mxu1 %v9871_v10  ;;  %v10407_v7 = vsel %vm10383_vm10, 1.0, %v9873_v18 }
 0x147   :  { %8194 = vmatpush3.bf16.msra.mxu0 %v9360_v45  ;;  %8189 = vmatprep.mubr.msk.bf16.mxu0 %vm335_vm0, %v289_v52 }
 0x148   :  { %8195 = vmatprep.subr.bf16.mxu0 %v9361_v51 }
 0x14b   :  { %8196 = vmatpush3.bf16.msra.mxu0 %v9361_v51 }
 0x14c   :  { %8197 = vmatprep.subr.bf16.mxu0 %v9362_v53 }
 0x14e   :  { %8190 = vmatmul.mubr.msk.bf16.gmra.mrb[4].mxu0 %vm335_vm0, %v290_v58 }
 0x14f   :  { %8198 = vmatpush3.bf16.msra.mxu0 %v9362_v53  ;;  %8201 = vmatprep.mubr.msk.bf16.mxu0 %vm335_vm0, %v537_v59 }
 0x150   :  { %9305 = vmatprep.subr.msk.bf16.mxu0 %vm348_vm1, %v9363_v37 }
 0x153   :  { %8200 = vmatpush3.bf16.msra.mxu0 %v586_v40 }
 0x154   :  { %8987 = vmatprep.subr.bf16.mxu0 %v9871_v10 }
 0x156   :  { %8202 = vmatmul.mubr.msk.bf16.vlgmr.msra.gmra.mrb[0].mxu0 %vm335_vm0, %v538_v0 }
 0x157   :  { %8205 = vmatprep.mubr.msk.bf16.mxu0 %vm335_vm0, %v539_v1  ;;  %8989 = vmatpush3.bf16.msra.mxu0 %v10309_v9 }
 0x158   :  { %8990 = vmatprep.subr.bf16.mxu0 %v9871_v10 }
 0x15b   :  { %8992 = vmatpush3.bf16.msra.mxu0 %v10317_v12 }
 0x15c   :  { %8993 = vmatprep.subr.bf16.mxu0 %v9871_v10 }
 0x15e   :  { %8206 = vmatmul.mubr.msk.bf16.gmra.mrb[4].mxu0 %vm335_vm0, %v540_v4 }
 0x15f   :  { %8311 = vmatprep.mubr.msk.f32.mxu0 %vm9872_vm5, %v9873_v18  ;;  %8995 = vmatpush3.bf16.msra.mxu0 %v10323_v16 }
 0x160   :  { %8996 = vmatprep.subr.bf16.mxu0 %v9871_v10 }
 0x163   :  { %8999 = vmatpush3.bf16.msk.msra.mxu0 %vm10335_vm7, %v10330_v19 }
 0x164   :  { %9000 = vmatprep.subr.bf16.mxu0 %v9871_v10 }
 0x229   :  { %v8203_v25 = vpop.f32.mrb[0].mxu0 }
 0x22a   :  { %v669_v27 = vadd.f32 %v8203_v25, %v7341_v23  ;;  %v622_v28 = vpop.f32.mrb[1].mxu0 }
 0x22b   :  { %v667_v30 = vadd.f32 %v7341_v23, %v622_v28  ;;  %v8204_v31 = vpop.f32.mrb[2].mxu0 }
 0x22c   :  { %v677_v33 = vmul.f32 0.01, %v669_v27  ;;  %v670_v34 = vadd.f32 %v8204_v31, %v7341_v23  ;;  %v625_v35 = vpop.f32.mrb[3].mxu0 }
 0x22d   :  { %v675_v36 = vmul.f32 0.01, %v667_v30  ;;  %v668_v37 = vadd.f32 %v7341_v23, %v625_v35 }
 0x22e   :  { %v678_v38 = vmul.f32 0.01, %v670_v34  ;;  %v10367_v40 = vmax.f32 %v669_v27, %v677_v33 }
 0x22f   :  { %v676_v42 = vmul.f32 0.01, %v668_v37  ;;  %v10373_v44 = vmax.f32 %v667_v30, %v675_v36 }
 0x230   :  { %v686_v45 = vmax.f32 %v670_v34, %v678_v38  ;;  %v746_v53 = vsel %vm335_vm0, %v10367_v40, 0.0 }
 0x231   :  { %v684_v47 = vmax.f32 %v668_v37, %v676_v42  ;;  %v8207_v48 = vpop.f32.mrb[4].mxu0  ;;  %v737_v58 = vsel %vm335_vm0, %v10373_v44, 0.0 }
 0x232   :  { %v10379_v49 = vmul.f32 %v10370_v41, %v686_v45  ;;  %v673_v50 = vadd.f32 %v8207_v48, %v7341_v23  ;;  %v638_v51 = vpop.f32.mrb[5].mxu0 }
 0x233   :  { %v10390_v54 = vmul.f32 %v10376_v46, %v684_v47  ;;  %v671_v55 = vadd.f32 %v7341_v23, %v638_v51  ;;  %v8208_v56 = vpop.f32.mrb[6].mxu0 }
 0x234   :  { %v747_v59 = vsel %vm335_vm0, %v10379_v49, 0.0  ;;  %v681_v60 = vmul.f32 0.01, %v673_v50  ;;  %v674_v61 = vadd.f32 %v8208_v56, %v7341_v23  ;;  %v641_v62 = vpop.f32.mrb[7].mxu0 }
 0x235   :  { %v748_v63 = vadd.f32 %v747_v59, %v746_v53  ;;  %v738_v0 = vsel %vm335_vm0, %v10390_v54, 0.0  ;;  %v679_v1 = vmul.f32 0.01, %v671_v55  ;;  %v672_v2 = vadd.f32 %v7341_v23, %v641_v62 }
 0x236   :  { %v739_v3 = vadd.f32 %v738_v0, %v737_v58  ;;  %v682_v4 = vmul.f32 0.01, %v674_v61  ;;  %v10409_v13 = vmax.f32 %v673_v50, %v681_v60 }
 0x237   :  { %v749_v6 = vrot.slane %v748_v63, 4  ;;  %v680_v5 = vmul.f32 0.01, %v672_v2  ;;  %v10416_v23 = vmax.f32 %v671_v55, %v679_v1 }
 0x238   :  { %v740_v11 = vrot.slane %v739_v3, 4  ;;  %v690_v14 = vmax.f32 %v674_v61, %v682_v4  ;;  %v764_v34 = vsel %vm335_vm0, %v10409_v13, 0.0 }
 0x239   :  { %v750_v17 = vadd.f32 %v749_v6, %v748_v63  ;;  %v688_v25 = vmax.f32 %v672_v2, %v680_v5  ;;  %v755_v36 = vsel %vm335_vm0, %v10416_v23, 0.0  ;;  %v9875_v6 = vmov 1966171168  }
 0x23a   :  { %v741_v27 = vadd.f32 %v740_v11, %v739_v3  ;;  %v10419_v28 = vmul.f32 %v10407_v7, %v690_v14  ;;  %v861_v5 = vunpack.c.l.s4 %v9875_v6 }
 0x23b   :  { %v751_v30 = vrot.slane %v750_v17, 2  ;;  %v10422_v31 = vmul.f32 %v10414_v15, %v688_v25  ;;  %v10451_v25 = vsub.s32 0, %v10179_v8 }
 0x23c   :  { %v742_v33 = vrot.slane %v741_v27, 2  ;;  %v765_v35 = vsel %vm335_vm0, %v10419_v28, 0.0  ;;  %v862_v11 = vunpack.c.0.s8 %v861_v5 }
 0x23d   :  { %v766_v37 = vadd.f32 %v765_v35, %v764_v34  ;;  %v756_v38 = vsel %vm335_vm0, %v10422_v31, 0.0  ;;  %v752_v45 = vadd.f32 %v751_v30, %v750_v17 }
 0x23e   :  { %v757_v42 = vadd.f32 %v756_v38, %v755_v36  ;;  %v743_v47 = vadd.f32 %v742_v33, %v741_v27  ;;  %v10448_v14 = vsub.s32 %v862_v11, %v10179_v8  ;;  %v10459_v38 = vsel %vm732_vm15, 1.0, %v9873_v18 }
 0x23f   :  { %v767_v48 = vrot.slane %v766_v37, 4  ;;  %v753_v55 = vrot.slane %v752_v45, 1 }
 0x240   :  { %v758_v50 = vrot.slane %v757_v42, 4  ;;  %v744_v53 = vrot.slane %v743_v47, 1 }
 0x241   :  { %v768_v51 = vadd.f32 %v767_v48, %v766_v37  ;;  %v754_v61 = vadd.f32 %v753_v55, %v752_v45 }
 0x242   :  { %v759_v52 = vadd.f32 %v758_v50, %v757_v42  ;;  %v745_v60 = vadd.f32 %v744_v53, %v743_v47 }
 0x243   :  { %v769_v56 = vrot.slane %v768_v51, 2 }
 0x244   :  { %v760_v57 = vrot.slane %v759_v52, 2  ;;  %v778_v2 = vsel %vm777_vm12, %v754_v61, %v745_v60 }
 0x245   :  { %v770_v58 = vadd.f32 %v769_v56, %v768_v51 }
 0x246   :  { %v761_v59 = vadd.f32 %v760_v57, %v759_v52 }
 0x247   :  { %v771_v62 = vrot.slane %v770_v58, 1 }
 0x248   :  { %v762_v63 = vrot.slane %v761_v59, 1 }
 0x249   :  { %v772_v1 = vadd.f32 %v771_v62, %v770_v58 }
 0x24a   :  { %v763_v0 = vadd.f32 %v762_v63, %v761_v59 }
 0x24c   :  { %v780_v3 = vsel %vm779_vm13, %v763_v0, %v778_v2 }
 0x24d   :  { %v782_v4 = vsel %vm781_vm14, %v772_v1, %v780_v3 }
 0x24e   :  { %8226 = vmatmul.mubr.msk.f32.vlgmr.msra.gmra.mrb[0].mxu1 %vm335_vm0, %v782_v4 }
 0x24f   :  { %8976 = vmatpush3.bf16.msra.mxu1 %v10309_v9  ;;  %8244 = vmatprep.mubr.msk.f32.mxu1 %vm9872_vm5, %v9873_v18 }
 0x250   :  { %8977 = vmatprep.subr.bf16.mxu1 %v9871_v10 }
 0x253   :  { %8979 = vmatpush3.bf16.msra.mxu1 %v10317_v12 }
 0x254   :  { %8980 = vmatprep.subr.bf16.mxu1 %v9871_v10 }
 0x257   :  { %8982 = vmatpush3.bf16.msra.mxu1 %v10323_v16 }
 0x258   :  { %8983 = vmatprep.subr.bf16.mxu1 %v9871_v10 }
 0x25b   :  { %8986 = vmatpush3.bf16.msk.msra.mxu1 %vm10335_vm7, %v10330_v19 }
 0x321   :  { %v855_v17 = vpop.f32.mrb[0].mxu1 }
 0x322   :  { %v866_v27 = vrot.slane %v855_v17, %v10448_v14  ;;  %v8227_v30 = vpop.f32.mrb[1].mxu1 }
 0x324   :  { %v867_v33 = vcombine.high %v866_v27, %v866_v27  ;;  %v874_v34 = vrot.slane %v866_v27, %v10448_v14 }
 0x326   :  { %v881_v35 = vrot.slane %v867_v33, %v10448_v14  ;;  %v882_v36 = vcombine.high %v874_v34, %v874_v34  ;;  %v887_v37 = vrot.slane %v874_v34, %v10451_v25 }
 0x328   :  { %v883_v42 = vcombine.high %v881_v35, %v881_v35  ;;  %v891_v45 = vrot.slane %v881_v35, %v10451_v25  ;;  %v895_v47 = vrot.slane %v882_v36, %v10451_v25  ;;  %v10464_v48 = vsub.f32 %v10373_v44, %v887_v37 }
 0x329   :  { %v905_v50 = vsub.f32 %v10390_v54, %v887_v37 }
 0x32a   :  { %v899_v51 = vrot.slane %v883_v42, %v10451_v25  ;;  %v10469_v52 = vsub.f32 %v10367_v40, %v891_v45  ;;  %v907_v53 = vsub.f32 %v10379_v49, %v891_v45  ;;  %v10473_v55 = vsub.f32 %v10416_v23, %v895_v47 }
 0x32b   :  { %v909_v56 = vsub.f32 %v10422_v31, %v895_v47  ;;  %v10477_v57 = vmul.f32 %v10459_v38, %v905_v50  ;;  %v920_v58 = vmul.f32 %v10464_v48, %v10464_v48 }
 0x32c   :  { %v10482_v59 = vsub.f32 %v10409_v13, %v899_v51  ;;  %v911_v60 = vsub.f32 %v10419_v28, %v899_v51  ;;  %v10486_v61 = vmul.f32 %v10459_v38, %v907_v53  ;;  %v922_v62 = vmul.f32 %v10469_v52, %v10469_v52 }
 0x32d   :  { %v10491_v63 = vmul.f32 %v10459_v38, %v909_v56  ;;  %v921_v0 = vmul.f32 %v10477_v57, %v10477_v57  ;;  %v924_v1 = vmul.f32 %v10473_v55, %v10473_v55  ;;  %v928_v5 = vsel %vm335_vm0, %v920_v58, 0.0 }
 0x32e   :  { %v10498_v2 = vmul.f32 %v10459_v38, %v911_v60  ;;  %v923_v3 = vmul.f32 %v10486_v61, %v10486_v61  ;;  %v926_v4 = vmul.f32 %v10482_v59, %v10482_v59  ;;  %v937_v30 = vsel %vm335_vm0, %v922_v62, 0.0 }
 0x32f   :  { %v925_v6 = vmul.f32 %v10491_v63, %v10491_v63  ;;  %v929_v11 = vsel %vm335_vm0, %v921_v0, 0.0  ;;  %v946_v35 = vsel %vm335_vm0, %v924_v1, 0.0 }
 0x330   :  { %v927_v17 = vmul.f32 %v10498_v2, %v10498_v2  ;;  %v930_v27 = vadd.f32 %v929_v11, %v928_v5  ;;  %v938_v33 = vsel %vm335_vm0, %v923_v3, 0.0  ;;  %v955_v45 = vsel %vm335_vm0, %v926_v4, 0.0 }
 0x331   :  { %v939_v34 = vadd.f32 %v938_v33, %v937_v30  ;;  %v947_v36 = vsel %vm335_vm0, %v925_v6, 0.0 }
 0x332   :  { %v931_v37 = vrot.slane %v930_v27, 4  ;;  %v948_v42 = vadd.f32 %v947_v36, %v946_v35  ;;  %v956_v47 = vsel %vm335_vm0, %v927_v17, 0.0 }
 0x333   :  { %v940_v50 = vrot.slane %v939_v34, 4  ;;  %v957_v51 = vadd.f32 %v956_v47, %v955_v45 }
 0x334   :  { %v932_v53 = vadd.f32 %v931_v37, %v930_v27  ;;  %v949_v56 = vrot.slane %v948_v42, 4 }
 0x335   :  { %v941_v58 = vadd.f32 %v940_v50, %v939_v34  ;;  %v958_v60 = vrot.slane %v957_v51, 4  ;;  %v9364_v50 = vld [vmem:[#allocation7 + $0x20] sm:$0xff]  }
 0x336   :  { %v933_v62 = vrot.slane %v932_v53, 2  ;;  %v950_v0 = vadd.f32 %v949_v56, %v948_v42  ;;  %8247 = vmatprep.subr.bf16.mxu1 %v9364_v50  ;;  %v9367_v56 = vld [vmem:[#allocation7 + $0x38] sm:$0x3f]  }
 0x337   :  { %v942_v3 = vrot.slane %v941_v58, 2  ;;  %v959_v5 = vadd.f32 %v958_v60, %v957_v51  ;;  %v9365_v51 = vld [vmem:[#allocation7 + $0x28] sm:$0xff]  }
 0x338   :  { %v934_v11 = vadd.f32 %v933_v62, %v932_v53  ;;  %v951_v1 = vrot.slane %v950_v0, 2  ;;  %v9366_v53 = vld [vmem:[#allocation7 + $0x30] sm:$0xff]  }
 0x339   :  { %v943_v30 = vadd.f32 %v942_v3, %v941_v58  ;;  %v960_v6 = vrot.slane %v959_v5, 2 }
 0x33a   :  { %v935_v33 = vrot.slane %v934_v11, 1  ;;  %v952_v35 = vadd.f32 %v951_v1, %v950_v0 }
 0x33b   :  { %v944_v36 = vrot.slane %v943_v30, 1  ;;  %v961_v4 = vadd.f32 %v960_v6, %v959_v5 }
 0x33c   :  { %v953_v43 = vrot.slane %v952_v35, 1  ;;  %v936_v17 = vadd.f32 %v935_v33, %v934_v11 }
 0x33d   :  { %v945_v39 = vadd.f32 %v944_v36, %v943_v30  ;;  %v962_v45 = vrot.slane %v961_v4, 1 }
 0x33e   :  { %v954_v27 = vadd.f32 %v953_v43, %v952_v35  ;;  %v9368_v43 = vld [vmem:[#allocation7] sm:$0xff]  }
 0x33f   :  { %v963_v37 = vadd.f32 %v962_v45, %v961_v4  ;;  %v968_v34 = vsel %vm777_vm12, %v945_v39, %v936_v17  ;;  %v1175_v39 = vsel %vm348_vm1, %v9367_v56, 0 }
 0x340   :  { %v969_v42 = vsel %vm779_vm13, %v954_v27, %v968_v34 }
 0x341   :  { %v970_v47 = vsel %vm781_vm14, %v963_v37, %v969_v42 }
 0x342   :  { %8245 = vmatmul.mubr.msk.f32.vlgmr.msra.gmra.mrb[2].mxu1 %vm335_vm0, %v970_v47  ;;  %v9369_v47 = vld [vmem:[#allocation7 + $0x8] sm:$0xff]  }
 0x343   :  { %8248 = vmatpush3.bf16.msra.mxu1 %v9364_v50  ;;  %v9370_v50 = vld [vmem:[#allocation7 + $0x10] sm:$0xff]  }
 0x344   :  { %8249 = vmatprep.subr.bf16.mxu1 %v9365_v51 }
 0x347   :  { %8250 = vmatpush3.bf16.msra.mxu1 %v9365_v51 }
 0x348   :  { %8251 = vmatprep.subr.bf16.mxu1 %v9366_v53 }
 0x34b   :  { %8252 = vmatpush3.bf16.msra.mxu1 %v9366_v53 }
 0x34c   :  { %9306 = vmatprep.subr.msk.bf16.mxu1 %vm348_vm1, %v9367_v56 }
 0x34f   :  { %8254 = vmatpush3.bf16.msra.mxu1 %v1175_v39 }
 0x350   :  { %8263 = vmatprep.subr.bf16.mxu1 %v9368_v43 }
 0x415   :  { %v1039_v58 = vpop.f32.mrb[2].mxu1 }
 0x416   :  { %v1040_v60 = vadd.f32 1e-05, %v1039_v58  ;;  %v8246_v62 = vpop.f32.mrb[3].mxu1 }
 0x418   :  { %9491 = vrsqrt.f32 %v1040_v60 }
 0x422   :  { %v9492_v0 = vpop.eup %9491 }
 0x423   :  { %v1051_v3 = vrot.slane %v9492_v0, %v10448_v14 }
 0x425   :  { %v1052_v5 = vcombine.high %v1051_v3, %v1051_v3  ;;  %v1059_v11 = vrot.slane %v1051_v3, %v10448_v14 }
 0x427   :  { %v1066_v1 = vrot.slane %v1052_v5, %v10448_v14  ;;  %v1072_v30 = vrot.slane %v1059_v11, %v10451_v25  ;;  %v1067_v6 = vcombine.high %v1059_v11, %v1059_v11  ;;  %v9372_v5 = vld [vmem:[#allocation7 + $0x40] sm:$0xff]  }
 0x429   :  { %v1076_v33 = vrot.slane %v1066_v1, %v10451_v25  ;;  %v10528_v35 = vmul.f32 %v1072_v30, %v10464_v48  ;;  %v10531_v36 = vmul.f32 %v1072_v30, %v10477_v57  ;;  %v1080_v4 = vrot.slane %v1067_v6, %v10451_v25 }
 0x42a   :  { %v1068_v17 = vcombine.high %v1066_v1, %v1066_v1 }
 0x42b   :  { %v1126_v45 = vpack.c.bf16 %v10531_v36, %v10528_v35  ;;  %v10537_v27 = vmul.f32 %v1076_v33, %v10469_v52  ;;  %v10540_v37 = vmul.f32 %v1076_v33, %v10486_v61  ;;  %v10543_v34 = vmul.f32 %v1080_v4, %v10473_v55 }
 0x42c   :  { %v10546_v48 = vmul.f32 %v1080_v4, %v10491_v63  ;;  %v1084_v57 = vrot.slane %v1068_v17, %v10451_v25  ;;  %v1098_v51 = vrot.slane %v10528_v35, 7  ;;  %v1099_v53 = vrot.slane %v10531_v36, 7  ;;  %v9373_v4 = vld [vmem:[#allocation7 + $0x48] sm:$0xff]  }
 0x42d   :  { %8255 = vmatprep.mubr.msk.bf16.mxu1 %vm335_vm0, %v1126_v45  ;;  %v1127_v42 = vpack.c.bf16 %v10540_v37, %v10537_v27  ;;  %v1101_v58 = vrot.slane %v10540_v37, 7  ;;  %v1102_v62 = vrot.slane %v10543_v34, 7 }
 0x42e   :  { %v1128_v52 = vpack.c.bf16 %v10546_v48, %v10543_v34  ;;  %v10555_v61 = vmul.f32 %v1084_v57, %v10498_v2  ;;  %v10561_v63 = vmul.f32 %v1084_v57, %v10482_v59  ;;  %v1112_v39 = vsel %vm278_vm2, %v1098_v51, %v1099_v53 }
 0x42f   :  { %8256 = vmatmul.mubr.msk.bf16.vlgmr.msra.gmra.mrb[4].mxu1 %vm335_vm0, %v1127_v42  ;;  %v1100_v59 = vrot.slane %v10537_v27, 7  ;;  %v1103_v0 = vrot.slane %v10546_v48, 7  ;;  %v1109_v6 = vsel %vm278_vm2, %v1101_v58, %v1102_v62  ;;  %v1347_v57 = vrot.slane %v10537_v27, 1  ;;  %v9374_v42 = vld [vmem:[#allocation7 + $0x50] sm:$0xff]  }
 0x430   :  { %8259 = vmatprep.mubr.msk.bf16.mxu1 %vm335_vm0, %v1128_v52  ;;  %8264 = vmatpush3.bf16.msra.mxu1 %v9368_v43  ;;  %v1105_v55 = vrot.slane %v10555_v61, 7  ;;  %v1129_v56 = vpack.c.bf16 %v10555_v61, %v10561_v63  ;;  %v9371_v43 = vld [vmem:[#allocation7 + $0x18] sm:$0x3f]   ;;  %v1104_v45 = vrot.slane %v10561_v63, 7  ;;  %v1346_v52 = vrot.slane %v10531_v36, 1 }
 0x431   :  { %8265 = vmatprep.subr.bf16.mxu1 %v9369_v47  ;;  %v1278_v3 = vsel %vm348_vm1, %v9371_v43, 0  ;;  %v1111_v11 = vsel %vm278_vm2, %v1099_v53, %v1100_v59  ;;  %v1110_v1 = vsel %vm278_vm2, %v1100_v59, %v1101_v58  ;;  %v1108_v30 = vsel %vm278_vm2, %v1102_v62, %v1103_v0 }
 0x432   :  { %v1113_v2 = vsel %vm278_vm2, %v1105_v55, %v1098_v51  ;;  %v1115_v33 = vpack.c.bf16 %v1110_v1, %v1111_v11  ;;  %v1116_v17 = vpack.c.bf16 %v1108_v30, %v1109_v6  ;;  %v1107_v51 = vsel %vm278_vm2, %v1103_v0, %v1104_v45 }
 0x433   :  { %v1114_v60 = vpack.c.bf16 %v1112_v39, %v1113_v2  ;;  %v1358_v53 = vsel %vm528_vm3, %v1346_v52, %v1347_v57  ;;  %v1349_v36 = vrot.slane %v10543_v34, 1  ;;  %v1350_v59 = vrot.slane %v10546_v48, 1 }
 0x434   :  { %8266 = vmatpush3.bf16.msra.mxu1 %v9369_v47  ;;  %v1345_v47 = vrot.slane %v10528_v35, 1  ;;  %v1348_v35 = vrot.slane %v10540_v37, 1  ;;  %v1352_v0 = vrot.slane %v10555_v61, 1  ;;  %v7375_v61 = vld [vmem:[#allocation8] ss:$0 sm:$0xff] }
 0x435   :  { %8267 = vmatprep.subr.bf16.mxu1 %v9370_v50 }
 0x436   :  { %v1359_v2 = vsel %vm528_vm3, %v1345_v47, %v1346_v52  ;;  %v1357_v58 = vsel %vm528_vm3, %v1347_v57, %v1348_v35  ;;  %v1356_v37 = vsel %vm528_vm3, %v1348_v35, %v1349_v36 }
 0x437   :  { %8260 = vmatmul.mubr.msk.bf16.gmra.mrb[8].mxu1 %vm335_vm0, %v1129_v56  ;;  %v9375_v56 = vld [vmem:[#allocation7 + $0x58] sm:$0x3f]   ;;  %v1361_v39 = vpack.c.bf16 %v1358_v53, %v1359_v2 }
 0x438   :  { %8268 = vmatpush3.bf16.msra.mxu1 %v9370_v50  ;;  %8271 = vmatprep.mubr.msk.bf16.mxu1 %vm335_vm0, %v1114_v60  ;;  %v1106_v50 = vsel %vm278_vm2, %v1104_v45, %v1105_v55  ;;  %v1351_v55 = vrot.slane %v10561_v63, 1  ;;  %v1362_v63 = vpack.c.bf16 %v1356_v37, %v1357_v58  ;;  %v1355_v60 = vsel %vm528_vm3, %v1349_v36, %v1350_v59 }
 0x439   :  { %9307 = vmatprep.subr.msk.bf16.mxu1 %vm348_vm1, %v9371_v43  ;;  %v1117_v27 = vpack.c.bf16 %v1106_v50, %v1107_v51  ;;  %v1410_v43 = vsel %vm348_vm1, %v9375_v56, 0 }
 0x43a   :  { %v1354_v34 = vsel %vm528_vm3, %v1350_v59, %v1351_v55  ;;  %v1353_v48 = vsel %vm528_vm3, %v1351_v55, %v1352_v0 }
 0x43b   :  { %v1363_v62 = vpack.c.bf16 %v1354_v34, %v1355_v60 }
 0x43c   :  { %8270 = vmatpush3.bf16.msra.mxu1 %v1278_v3  ;;  %v1360_v3 = vsel %vm528_vm3, %v1352_v0, %v1345_v47 }
 0x43d   :  { %8279 = vmatprep.subr.bf16.mxu1 %v9372_v5 }
 0x43f   :  { %8272 = vmatmul.mubr.msk.bf16.vlgmr.msra.gmra.mrb[4].mxu1 %vm335_vm0, %v1115_v33 }
 0x440   :  { %8275 = vmatprep.mubr.msk.bf16.mxu1 %vm335_vm0, %v1116_v17  ;;  %8280 = vmatpush3.bf16.msra.mxu1 %v9372_v5  ;;  %v1364_v5 = vpack.c.bf16 %v1360_v3, %v1353_v48 }
 0x441   :  { %8281 = vmatprep.subr.bf16.mxu1 %v9373_v4 }
 0x444   :  { %8282 = vmatpush3.bf16.msra.mxu1 %v9373_v4 }
 0x445   :  { %8283 = vmatprep.subr.bf16.mxu1 %v9374_v42 }
 0x447   :  { %8276 = vmatmul.mubr.msk.bf16.gmra.mrb[8].mxu1 %vm335_vm0, %v1117_v27 }
 0x448   :  { %8284 = vmatpush3.bf16.msra.mxu1 %v9374_v42  ;;  %8287 = vmatprep.mubr.msk.bf16.mxu1 %vm335_vm0, %v1361_v39 }
 0x449   :  { %9308 = vmatprep.subr.msk.bf16.mxu1 %vm348_vm1, %v9375_v56 }
 0x44c   :  { %8286 = vmatpush3.bf16.msra.mxu1 %v1410_v43 }
 0x44d   :  { %9013 = vmatprep.subr.bf16.mxu1 %v9871_v10 }
 0x44f   :  { %8288 = vmatmul.mubr.msk.bf16.vlgmr.msra.gmra.mrb[4].mxu1 %vm335_vm0, %v1362_v63 }
 0x450   :  { %8291 = vmatprep.mubr.msk.bf16.mxu1 %vm335_vm0, %v1363_v62  ;;  %9015 = vmatpush3.bf16.msra.mxu1 %v10309_v9 }
 0x451   :  { %9016 = vmatprep.subr.bf16.mxu1 %v9871_v10 }
 0x454   :  { %9018 = vmatpush3.bf16.msra.mxu1 %v10317_v12 }
 0x455   :  { %9019 = vmatprep.subr.bf16.mxu1 %v9871_v10 }
 0x457   :  { %8292 = vmatmul.mubr.msk.bf16.gmra.mrb[8].mxu1 %vm335_vm0, %v1364_v5 }
 0x458   :  { %9021 = vmatpush3.bf16.msra.mxu1 %v10323_v16  ;;  %8397 = vmatprep.mubr.msk.f32.mxu1 %vm9872_vm5, %v9873_v18 }
 0x459   :  { %9022 = vmatprep.subr.bf16.mxu1 %v9871_v10 }
 0x45c   :  { %9025 = vmatpush3.bf16.msk.msra.mxu1 %vm10335_vm7, %v10330_v19 }
 0x45d   :  { %9026 = vmatprep.subr.bf16.mxu1 %v9871_v10 }
 0x522   :  { %v8289_v11 = vpop.f32.mrb[4].mxu1 }
 0x523   :  { %v1493_v1 = vadd.f32 %v8289_v11, %v7375_v61  ;;  %v1446_v30 = vpop.f32.mrb[5].mxu1 }
 0x524   :  { %v1491_v6 = vadd.f32 %v7375_v61, %v1446_v30  ;;  %v8290_v33 = vpop.f32.mrb[6].mxu1 }
 0x525   :  { %v1501_v4 = vmul.f32 0.01, %v1493_v1  ;;  %v1494_v17 = vadd.f32 %v8290_v33, %v7375_v61  ;;  %v1449_v45 = vpop.f32.mrb[7].mxu1 }
 0x526   :  { %v1499_v57 = vmul.f32 0.01, %v1491_v6  ;;  %v1492_v42 = vadd.f32 %v7375_v61, %v1449_v45 }
 0x527   :  { %v1509_v47 = vmax.f32 %v1493_v1, %v1501_v4  ;;  %v1502_v52 = vmul.f32 0.01, %v1494_v17 }
 0x528   :  { %v1507_v50 = vmax.f32 %v1491_v6, %v1499_v57  ;;  %v1500_v51 = vmul.f32 0.01, %v1492_v42 }
 0x529   :  { %v1510_v53 = vmax.f32 %v1494_v17, %v1502_v52  ;;  %v10639_v27 = vadd.f32 %v1509_v47, %v10367_v40 }
 0x52a   :  { %v1508_v2 = vmax.f32 %v1492_v42, %v1500_v51  ;;  %v8293_v56 = vpop.f32.mrb[8].mxu1  ;;  %v10642_v35 = vadd.f32 %v1507_v50, %v10373_v44 }
 0x52b   :  { %v1518_v36 = vmul.f32 %v10370_v41, %v1510_v53  ;;  %v1497_v39 = vadd.f32 %v8293_v56, %v7375_v61  ;;  %v1462_v55 = vpop.f32.mrb[9].mxu1  ;;  %v1540_v60 = vsel %vm335_vm0, %v10639_v27, 0.0 }
 0x52c   :  { %v1516_v43 = vmul.f32 %v10376_v46, %v1508_v2  ;;  %v1495_v59 = vadd.f32 %v7375_v61, %v1462_v55  ;;  %v8294_v58 = vpop.f32.mrb[10].mxu1  ;;  %v1531_v48 = vsel %vm335_vm0, %v10642_v35, 0.0 }
 0x52d   :  { %v10647_v37 = vadd.f32 %v1518_v36, %v10379_v49  ;;  %v1505_v34 = vmul.f32 0.01, %v1497_v39  ;;  %v1498_v63 = vadd.f32 %v8294_v58, %v7375_v61  ;;  %v1465_v40 = vpop.f32.mrb[11].mxu1 }
 0x52e   :  { %v10652_v44 = vadd.f32 %v1516_v43, %v10390_v54  ;;  %v1503_v62 = vmul.f32 0.01, %v1495_v59  ;;  %v1496_v0 = vadd.f32 %v7375_v61, %v1465_v40 }
 0x52f   :  { %v1541_v3 = vsel %vm335_vm0, %v10647_v37, 0.0  ;;  %v1513_v5 = vmax.f32 %v1497_v39, %v1505_v34  ;;  %v1506_v49 = vmul.f32 0.01, %v1498_v63 }
 0x530   :  { %v1542_v11 = vadd.f32 %v1541_v3, %v1540_v60  ;;  %v1532_v1 = vsel %vm335_vm0, %v10652_v44, 0.0  ;;  %v1511_v30 = vmax.f32 %v1495_v59, %v1503_v62  ;;  %v1504_v6 = vmul.f32 0.01, %v1496_v0 }
 0x531   :  { %v1533_v33 = vadd.f32 %v1532_v1, %v1531_v48  ;;  %v1514_v4 = vmax.f32 %v1498_v63, %v1506_v49  ;;  %v10661_v61 = vadd.f32 %v1513_v5, %v10409_v13 }
 0x532   :  { %v1543_v54 = vrot.slane %v1542_v11, 4  ;;  %v1512_v17 = vmax.f32 %v1496_v0, %v1504_v6  ;;  %v10665_v47 = vadd.f32 %v1511_v30, %v10416_v23 }
 0x533   :  { %v1534_v45 = vrot.slane %v1533_v33, 4  ;;  %v1522_v57 = vmul.f32 %v10407_v7, %v1514_v4  ;;  %v1558_v13 = vsel %vm335_vm0, %v10661_v61, 0.0 }
 0x534   :  { %v1544_v42 = vadd.f32 %v1543_v54, %v1542_v11  ;;  %v1520_v52 = vmul.f32 %v10414_v15, %v1512_v17  ;;  %v1549_v23 = vsel %vm335_vm0, %v10665_v47, 0.0 }
 0x535   :  { %v1535_v50 = vadd.f32 %v1534_v45, %v1533_v33  ;;  %v10669_v51 = vadd.f32 %v1522_v57, %v10419_v28 }
 0x536   :  { %v1545_v53 = vrot.slane %v1544_v42, 2  ;;  %v10672_v2 = vadd.f32 %v1520_v52, %v10422_v31 }
 0x537   :  { %v1536_v56 = vrot.slane %v1535_v50, 2  ;;  %v1559_v36 = vsel %vm335_vm0, %v10669_v51, 0.0 }
 0x538   :  { %v1560_v39 = vadd.f32 %v1559_v36, %v1558_v13  ;;  %v1550_v55 = vsel %vm335_vm0, %v10672_v2, 0.0  ;;  %v1546_v43 = vadd.f32 %v1545_v53, %v1544_v42 }
 0x539   :  { %v1551_v28 = vadd.f32 %v1550_v55, %v1549_v23  ;;  %v1537_v59 = vadd.f32 %v1536_v56, %v1535_v50 }
 0x53a   :  { %v1561_v58 = vrot.slane %v1560_v39, 4  ;;  %v1547_v40 = vrot.slane %v1546_v43, 1 }
 0x53b   :  { %v1552_v31 = vrot.slane %v1551_v28, 4  ;;  %v1538_v60 = vrot.slane %v1537_v59, 1 }
 0x53c   :  { %v1562_v34 = vadd.f32 %v1561_v58, %v1560_v39  ;;  %v1548_v49 = vadd.f32 %v1547_v40, %v1546_v43 }
 0x53d   :  { %v1553_v63 = vadd.f32 %v1552_v31, %v1551_v28  ;;  %v1539_v5 = vadd.f32 %v1538_v60, %v1537_v59 }
 0x53e   :  { %v1563_v62 = vrot.slane %v1562_v34, 2 }
 0x53f   :  { %v1554_v0 = vrot.slane %v1553_v63, 2  ;;  %v1571_v33 = vsel %vm777_vm12, %v1548_v49, %v1539_v5 }
 0x540   :  { %v1564_v48 = vadd.f32 %v1563_v62, %v1562_v34 }
 0x541   :  { %v1555_v3 = vadd.f32 %v1554_v0, %v1553_v63 }
 0x542   :  { %v1565_v11 = vrot.slane %v1564_v48, 1 }
 0x543   :  { %v1556_v1 = vrot.slane %v1555_v3, 1 }
 0x544   :  { %v1566_v6 = vadd.f32 %v1565_v11, %v1564_v48 }
 0x545   :  { %v1557_v30 = vadd.f32 %v1556_v1, %v1555_v3 }
 0x547   :  { %v1572_v4 = vsel %vm779_vm13, %v1557_v30, %v1571_v33 }
 0x548   :  { %v1573_v54 = vsel %vm781_vm14, %v1566_v6, %v1572_v4 }
 0x549   :  { %8312 = vmatmul.mubr.msk.f32.vlgmr.msra.gmra.mrb[8].mxu0 %vm335_vm0, %v1573_v54 }
 0x54a   :  { %9002 = vmatpush3.bf16.msra.mxu0 %v10309_v9  ;;  %8330 = vmatprep.mubr.msk.f32.mxu0 %vm9872_vm5, %v9873_v18 }
 0x54b   :  { %9003 = vmatprep.subr.bf16.mxu0 %v9871_v10 }
 0x54e   :  { %9005 = vmatpush3.bf16.msra.mxu0 %v10317_v12 }
 0x54f   :  { %9006 = vmatprep.subr.bf16.mxu0 %v9871_v10 }
 0x552   :  { %9008 = vmatpush3.bf16.msra.mxu0 %v10323_v16 }
 0x553   :  { %9009 = vmatprep.subr.bf16.mxu0 %v9871_v10 }
 0x556   :  { %9012 = vmatpush3.bf16.msk.msra.mxu0 %vm10335_vm7, %v10330_v19 }
 0x61c   :  { %v1642_v17 = vpop.f32.mrb[8].mxu0 }
 0x61d   :  { %v1653_v45 = vrot.slane %v1642_v17, %v10448_v14  ;;  %v8313_v57 = vpop.f32.mrb[9].mxu0 }
 0x61f   :  { %v1654_v42 = vcombine.high %v1653_v45, %v1653_v45  ;;  %v1661_v52 = vrot.slane %v1653_v45, %v10448_v14 }
 0x621   :  { %v1668_v50 = vrot.slane %v1654_v42, %v10448_v14  ;;  %v1669_v53 = vcombine.high %v1661_v52, %v1661_v52  ;;  %v1674_v56 = vrot.slane %v1661_v52, %v10451_v25 }
 0x623   :  { %v1670_v13 = vcombine.high %v1668_v50, %v1668_v50  ;;  %v1678_v36 = vrot.slane %v1668_v50, %v10451_v25  ;;  %v1682_v23 = vrot.slane %v1669_v53, %v10451_v25  ;;  %v10704_v39 = vsub.f32 %v10642_v35, %v1674_v56 }
 0x624   :  { %v1692_v55 = vsub.f32 %v10652_v44, %v1674_v56 }
 0x625   :  { %v1686_v28 = vrot.slane %v1670_v13, %v10451_v25  ;;  %v10709_v43 = vsub.f32 %v10639_v27, %v1678_v36  ;;  %v1694_v59 = vsub.f32 %v10647_v37, %v1678_v36  ;;  %v10713_v58 = vsub.f32 %v10665_v47, %v1682_v23 }
 0x626   :  { %v1696_v31 = vsub.f32 %v10672_v2, %v1682_v23  ;;  %v10717_v34 = vmul.f32 %v10459_v38, %v1692_v55  ;;  %v1707_v63 = vmul.f32 %v10704_v39, %v10704_v39 }
 0x627   :  { %v10722_v40 = vsub.f32 %v10661_v61, %v1686_v28  ;;  %v1698_v60 = vsub.f32 %v10669_v51, %v1686_v28  ;;  %v10726_v62 = vmul.f32 %v10459_v38, %v1694_v59  ;;  %v1709_v0 = vmul.f32 %v10709_v43, %v10709_v43 }
 0x628   :  { %v10731_v48 = vmul.f32 %v10459_v38, %v1696_v31  ;;  %v1708_v3 = vmul.f32 %v10717_v34, %v10717_v34  ;;  %v1711_v5 = vmul.f32 %v10713_v58, %v10713_v58  ;;  %v1715_v6 = vsel %vm335_vm0, %v1707_v63, 0.0 }
 0x629   :  { %v10738_v49 = vmul.f32 %v10459_v38, %v1698_v60  ;;  %v1710_v11 = vmul.f32 %v10726_v62, %v10726_v62  ;;  %v1713_v1 = vmul.f32 %v10722_v40, %v10722_v40  ;;  %v1724_v17 = vsel %vm335_vm0, %v1709_v0, 0.0 }
 0x62a   :  { %v1712_v30 = vmul.f32 %v10731_v48, %v10731_v48  ;;  %v1716_v33 = vsel %vm335_vm0, %v1708_v3, 0.0  ;;  %v1733_v42 = vsel %vm335_vm0, %v1711_v5, 0.0 }
 0x62b   :  { %v1714_v4 = vmul.f32 %v10738_v49, %v10738_v49  ;;  %v1717_v54 = vadd.f32 %v1716_v33, %v1715_v6  ;;  %v1725_v45 = vsel %vm335_vm0, %v1710_v11, 0.0  ;;  %v1742_v56 = vsel %vm335_vm0, %v1713_v1, 0.0 }
 0x62c   :  { %v1726_v57 = vadd.f32 %v1725_v45, %v1724_v17  ;;  %v1734_v52 = vsel %vm335_vm0, %v1712_v30, 0.0 }
 0x62d   :  { %v1718_v50 = vrot.slane %v1717_v54, 4  ;;  %v1735_v53 = vadd.f32 %v1734_v52, %v1733_v42  ;;  %v1743_v13 = vsel %vm335_vm0, %v1714_v4, 0.0 }
 0x62e   :  { %v1727_v36 = vrot.slane %v1726_v57, 4  ;;  %v1744_v23 = vadd.f32 %v1743_v13, %v1742_v56 }
 0x62f   :  { %v1719_v55 = vadd.f32 %v1718_v50, %v1717_v54  ;;  %v1736_v28 = vrot.slane %v1735_v53, 4 }
 0x630   :  { %v1728_v59 = vadd.f32 %v1727_v36, %v1726_v57  ;;  %v1745_v31 = vrot.slane %v1744_v23, 4  ;;  %v9376_v36 = vld [vmem:[#allocation10 + $0x20] sm:$0xff]  }
 0x631   :  { %v1720_v63 = vrot.slane %v1719_v55, 2  ;;  %v1737_v60 = vadd.f32 %v1736_v28, %v1735_v53  ;;  %8333 = vmatprep.subr.bf16.mxu0 %v9376_v36  ;;  %v9379_v28 = vld [vmem:[#allocation10 + $0x38] sm:$0x3f]  }
 0x632   :  { %v1729_v0 = vrot.slane %v1728_v59, 2  ;;  %v1746_v3 = vadd.f32 %v1745_v31, %v1744_v23  ;;  %v9377_v23 = vld [vmem:[#allocation10 + $0x28] sm:$0xff]   ;;  %v9380_v31 = vld [vmem:[#allocation10] sm:$0xff]  }
 0x633   :  { %v1721_v11 = vadd.f32 %v1720_v63, %v1719_v55  ;;  %v1738_v5 = vrot.slane %v1737_v60, 2  ;;  %v9378_v55 = vld [vmem:[#allocation10 + $0x30] sm:$0xff]  }
 0x634   :  { %v1730_v6 = vadd.f32 %v1729_v0, %v1728_v59  ;;  %v1747_v30 = vrot.slane %v1746_v3, 2  ;;  %v1962_v59 = vsel %vm348_vm1, %v9379_v28, 0 }
 0x635   :  { %v1722_v33 = vrot.slane %v1721_v11, 1  ;;  %v1739_v17 = vadd.f32 %v1738_v5, %v1737_v60 }
 0x636   :  { %v1731_v45 = vrot.slane %v1730_v6, 1  ;;  %v1748_v1 = vadd.f32 %v1747_v30, %v1746_v3 }
 0x637   :  { %v1740_v42 = vrot.slane %v1739_v17, 1  ;;  %v1723_v4 = vadd.f32 %v1722_v33, %v1721_v11 }
 0x638   :  { %v1732_v52 = vadd.f32 %v1731_v45, %v1730_v6  ;;  %v1749_v56 = vrot.slane %v1748_v1, 1 }
 0x639   :  { %v1741_v54 = vadd.f32 %v1740_v42, %v1739_v17 }
 0x63a   :  { %v1750_v50 = vadd.f32 %v1749_v56, %v1748_v1  ;;  %v1755_v57 = vsel %vm777_vm12, %v1732_v52, %v1723_v4 }
 0x63b   :  { %v1756_v53 = vsel %vm779_vm13, %v1741_v54, %v1755_v57 }
 0x63c   :  { %v1757_v13 = vsel %vm781_vm14, %v1750_v50, %v1756_v53 }
 0x63d   :  { %8331 = vmatmul.mubr.msk.f32.vlgmr.msra.gmra.mrb[10].mxu0 %vm335_vm0, %v1757_v13  ;;  %v9381_v13 = vld [vmem:[#allocation10 + $0x8] sm:$0xff]  }
 0x63e   :  { %8334 = vmatpush3.bf16.msra.mxu0 %v9376_v36  ;;  %v9382_v36 = vld [vmem:[#allocation10 + $0x10] sm:$0xff]  }
 0x63f   :  { %8335 = vmatprep.subr.bf16.mxu0 %v9377_v23 }
 0x642   :  { %8336 = vmatpush3.bf16.msra.mxu0 %v9377_v23 }
 0x643   :  { %8337 = vmatprep.subr.bf16.mxu0 %v9378_v55 }
 0x646   :  { %8338 = vmatpush3.bf16.msra.mxu0 %v9378_v55 }
 0x647   :  { %9309 = vmatprep.subr.msk.bf16.mxu0 %vm348_vm1, %v9379_v28 }
 0x64a   :  { %8340 = vmatpush3.bf16.msra.mxu0 %v1962_v59 }
 0x64b   :  { %8349 = vmatprep.subr.bf16.mxu0 %v9380_v31 }
 0x710   :  { %v1826_v63 = vpop.f32.mrb[10].mxu0 }
 0x711   :  { %v1827_v60 = vadd.f32 1e-05, %v1826_v63  ;;  %v8332_v0 = vpop.f32.mrb[11].mxu0 }
 0x713   :  { %9493 = vrsqrt.f32 %v1827_v60 }
 0x71d   :  { %v9494_v3 = vpop.eup %9493 }
 0x71e   :  { %v1838_v11 = vrot.slane %v9494_v3, %v10448_v14 }
 0x720   :  { %v1839_v5 = vcombine.high %v1838_v11, %v1838_v11  ;;  %v1846_v6 = vrot.slane %v1838_v11, %v10448_v14 }
 0x722   :  { %v1853_v30 = vrot.slane %v1839_v5, %v10448_v14  ;;  %v1859_v33 = vrot.slane %v1846_v6, %v10451_v25  ;;  %v1854_v17 = vcombine.high %v1846_v6, %v1846_v6  ;;  %v9384_v5 = vld [vmem:[#allocation10 + $0x40] sm:$0xff]  }
 0x724   :  { %v1863_v45 = vrot.slane %v1853_v30, %v10451_v25  ;;  %v10768_v1 = vmul.f32 %v1859_v33, %v10704_v39  ;;  %v10771_v42 = vmul.f32 %v1859_v33, %v10717_v34  ;;  %v1867_v4 = vrot.slane %v1854_v17, %v10451_v25 }
 0x725   :  { %v1855_v52 = vcombine.high %v1853_v30, %v1853_v30 }
 0x726   :  { %v1913_v56 = vpack.c.bf16 %v10771_v42, %v10768_v1  ;;  %v10777_v54 = vmul.f32 %v1863_v45, %v10709_v43  ;;  %v10780_v50 = vmul.f32 %v1863_v45, %v10726_v62  ;;  %v10783_v57 = vmul.f32 %v1867_v4, %v10713_v58 }
 0x727   :  { %v10786_v39 = vmul.f32 %v1867_v4, %v10731_v48  ;;  %v1871_v34 = vrot.slane %v1855_v52, %v10451_v25  ;;  %v1885_v23 = vrot.slane %v10768_v1, 7  ;;  %v1886_v55 = vrot.slane %v10771_v42, 7  ;;  %v9385_v4 = vld [vmem:[#allocation10 + $0x48] sm:$0xff]  }
 0x728   :  { %8341 = vmatprep.mubr.msk.bf16.mxu0 %vm335_vm0, %v1913_v56  ;;  %v1914_v53 = vpack.c.bf16 %v10780_v50, %v10777_v54  ;;  %v1888_v63 = vrot.slane %v10780_v50, 7  ;;  %v1889_v0 = vrot.slane %v10783_v57, 7 }
 0x729   :  { %v1915_v43 = vpack.c.bf16 %v10786_v39, %v10783_v57  ;;  %v10795_v62 = vmul.f32 %v1871_v34, %v10738_v49  ;;  %v10801_v48 = vmul.f32 %v1871_v34, %v10722_v40  ;;  %v1899_v59 = vsel %vm278_vm2, %v1885_v23, %v1886_v55 }
 0x72a   :  { %8342 = vmatmul.mubr.msk.bf16.vlgmr.msra.gmra.mrb[12].mxu0 %vm335_vm0, %v1914_v53  ;;  %v1887_v40 = vrot.slane %v10777_v54, 7  ;;  %v1890_v3 = vrot.slane %v10786_v39, 7  ;;  %v1896_v17 = vsel %vm278_vm2, %v1888_v63, %v1889_v0  ;;  %v2134_v34 = vrot.slane %v10777_v54, 1  ;;  %v9386_v53 = vld [vmem:[#allocation10 + $0x50] sm:$0xff]  }
 0x72b   :  { %8345 = vmatprep.mubr.msk.bf16.mxu0 %vm335_vm0, %v1915_v43  ;;  %8350 = vmatpush3.bf16.msra.mxu0 %v9380_v31  ;;  %v1892_v58 = vrot.slane %v10795_v62, 7  ;;  %v1916_v28 = vpack.c.bf16 %v10795_v62, %v10801_v48  ;;  %v9383_v31 = vld [vmem:[#allocation10 + $0x18] sm:$0x3f]   ;;  %v1891_v56 = vrot.slane %v10801_v48, 7  ;;  %v2133_v43 = vrot.slane %v10771_v42, 1 }
 0x72c   :  { %8351 = vmatprep.subr.bf16.mxu0 %v9381_v13  ;;  %v2065_v11 = vsel %vm348_vm1, %v9383_v31, 0  ;;  %v1898_v6 = vsel %vm278_vm2, %v1886_v55, %v1887_v40  ;;  %v1897_v30 = vsel %vm278_vm2, %v1887_v40, %v1888_v63  ;;  %v1895_v33 = vsel %vm278_vm2, %v1889_v0, %v1890_v3 }
 0x72d   :  { %v1900_v49 = vsel %vm278_vm2, %v1892_v58, %v1885_v23  ;;  %v1902_v45 = vpack.c.bf16 %v1897_v30, %v1898_v6  ;;  %v1903_v52 = vpack.c.bf16 %v1895_v33, %v1896_v17  ;;  %v1894_v23 = vsel %vm278_vm2, %v1890_v3, %v1891_v56 }
 0x72e   :  { %v1901_v60 = vpack.c.bf16 %v1899_v59, %v1900_v49  ;;  %v2145_v55 = vsel %vm528_vm3, %v2133_v43, %v2134_v34  ;;  %v2136_v42 = vrot.slane %v10783_v57, 1  ;;  %v2137_v40 = vrot.slane %v10786_v39, 1 }
 0x72f   :  { %8352 = vmatpush3.bf16.msra.mxu0 %v9381_v13  ;;  %v2132_v13 = vrot.slane %v10768_v1, 1  ;;  %v2135_v1 = vrot.slane %v10780_v50, 1  ;;  %v2139_v3 = vrot.slane %v10795_v62, 1  ;;  %v7404_v62 = vld [vmem:[#allocation11] ss:$0 sm:$0xff] }
 0x730   :  { %8353 = vmatprep.subr.bf16.mxu0 %v9382_v36 }
 0x731   :  { %v2146_v49 = vsel %vm528_vm3, %v2132_v13, %v2133_v43  ;;  %v2144_v63 = vsel %vm528_vm3, %v2134_v34, %v2135_v1  ;;  %v2143_v50 = vsel %vm528_vm3, %v2135_v1, %v2136_v42 }
 0x732   :  { %8346 = vmatmul.mubr.msk.bf16.gmra.mrb[16].mxu0 %vm335_vm0, %v1916_v28  ;;  %v9387_v28 = vld [vmem:[#allocation10 + $0x58] sm:$0x3f]   ;;  %v2148_v59 = vpack.c.bf16 %v2145_v55, %v2146_v49 }
 0x733   :  { %8354 = vmatpush3.bf16.msra.mxu0 %v9382_v36  ;;  %8357 = vmatprep.mubr.msk.bf16.mxu0 %vm335_vm0, %v1901_v60  ;;  %v1893_v36 = vsel %vm278_vm2, %v1891_v56, %v1892_v58  ;;  %v2138_v58 = vrot.slane %v10801_v48, 1  ;;  %v2149_v48 = vpack.c.bf16 %v2143_v50, %v2144_v63  ;;  %v2142_v60 = vsel %vm528_vm3, %v2136_v42, %v2137_v40 }
 0x734   :  { %9310 = vmatprep.subr.msk.bf16.mxu0 %vm348_vm1, %v9383_v31  ;;  %v1904_v54 = vpack.c.bf16 %v1893_v36, %v1894_v23  ;;  %v2197_v31 = vsel %vm348_vm1, %v9387_v28, 0 }
 0x735   :  { %v2141_v57 = vsel %vm528_vm3, %v2137_v40, %v2138_v58  ;;  %v2140_v39 = vsel %vm528_vm3, %v2138_v58, %v2139_v3 }
 0x736   :  { %v2150_v0 = vpack.c.bf16 %v2141_v57, %v2142_v60 }
 0x737   :  { %8356 = vmatpush3.bf16.msra.mxu0 %v2065_v11  ;;  %v2147_v11 = vsel %vm528_vm3, %v2139_v3, %v2132_v13 }
 0x738   :  { %8365 = vmatprep.subr.bf16.mxu0 %v9384_v5 }
 0x73a   :  { %8358 = vmatmul.mubr.msk.bf16.vlgmr.msra.gmra.mrb[12].mxu0 %vm335_vm0, %v1902_v45 }
 0x73b   :  { %8361 = vmatprep.mubr.msk.bf16.mxu0 %vm335_vm0, %v1903_v52  ;;  %8366 = vmatpush3.bf16.msra.mxu0 %v9384_v5  ;;  %v2151_v5 = vpack.c.bf16 %v2147_v11, %v2140_v39 }
 0x73c   :  { %8367 = vmatprep.subr.bf16.mxu0 %v9385_v4 }
 0x73f   :  { %8368 = vmatpush3.bf16.msra.mxu0 %v9385_v4 }
 0x740   :  { %8369 = vmatprep.subr.bf16.mxu0 %v9386_v53 }
 0x742   :  { %8362 = vmatmul.mubr.msk.bf16.gmra.mrb[16].mxu0 %vm335_vm0, %v1904_v54 }
 0x743   :  { %8370 = vmatpush3.bf16.msra.mxu0 %v9386_v53  ;;  %8373 = vmatprep.mubr.msk.bf16.mxu0 %vm335_vm0, %v2148_v59 }
 0x744   :  { %9311 = vmatprep.subr.msk.bf16.mxu0 %vm348_vm1, %v9387_v28 }
 0x747   :  { %8372 = vmatpush3.bf16.msra.mxu0 %v2197_v31 }
 0x748   :  { %9039 = vmatprep.subr.bf16.mxu0 %v9871_v10 }
 0x74a   :  { %8374 = vmatmul.mubr.msk.bf16.vlgmr.msra.gmra.mrb[12].mxu0 %vm335_vm0, %v2149_v48 }
 0x74b   :  { %8377 = vmatprep.mubr.msk.bf16.mxu0 %vm335_vm0, %v2150_v0  ;;  %9041 = vmatpush3.bf16.msra.mxu0 %v10309_v9 }
 0x74c   :  { %9042 = vmatprep.subr.bf16.mxu0 %v9871_v10 }
 0x74f   :  { %9044 = vmatpush3.bf16.msra.mxu0 %v10317_v12 }
 0x750   :  { %9045 = vmatprep.subr.bf16.mxu0 %v9871_v10 }
 0x752   :  { %8378 = vmatmul.mubr.msk.bf16.gmra.mrb[16].mxu0 %vm335_vm0, %v2151_v5 }
 0x753   :  { %9047 = vmatpush3.bf16.msra.mxu0 %v10323_v16  ;;  %8483 = vmatprep.mubr.msk.f32.mxu0 %vm9872_vm5, %v9873_v18 }
 0x754   :  { %9048 = vmatprep.subr.bf16.mxu0 %v9871_v10 }
 0x757   :  { %9051 = vmatpush3.bf16.msk.msra.mxu0 %vm10335_vm7, %v10330_v19 }
 0x758   :  { %9052 = vmatprep.subr.bf16.mxu0 %v9871_v10 }
 0x81d   :  { %v8375_v6 = vpop.f32.mrb[12].mxu0 }
 0x81e   :  { %v2280_v30 = vadd.f32 %v8375_v6, %v7404_v62  ;;  %v2233_v33 = vpop.f32.mrb[13].mxu0 }
 0x81f   :  { %v2278_v17 = vadd.f32 %v7404_v62, %v2233_v33  ;;  %v8376_v45 = vpop.f32.mrb[14].mxu0 }
 0x820   :  { %v2288_v4 = vmul.f32 0.01, %v2280_v30  ;;  %v2281_v52 = vadd.f32 %v8376_v45, %v7404_v62  ;;  %v2236_v56 = vpop.f32.mrb[15].mxu0 }
 0x821   :  { %v2286_v34 = vmul.f32 0.01, %v2278_v17  ;;  %v2279_v53 = vadd.f32 %v7404_v62, %v2236_v56 }
 0x822   :  { %v2296_v13 = vmax.f32 %v2280_v30, %v2288_v4  ;;  %v2289_v43 = vmul.f32 0.01, %v2281_v52 }
 0x823   :  { %v2294_v36 = vmax.f32 %v2278_v17, %v2286_v34  ;;  %v2287_v23 = vmul.f32 0.01, %v2279_v53 }
 0x824   :  { %v2297_v55 = vmax.f32 %v2281_v52, %v2289_v43  ;;  %v10879_v54 = vadd.f32 %v2296_v13, %v10639_v27 }
 0x825   :  { %v2295_v49 = vmax.f32 %v2279_v53, %v2287_v23  ;;  %v8379_v28 = vpop.f32.mrb[16].mxu0  ;;  %v10882_v1 = vadd.f32 %v2294_v36, %v10642_v35 }
 0x826   :  { %v2305_v42 = vmul.f32 %v10370_v41, %v2297_v55  ;;  %v2284_v59 = vadd.f32 %v8379_v28, %v7404_v62  ;;  %v2249_v58 = vpop.f32.mrb[17].mxu0  ;;  %v2327_v60 = vsel %vm335_vm0, %v10879_v54, 0.0 }
 0x827   :  { %v2303_v31 = vmul.f32 %v10376_v46, %v2295_v49  ;;  %v2282_v40 = vadd.f32 %v7404_v62, %v2249_v58  ;;  %v8380_v63 = vpop.f32.mrb[18].mxu0  ;;  %v2318_v39 = vsel %vm335_vm0, %v10882_v1, 0.0 }
 0x828   :  { %v10887_v50 = vadd.f32 %v2305_v42, %v10647_v37  ;;  %v2292_v57 = vmul.f32 0.01, %v2284_v59  ;;  %v2285_v48 = vadd.f32 %v8380_v63, %v7404_v62  ;;  %v2252_v27 = vpop.f32.mrb[19].mxu0 }
 0x829   :  { %v10892_v35 = vadd.f32 %v2303_v31, %v10652_v44  ;;  %v2290_v0 = vmul.f32 0.01, %v2282_v40  ;;  %v2283_v3 = vadd.f32 %v7404_v62, %v2252_v27 }
 0x82a   :  { %v2328_v11 = vsel %vm335_vm0, %v10887_v50, 0.0  ;;  %v2300_v5 = vmax.f32 %v2284_v59, %v2292_v57  ;;  %v2293_v37 = vmul.f32 0.01, %v2285_v48 }
 0x82b   :  { %v2329_v6 = vadd.f32 %v2328_v11, %v2327_v60  ;;  %v2319_v30 = vsel %vm335_vm0, %v10892_v35, 0.0  ;;  %v2298_v33 = vmax.f32 %v2282_v40, %v2290_v0  ;;  %v2291_v17 = vmul.f32 0.01, %v2283_v3 }
 0x82c   :  { %v2320_v45 = vadd.f32 %v2319_v30, %v2318_v39  ;;  %v2301_v4 = vmax.f32 %v2285_v48, %v2293_v37  ;;  %v10901_v62 = vadd.f32 %v2300_v5, %v10661_v61 }
 0x82d   :  { %v2330_v44 = vrot.slane %v2329_v6, 4  ;;  %v2299_v52 = vmax.f32 %v2283_v3, %v2291_v17  ;;  %v10905_v13 = vadd.f32 %v2298_v33, %v10665_v47 }
 0x82e   :  { %v2321_v56 = vrot.slane %v2320_v45, 4  ;;  %v2309_v34 = vmul.f32 %v10407_v7, %v2301_v4  ;;  %v2345_v61 = vsel %vm335_vm0, %v10901_v62, 0.0 }
 0x82f   :  { %v2331_v53 = vadd.f32 %v2330_v44, %v2329_v6  ;;  %v2307_v43 = vmul.f32 %v10414_v15, %v2299_v52  ;;  %v2336_v47 = vsel %vm335_vm0, %v10905_v13, 0.0 }
 0x830   :  { %v2322_v36 = vadd.f32 %v2321_v56, %v2320_v45  ;;  %v10909_v23 = vadd.f32 %v2309_v34, %v10669_v51 }
 0x831   :  { %v2332_v55 = vrot.slane %v2331_v53, 2  ;;  %v10912_v49 = vadd.f32 %v2307_v43, %v10672_v2 }
 0x832   :  { %v2323_v28 = vrot.slane %v2322_v36, 2  ;;  %v2346_v42 = vsel %vm335_vm0, %v10909_v23, 0.0 }
 0x833   :  { %v2347_v59 = vadd.f32 %v2346_v42, %v2345_v61  ;;  %v2337_v58 = vsel %vm335_vm0, %v10912_v49, 0.0  ;;  %v2333_v31 = vadd.f32 %v2332_v55, %v2331_v53 }
 0x834   :  { %v2338_v51 = vadd.f32 %v2337_v58, %v2336_v47  ;;  %v2324_v40 = vadd.f32 %v2323_v28, %v2322_v36 }
 0x835   :  { %v2348_v63 = vrot.slane %v2347_v59, 4  ;;  %v2334_v27 = vrot.slane %v2333_v31, 1 }
 0x836   :  { %v2339_v2 = vrot.slane %v2338_v51, 4  ;;  %v2325_v60 = vrot.slane %v2324_v40, 1 }
 0x837   :  { %v2349_v57 = vadd.f32 %v2348_v63, %v2347_v59  ;;  %v2335_v37 = vadd.f32 %v2334_v27, %v2333_v31 }
 0x838   :  { %v2340_v48 = vadd.f32 %v2339_v2, %v2338_v51  ;;  %v2326_v5 = vadd.f32 %v2325_v60, %v2324_v40 }
 0x839   :  { %v2350_v0 = vrot.slane %v2349_v57, 2 }
 0x83a   :  { %v2341_v3 = vrot.slane %v2340_v48, 2  ;;  %v2358_v45 = vsel %vm777_vm12, %v2335_v37, %v2326_v5 }
 0x83b   :  { %v2351_v39 = vadd.f32 %v2350_v0, %v2349_v57 }
 0x83c   :  { %v2342_v11 = vadd.f32 %v2341_v3, %v2340_v48 }
 0x83d   :  { %v2352_v6 = vrot.slane %v2351_v39, 1 }
 0x83e   :  { %v2343_v30 = vrot.slane %v2342_v11, 1 }
 0x83f   :  { %v2353_v17 = vadd.f32 %v2352_v6, %v2351_v39 }
 0x840   :  { %v2344_v33 = vadd.f32 %v2343_v30, %v2342_v11 }
 0x842   :  { %v2359_v4 = vsel %vm779_vm13, %v2344_v33, %v2358_v45 }
 0x843   :  { %v2360_v44 = vsel %vm781_vm14, %v2353_v17, %v2359_v4 }
 0x844   :  { %8398 = vmatmul.mubr.msk.f32.vlgmr.msra.gmra.mrb[12].mxu1 %vm335_vm0, %v2360_v44 }
 0x845   :  { %9028 = vmatpush3.bf16.msra.mxu1 %v10309_v9  ;;  %8416 = vmatprep.mubr.msk.f32.mxu1 %vm9872_vm5, %v9873_v18 }
 0x846   :  { %9029 = vmatprep.subr.bf16.mxu1 %v9871_v10 }
 0x849   :  { %9031 = vmatpush3.bf16.msra.mxu1 %v10317_v12 }
 0x84a   :  { %9032 = vmatprep.subr.bf16.mxu1 %v9871_v10 }
 0x84d   :  { %9034 = vmatpush3.bf16.msra.mxu1 %v10323_v16 }
 0x84e   :  { %9035 = vmatprep.subr.bf16.mxu1 %v9871_v10 }
 0x851   :  { %9038 = vmatpush3.bf16.msk.msra.mxu1 %vm10335_vm7, %v10330_v19 }
 0x917   :  { %v2429_v52 = vpop.f32.mrb[12].mxu1 }
 0x918   :  { %v2440_v56 = vrot.slane %v2429_v52, %v10448_v14  ;;  %v8399_v34 = vpop.f32.mrb[13].mxu1 }
 0x91a   :  { %v2441_v53 = vcombine.high %v2440_v56, %v2440_v56  ;;  %v2448_v43 = vrot.slane %v2440_v56, %v10448_v14 }
 0x91c   :  { %v2455_v36 = vrot.slane %v2441_v53, %v10448_v14  ;;  %v2456_v55 = vcombine.high %v2448_v43, %v2448_v43  ;;  %v2461_v28 = vrot.slane %v2448_v43, %v10451_v25 }
 0x91e   :  { %v2457_v61 = vcombine.high %v2455_v36, %v2455_v36  ;;  %v2465_v42 = vrot.slane %v2455_v36, %v10451_v25  ;;  %v2469_v47 = vrot.slane %v2456_v55, %v10451_v25  ;;  %v10944_v59 = vsub.f32 %v10882_v1, %v2461_v28 }
 0x91f   :  { %v2479_v58 = vsub.f32 %v10892_v35, %v2461_v28 }
 0x920   :  { %v2473_v51 = vrot.slane %v2457_v61, %v10451_v25  ;;  %v10949_v31 = vsub.f32 %v10879_v54, %v2465_v42  ;;  %v2481_v40 = vsub.f32 %v10887_v50, %v2465_v42  ;;  %v10953_v63 = vsub.f32 %v10905_v13, %v2469_v47 }
 0x921   :  { %v2483_v2 = vsub.f32 %v10912_v49, %v2469_v47  ;;  %v10957_v57 = vmul.f32 %v10459_v38, %v2479_v58  ;;  %v2494_v48 = vmul.f32 %v10944_v59, %v10944_v59 }
 0x922   :  { %v10962_v27 = vsub.f32 %v10901_v62, %v2473_v51  ;;  %v2485_v60 = vsub.f32 %v10909_v23, %v2473_v51  ;;  %v10966_v0 = vmul.f32 %v10459_v38, %v2481_v40  ;;  %v2496_v3 = vmul.f32 %v10949_v31, %v10949_v31 }
 0x923   :  { %v10971_v39 = vmul.f32 %v10459_v38, %v2483_v2  ;;  %v2495_v11 = vmul.f32 %v10957_v57, %v10957_v57  ;;  %v2498_v5 = vmul.f32 %v10953_v63, %v10953_v63  ;;  %v2502_v17 = vsel %vm335_vm0, %v2494_v48, 0.0 }
 0x924   :  { %v10978_v37 = vmul.f32 %v10459_v38, %v2485_v60  ;;  %v2497_v6 = vmul.f32 %v10966_v0, %v10966_v0  ;;  %v2500_v30 = vmul.f32 %v10962_v27, %v10962_v27  ;;  %v2511_v52 = vsel %vm335_vm0, %v2496_v3, 0.0 }
 0x925   :  { %v2499_v33 = vmul.f32 %v10971_v39, %v10971_v39  ;;  %v2503_v45 = vsel %vm335_vm0, %v2495_v11, 0.0  ;;  %v2520_v53 = vsel %vm335_vm0, %v2498_v5, 0.0 }
 0x926   :  { %v2501_v4 = vmul.f32 %v10978_v37, %v10978_v37  ;;  %v2504_v44 = vadd.f32 %v2503_v45, %v2502_v17  ;;  %v2512_v56 = vsel %vm335_vm0, %v2497_v6, 0.0  ;;  %v2529_v28 = vsel %vm335_vm0, %v2500_v30, 0.0 }
 0x927   :  { %v2513_v34 = vadd.f32 %v2512_v56, %v2511_v52  ;;  %v2521_v43 = vsel %vm335_vm0, %v2499_v33, 0.0 }
 0x928   :  { %v2505_v36 = vrot.slane %v2504_v44, 4  ;;  %v2522_v55 = vadd.f32 %v2521_v43, %v2520_v53  ;;  %v2530_v61 = vsel %vm335_vm0, %v2501_v4, 0.0 }
 0x929   :  { %v2514_v42 = vrot.slane %v2513_v34, 4  ;;  %v2531_v47 = vadd.f32 %v2530_v61, %v2529_v28 }
 0x92a   :  { %v2506_v58 = vadd.f32 %v2505_v36, %v2504_v44  ;;  %v2523_v51 = vrot.slane %v2522_v55, 4 }
 0x92b   :  { %v2515_v40 = vadd.f32 %v2514_v42, %v2513_v34  ;;  %v2532_v2 = vrot.slane %v2531_v47, 4  ;;  %v9388_v42 = vld [vmem:[#allocation13 + $0x20] sm:$0xff]  }
 0x92c   :  { %v2507_v48 = vrot.slane %v2506_v58, 2  ;;  %v2524_v60 = vadd.f32 %v2523_v51, %v2522_v55  ;;  %8419 = vmatprep.subr.bf16.mxu1 %v9388_v42  ;;  %v9391_v51 = vld [vmem:[#allocation13 + $0x38] sm:$0x3f]  }
 0x92d   :  { %v2516_v3 = vrot.slane %v2515_v40, 2  ;;  %v2533_v11 = vadd.f32 %v2532_v2, %v2531_v47  ;;  %v9389_v47 = vld [vmem:[#allocation13 + $0x28] sm:$0xff]   ;;  %v9392_v2 = vld [vmem:[#allocation13] sm:$0xff]  }
 0x92e   :  { %v2508_v6 = vadd.f32 %v2507_v48, %v2506_v58  ;;  %v2525_v5 = vrot.slane %v2524_v60, 2  ;;  %v9390_v58 = vld [vmem:[#allocation13 + $0x30] sm:$0xff]  }
 0x92f   :  { %v2517_v17 = vadd.f32 %v2516_v3, %v2515_v40  ;;  %v2534_v33 = vrot.slane %v2533_v11, 2  ;;  %v2749_v40 = vsel %vm348_vm1, %v9391_v51, 0 }
 0x930   :  { %v2509_v45 = vrot.slane %v2508_v6, 1  ;;  %v2526_v52 = vadd.f32 %v2525_v5, %v2524_v60 }
 0x931   :  { %v2518_v56 = vrot.slane %v2517_v17, 1  ;;  %v2535_v30 = vadd.f32 %v2534_v33, %v2533_v11 }
 0x932   :  { %v2527_v53 = vrot.slane %v2526_v52, 1  ;;  %v2510_v4 = vadd.f32 %v2509_v45, %v2508_v6 }
 0x933   :  { %v2519_v43 = vadd.f32 %v2518_v56, %v2517_v17  ;;  %v2536_v28 = vrot.slane %v2535_v30, 1 }
 0x934   :  { %v2528_v44 = vadd.f32 %v2527_v53, %v2526_v52 }
 0x935   :  { %v2537_v36 = vadd.f32 %v2536_v28, %v2535_v30  ;;  %v2542_v34 = vsel %vm777_vm12, %v2519_v43, %v2510_v4 }
 0x936   :  { %v2543_v55 = vsel %vm779_vm13, %v2528_v44, %v2542_v34 }
 0x937   :  { %v2544_v61 = vsel %vm781_vm14, %v2537_v36, %v2543_v55 }
 0x938   :  { %8417 = vmatmul.mubr.msk.f32.vlgmr.msra.gmra.mrb[14].mxu1 %vm335_vm0, %v2544_v61  ;;  %v9393_v61 = vld [vmem:[#allocation13 + $0x8] sm:$0xff]  }
 0x939   :  { %8420 = vmatpush3.bf16.msra.mxu1 %v9388_v42  ;;  %v9394_v42 = vld [vmem:[#allocation13 + $0x10] sm:$0xff]  }
 0x93a   :  { %8421 = vmatprep.subr.bf16.mxu1 %v9389_v47 }
 0x93d   :  { %8422 = vmatpush3.bf16.msra.mxu1 %v9389_v47 }
 0x93e   :  { %8423 = vmatprep.subr.bf16.mxu1 %v9390_v58 }
 0x941   :  { %8424 = vmatpush3.bf16.msra.mxu1 %v9390_v58 }
 0x942   :  { %9312 = vmatprep.subr.msk.bf16.mxu1 %vm348_vm1, %v9391_v51 }
 0x945   :  { %8426 = vmatpush3.bf16.msra.mxu1 %v2749_v40 }
 0x946   :  { %8435 = vmatprep.subr.bf16.mxu1 %v9392_v2 }
 0xa0b   :  { %v2613_v48 = vpop.f32.mrb[14].mxu1 }
 0xa0c   :  { %v2614_v60 = vadd.f32 1e-05, %v2613_v48  ;;  %v8418_v3 = vpop.f32.mrb[15].mxu1 }
 0xa0e   :  { %9495 = vrsqrt.f32 %v2614_v60 }
 0xa18   :  { %v9496_v11 = vpop.eup %9495 }
 0xa19   :  { %v2625_v6 = vrot.slane %v9496_v11, %v10448_v14 }
 0xa1b   :  { %v2626_v5 = vcombine.high %v2625_v6, %v2625_v6  ;;  %v2633_v17 = vrot.slane %v2625_v6, %v10448_v14 }
 0xa1d   :  { %v2640_v33 = vrot.slane %v2626_v5, %v10448_v14  ;;  %v2646_v45 = vrot.slane %v2633_v17, %v10451_v25  ;;  %v2641_v52 = vcombine.high %v2633_v17, %v2633_v17  ;;  %v9396_v5 = vld [vmem:[#allocation13 + $0x40] sm:$0xff]  }
 0xa1f   :  { %v2650_v56 = vrot.slane %v2640_v33, %v10451_v25  ;;  %v11008_v30 = vmul.f32 %v2646_v45, %v10944_v59  ;;  %v11011_v53 = vmul.f32 %v2646_v45, %v10957_v57  ;;  %v2654_v4 = vrot.slane %v2641_v52, %v10451_v25 }
 0xa20   :  { %v2642_v43 = vcombine.high %v2640_v33, %v2640_v33 }
 0xa21   :  { %v2700_v28 = vpack.c.bf16 %v11011_v53, %v11008_v30  ;;  %v11017_v44 = vmul.f32 %v2650_v56, %v10949_v31  ;;  %v11020_v36 = vmul.f32 %v2650_v56, %v10966_v0  ;;  %v11023_v34 = vmul.f32 %v2654_v4, %v10953_v63 }
 0xa22   :  { %v11026_v59 = vmul.f32 %v2654_v4, %v10971_v39  ;;  %v2658_v57 = vrot.slane %v2642_v43, %v10451_v25  ;;  %v2672_v47 = vrot.slane %v11008_v30, 7  ;;  %v2673_v58 = vrot.slane %v11011_v53, 7  ;;  %v9397_v4 = vld [vmem:[#allocation13 + $0x48] sm:$0xff]  }
 0xa23   :  { %8427 = vmatprep.mubr.msk.bf16.mxu1 %vm335_vm0, %v2700_v28  ;;  %v2701_v55 = vpack.c.bf16 %v11020_v36, %v11017_v44  ;;  %v2675_v48 = vrot.slane %v11020_v36, 7  ;;  %v2676_v3 = vrot.slane %v11023_v34, 7 }
 0xa24   :  { %v2702_v31 = vpack.c.bf16 %v11026_v59, %v11023_v34  ;;  %v11035_v0 = vmul.f32 %v2658_v57, %v10978_v37  ;;  %v11041_v39 = vmul.f32 %v2658_v57, %v10962_v27  ;;  %v2686_v40 = vsel %vm278_vm2, %v2672_v47, %v2673_v58 }
 0xa25   :  { %8428 = vmatmul.mubr.msk.bf16.vlgmr.msra.gmra.mrb[16].mxu1 %vm335_vm0, %v2701_v55  ;;  %v2674_v27 = vrot.slane %v11017_v44, 7  ;;  %v2677_v11 = vrot.slane %v11026_v59, 7  ;;  %v2683_v52 = vsel %vm278_vm2, %v2675_v48, %v2676_v3  ;;  %v2921_v57 = vrot.slane %v11017_v44, 1  ;;  %v9398_v55 = vld [vmem:[#allocation13 + $0x50] sm:$0xff]  }
 0xa26   :  { %8431 = vmatprep.mubr.msk.bf16.mxu1 %vm335_vm0, %v2702_v31  ;;  %8436 = vmatpush3.bf16.msra.mxu1 %v9392_v2  ;;  %v2679_v63 = vrot.slane %v11035_v0, 7  ;;  %v2703_v51 = vpack.c.bf16 %v11035_v0, %v11041_v39  ;;  %v9395_v2 = vld [vmem:[#allocation13 + $0x18] sm:$0x3f]   ;;  %v2678_v28 = vrot.slane %v11041_v39, 7  ;;  %v2920_v31 = vrot.slane %v11011_v53, 1 }
 0xa27   :  { %8437 = vmatprep.subr.bf16.mxu1 %v9393_v61  ;;  %v2852_v6 = vsel %vm348_vm1, %v9395_v2, 0  ;;  %v2685_v17 = vsel %vm278_vm2, %v2673_v58, %v2674_v27  ;;  %v2684_v33 = vsel %vm278_vm2, %v2674_v27, %v2675_v48  ;;  %v2682_v45 = vsel %vm278_vm2, %v2676_v3, %v2677_v11 }
 0xa28   :  { %v2687_v37 = vsel %vm278_vm2, %v2679_v63, %v2672_v47  ;;  %v2689_v56 = vpack.c.bf16 %v2684_v33, %v2685_v17  ;;  %v2690_v43 = vpack.c.bf16 %v2682_v45, %v2683_v52  ;;  %v2681_v47 = vsel %vm278_vm2, %v2677_v11, %v2678_v28  ;;  %v7433_v17 = vld [vmem:[#allocation14] ss:$0 sm:$0xff] }
 0xa29   :  { %v2688_v60 = vpack.c.bf16 %v2686_v40, %v2687_v37  ;;  %v2932_v58 = vsel %vm528_vm3, %v2920_v31, %v2921_v57  ;;  %v2923_v53 = vrot.slane %v11023_v34, 1  ;;  %v2924_v27 = vrot.slane %v11026_v59, 1 }
 0xa2a   :  { %8438 = vmatpush3.bf16.msra.mxu1 %v9393_v61  ;;  %v2919_v61 = vrot.slane %v11008_v30, 1  ;;  %v2922_v30 = vrot.slane %v11020_v36, 1  ;;  %v2926_v11 = vrot.slane %v11035_v0, 1 }
 0xa2b   :  { %8439 = vmatprep.subr.bf16.mxu1 %v9394_v42 }
 0xa2c   :  { %v2933_v37 = vsel %vm528_vm3, %v2919_v61, %v2920_v31  ;;  %v2931_v48 = vsel %vm528_vm3, %v2921_v57, %v2922_v30  ;;  %v2930_v36 = vsel %vm528_vm3, %v2922_v30, %v2923_v53 }
 0xa2d   :  { %8432 = vmatmul.mubr.msk.bf16.gmra.mrb[20].mxu1 %vm335_vm0, %v2703_v51  ;;  %v9399_v51 = vld [vmem:[#allocation13 + $0x58] sm:$0x3f]   ;;  %v2935_v40 = vpack.c.bf16 %v2932_v58, %v2933_v37 }
 0xa2e   :  { %8440 = vmatpush3.bf16.msra.mxu1 %v9394_v42  ;;  %8443 = vmatprep.mubr.msk.bf16.mxu1 %vm335_vm0, %v2688_v60  ;;  %v2680_v42 = vsel %vm278_vm2, %v2678_v28, %v2679_v63  ;;  %v2925_v63 = vrot.slane %v11041_v39, 1  ;;  %v2936_v39 = vpack.c.bf16 %v2930_v36, %v2931_v48  ;;  %v2929_v60 = vsel %vm528_vm3, %v2923_v53, %v2924_v27 }
 0xa2f   :  { %9313 = vmatprep.subr.msk.bf16.mxu1 %vm348_vm1, %v9395_v2  ;;  %v2691_v44 = vpack.c.bf16 %v2680_v42, %v2681_v47  ;;  %v2984_v2 = vsel %vm348_vm1, %v9399_v51, 0  ;;  %vm3996_vm2 = vcmp.lt.s32.totalorder %v10179_v8, 4 }
 0xa30   :  { %v2928_v34 = vsel %vm528_vm3, %v2924_v27, %v2925_v63  ;;  %v2927_v59 = vsel %vm528_vm3, %v2925_v63, %v2926_v11 }
 0xa31   :  { %v2937_v3 = vpack.c.bf16 %v2928_v34, %v2929_v60 }
 0xa32   :  { %8442 = vmatpush3.bf16.msra.mxu1 %v2852_v6  ;;  %v2934_v6 = vsel %vm528_vm3, %v2926_v11, %v2919_v61 }
 0xa33   :  { %8451 = vmatprep.subr.bf16.mxu1 %v9396_v5 }
 0xa35   :  { %8444 = vmatmul.mubr.msk.bf16.vlgmr.msra.gmra.mrb[16].mxu1 %vm335_vm0, %v2689_v56 }
 0xa36   :  { %8447 = vmatprep.mubr.msk.bf16.mxu1 %vm335_vm0, %v2690_v43  ;;  %8452 = vmatpush3.bf16.msra.mxu1 %v9396_v5  ;;  %v2938_v5 = vpack.c.bf16 %v2934_v6, %v2927_v59 }
 0xa37   :  { %8453 = vmatprep.subr.bf16.mxu1 %v9397_v4 }
 0xa3a   :  { %8454 = vmatpush3.bf16.msra.mxu1 %v9397_v4 }
 0xa3b   :  { %8455 = vmatprep.subr.bf16.mxu1 %v9398_v55 }
 0xa3d   :  { %8448 = vmatmul.mubr.msk.bf16.gmra.mrb[20].mxu1 %vm335_vm0, %v2691_v44 }
 0xa3e   :  { %8456 = vmatpush3.bf16.msra.mxu1 %v9398_v55  ;;  %8459 = vmatprep.mubr.msk.bf16.mxu1 %vm335_vm0, %v2935_v40 }
 0xa3f   :  { %9314 = vmatprep.subr.msk.bf16.mxu1 %vm348_vm1, %v9399_v51 }
 0xa42   :  { %8458 = vmatpush3.bf16.msra.mxu1 %v2984_v2 }
 0xa43   :  { %9065 = vmatprep.subr.bf16.mxu1 %v9871_v10 }
 0xa45   :  { %8460 = vmatmul.mubr.msk.bf16.vlgmr.msra.gmra.mrb[16].mxu1 %vm335_vm0, %v2936_v39 }
 0xa46   :  { %8463 = vmatprep.mubr.msk.bf16.mxu1 %vm335_vm0, %v2937_v3 }
 0xa4d   :  { %8464 = vmatmul.mubr.msk.bf16.gmra.mrb[20].mxu1 %vm335_vm0, %v2938_v5 }
 0xa4e   :  { %8607 = vmatprep.mubr.msk.f32.mxu1 %vm9872_vm5, %v9873_v18 }
 0xb18   :  { %v8461_v33 = vpop.f32.mrb[16].mxu1 }
 0xb19   :  { %v3067_v45 = vadd.f32 %v8461_v33, %v7433_v17  ;;  %v3020_v0 = vpop.f32.mrb[17].mxu1 }
 0xb1a   :  { %v3065_v52 = vadd.f32 %v7433_v17, %v3020_v0  ;;  %v8462_v56 = vpop.f32.mrb[18].mxu1 }
 0xb1b   :  { %v3075_v4 = vmul.f32 0.01, %v3067_v45  ;;  %v3068_v43 = vadd.f32 %v8462_v56, %v7433_v17  ;;  %v3023_v28 = vpop.f32.mrb[19].mxu1 }
 0xb1c   :  { %v3073_v57 = vmul.f32 0.01, %v3065_v52  ;;  %v3066_v55 = vadd.f32 %v7433_v17, %v3023_v28 }
 0xb1d   :  { %v3076_v31 = vmul.f32 0.01, %v3068_v43  ;;  %v11108_v42 = vmax.f32 %v3067_v45, %v3075_v4 }
 0xb1e   :  { %v3074_v61 = vmul.f32 0.01, %v3066_v55  ;;  %v11110_v47 = vmax.f32 %v3065_v52, %v3073_v57 }
 0xb1f   :  { %v3084_v58 = vmax.f32 %v3068_v43, %v3076_v31  ;;  %v3106_v40 = vsel %vm335_vm0, %v11108_v42, 0.0 }
 0xb20   :  { %v3082_v44 = vmax.f32 %v3066_v55, %v3074_v61  ;;  %v8465_v37 = vpop.f32.mrb[20].mxu1  ;;  %v3097_v48 = vsel %vm335_vm0, %v11110_v47, 0.0 }
 0xb21   :  { %v11113_v51 = vmul.f32 %v10370_v41, %v3084_v58  ;;  %v3071_v30 = vadd.f32 %v8465_v37, %v7433_v17  ;;  %v3036_v53 = vpop.f32.mrb[21].mxu1 }
 0xb22   :  { %v11118_v63 = vmul.f32 %v10376_v46, %v3082_v44  ;;  %v3069_v2 = vadd.f32 %v7433_v17, %v3036_v53  ;;  %v8466_v27 = vpop.f32.mrb[22].mxu1 }
 0xb23   :  { %v3107_v36 = vsel %vm335_vm0, %v11113_v51, 0.0  ;;  %v3079_v34 = vmul.f32 0.01, %v3071_v30  ;;  %v3072_v39 = vadd.f32 %v8466_v27, %v7433_v17  ;;  %v3039_v41 = vpop.f32.mrb[23].mxu1 }
 0xb24   :  { %v3108_v60 = vadd.f32 %v3107_v36, %v3106_v40  ;;  %v3098_v3 = vsel %vm335_vm0, %v11118_v63, 0.0  ;;  %v3077_v11 = vmul.f32 0.01, %v3069_v2  ;;  %v3070_v59 = vadd.f32 %v7433_v17, %v3039_v41 }
 0xb25   :  { %v3099_v6 = vadd.f32 %v3098_v3, %v3097_v48  ;;  %v3080_v46 = vmul.f32 0.01, %v3072_v39  ;;  %v11126_v0 = vmax.f32 %v3071_v30, %v3079_v34 }
 0xb26   :  { %v3109_v5 = vrot.slane %v3108_v60, 4  ;;  %v3078_v33 = vmul.f32 0.01, %v3070_v59  ;;  %v3085_v4 = vmax.f32 %v3069_v2, %v3077_v11 }
 0xb27   :  { %v3100_v45 = vrot.slane %v3099_v6, 4  ;;  %v3088_v52 = vmax.f32 %v3072_v39, %v3080_v46  ;;  %v3124_v61 = vsel %vm335_vm0, %v11126_v0, 0.0 }
 0xb28   :  { %v3110_v56 = vadd.f32 %v3109_v5, %v3108_v60  ;;  %v3086_v43 = vmax.f32 %v3070_v59, %v3078_v33  ;;  %v3115_v44 = vsel %vm335_vm0, %v3085_v4, 0.0 }
 0xb29   :  { %v3101_v28 = vadd.f32 %v3100_v45, %v3099_v6  ;;  %v11129_v57 = vmul.f32 %v10407_v7, %v3088_v52 }
 0xb2a   :  { %v3111_v55 = vrot.slane %v3110_v56, 2  ;;  %v11132_v31 = vmul.f32 %v10414_v15, %v3086_v43 }
 0xb2b   :  { %v3102_v17 = vrot.slane %v3101_v28, 2  ;;  %v3125_v58 = vsel %vm335_vm0, %v11129_v57, 0.0 }
 0xb2c   :  { %v3126_v37 = vadd.f32 %v3125_v58, %v3124_v61  ;;  %v3116_v30 = vsel %vm335_vm0, %v11132_v31, 0.0  ;;  %v3112_v7 = vadd.f32 %v3111_v55, %v3110_v56 }
 0xb2d   :  { %v3117_v53 = vadd.f32 %v3116_v30, %v3115_v44  ;;  %v3103_v40 = vadd.f32 %v3102_v17, %v3101_v28 }
 0xb2e   :  { %v3127_v2 = vrot.slane %v3126_v37, 4  ;;  %v3113_v36 = vrot.slane %v3112_v7, 1 }
 0xb2f   :  { %v3118_v27 = vrot.slane %v3117_v53, 4  ;;  %v3104_v34 = vrot.slane %v3103_v40, 1 }
 0xb30   :  { %v3128_v15 = vadd.f32 %v3127_v2, %v3126_v37  ;;  %v3114_v11 = vadd.f32 %v3113_v36, %v3112_v7 }
 0xb31   :  { %v3119_v48 = vadd.f32 %v3118_v27, %v3117_v53  ;;  %v3105_v59 = vadd.f32 %v3104_v34, %v3103_v40 }
 0xb32   :  { %v3129_v39 = vrot.slane %v3128_v15, 2 }
 0xb33   :  { %v3120_v41 = vrot.slane %v3119_v48, 2  ;;  %v3137_v45 = vsel %vm777_vm12, %v3114_v11, %v3105_v59 }
 0xb34   :  { %v3130_v60 = vadd.f32 %v3129_v39, %v3128_v15 }
 0xb35   :  { %v3121_v3 = vadd.f32 %v3120_v41, %v3119_v48 }
 0xb36   :  { %v3131_v6 = vrot.slane %v3130_v60, 1 }
 0xb37   :  { %v3122_v46 = vrot.slane %v3121_v3, 1 }
 0xb38   :  { %v3132_v33 = vadd.f32 %v3131_v6, %v3130_v60 }
 0xb39   :  { %v3123_v5 = vadd.f32 %v3122_v46, %v3121_v3 }
 0xb3b   :  { %v3138_v52 = vsel %vm779_vm13, %v3123_v5, %v3137_v45 }
 0xb3c   :  { %v3139_v56 = vsel %vm781_vm14, %v3132_v33, %v3138_v52 }
 0xb3d   :  { %8484 = vmatmul.mubr.msk.f32.vlgmr.msra.gmra.mrb[20].mxu0 %vm335_vm0, %v3139_v56 }
 0xb3e   :  { %9054 = vmatpush3.bf16.msra.mxu0 %v10309_v9  ;;  %8502 = vmatprep.mubr.msk.f32.mxu0 %vm9872_vm5, %v9873_v18 }
 0xb3f   :  { %9055 = vmatprep.subr.bf16.mxu0 %v9871_v10 }
 0xb42   :  { %9057 = vmatpush3.bf16.msra.mxu0 %v10317_v12 }
 0xb43   :  { %9058 = vmatprep.subr.bf16.mxu0 %v9871_v10 }
 0xb46   :  { %9060 = vmatpush3.bf16.msra.mxu0 %v10323_v16 }
 0xb47   :  { %9061 = vmatprep.subr.bf16.mxu0 %v9871_v10 }
 0xb4a   :  { %9064 = vmatpush3.bf16.msk.msra.mxu0 %vm10335_vm7, %v10330_v19  ;;  %vm3855_vm7 = vcmp.lt.s32.totalorder %v10179_v8, 5 }
 0xc10   :  { %v3208_v43 = vpop.f32.mrb[20].mxu0 }
 0xc11   :  { %v3219_v9 = vrot.slane %v3208_v43, %v10448_v14  ;;  %v8485_v28 = vpop.f32.mrb[21].mxu0 }
 0xc13   :  { %v3220_v55 = vcombine.high %v3219_v9, %v3219_v9  ;;  %v3227_v17 = vrot.slane %v3219_v9, %v10448_v14 }
 0xc15   :  { %v3234_v61 = vrot.slane %v3220_v55, %v10448_v14  ;;  %v3235_v12 = vcombine.high %v3227_v17, %v3227_v17  ;;  %v3240_v58 = vrot.slane %v3227_v17, %v10451_v25 }
 0xc17   :  { %v3236_v44 = vcombine.high %v3234_v61, %v3234_v61  ;;  %v3244_v16 = vrot.slane %v3234_v61, %v10451_v25  ;;  %v3248_v37 = vrot.slane %v3235_v12, %v10451_v25  ;;  %v11163_v20 = vsub.f32 %v11110_v47, %v3240_v58 }
 0xc18   :  { %v3258_v19 = vsub.f32 %v11118_v63, %v3240_v58 }
 0xc19   :  { %v3252_v30 = vrot.slane %v3236_v44, %v10451_v25  ;;  %v11168_v53 = vsub.f32 %v11108_v42, %v3244_v16  ;;  %v3260_v7 = vsub.f32 %v11113_v51, %v3244_v16  ;;  %v11171_v40 = vsub.f32 %v3085_v4, %v3248_v37 }
 0xc1a   :  { %v3262_v2 = vsub.f32 %v11132_v31, %v3248_v37  ;;  %v11175_v27 = vmul.f32 %v10459_v38, %v3258_v19  ;;  %v3273_v47 = vmul.f32 %v11163_v20, %v11163_v20 }
 0xc1b   :  { %v11180_v15 = vsub.f32 %v11126_v0, %v3252_v30  ;;  %v3264_v63 = vsub.f32 %v11129_v57, %v3252_v30  ;;  %v11184_v42 = vmul.f32 %v10459_v38, %v3260_v7  ;;  %v3275_v51 = vmul.f32 %v11168_v53, %v11168_v53 }
 0xc1c   :  { %v11189_v4 = vmul.f32 %v10459_v38, %v3262_v2  ;;  %v3274_v31 = vmul.f32 %v11175_v27, %v11175_v27  ;;  %v3277_v48 = vmul.f32 %v11171_v40, %v11171_v40  ;;  %v3281_v39 = vsel %vm335_vm0, %v3273_v47, 0.0 }
 0xc1d   :  { %v11196_v0 = vmul.f32 %v10459_v38, %v3264_v63  ;;  %v3276_v57 = vmul.f32 %v11184_v42, %v11184_v42  ;;  %v3279_v36 = vmul.f32 %v11180_v15, %v11180_v15  ;;  %v3290_v38 = vsel %vm335_vm0, %v3275_v51, 0.0 }
 0xc1e   :  { %v3278_v34 = vmul.f32 %v11189_v4, %v11189_v4  ;;  %v3282_v41 = vsel %vm335_vm0, %v3274_v31, 0.0  ;;  %v3299_v6 = vsel %vm335_vm0, %v3277_v48, 0.0 }
 0xc1f   :  { %v3280_v60 = vmul.f32 %v11196_v0, %v11196_v0  ;;  %v3283_v3 = vadd.f32 %v3282_v41, %v3281_v39  ;;  %v3291_v11 = vsel %vm335_vm0, %v3276_v57, 0.0  ;;  %v3308_v45 = vsel %vm335_vm0, %v3279_v36, 0.0 }
 0xc20   :  { %v3292_v59 = vadd.f32 %v3291_v11, %v3290_v38  ;;  %v3300_v46 = vsel %vm335_vm0, %v3278_v34, 0.0  ;;  %v9401_v38 = vld [vmem:[%s12764_s9 + $0x28] sm:$0xff]   ;;  %v9402_v11 = vld [vmem:[%s12764_s9 + $0x30] sm:$0xff]  }
 0xc21   :  { %v3284_v5 = vrot.slane %v3283_v3, 4  ;;  %v3301_v33 = vadd.f32 %v3300_v46, %v3299_v6  ;;  %v3309_v52 = vsel %vm335_vm0, %v3280_v60, 0.0  ;;  %v9404_v46 = vld [vmem:[%s12764_s9] sm:$0xff]  }
 0xc22   :  { %v3293_v56 = vrot.slane %v3292_v59, 4  ;;  %v3310_v43 = vadd.f32 %v3309_v52, %v3308_v45 }
 0xc23   :  { %v3285_v9 = vadd.f32 %v3284_v5, %v3283_v3  ;;  %v3302_v28 = vrot.slane %v3301_v33, 4  ;;  %v9400_v3 = vld [vmem:[%s12764_s9 + $0x20] sm:$0xff]  }
 0xc24   :  { %v3294_v55 = vadd.f32 %v3293_v56, %v3292_v59  ;;  %v3311_v17 = vrot.slane %v3310_v43, 4  ;;  %8505 = vmatprep.subr.bf16.mxu0 %v9400_v3  ;;  %v9403_v59 = vld [vmem:[%s12764_s9 + $0x38] sm:$0x3f]  }
 0xc25   :  { %v3286_v61 = vrot.slane %v3285_v9, 2  ;;  %v3303_v12 = vadd.f32 %v3302_v28, %v3301_v33  ;;  %v3536_v6 = vsel %vm348_vm1, %v9403_v59, 0 }
 0xc26   :  { %v3295_v58 = vrot.slane %v3294_v55, 2  ;;  %v3312_v44 = vadd.f32 %v3311_v17, %v3310_v43 }
 0xc27   :  { %v3287_v16 = vadd.f32 %v3286_v61, %v3285_v9  ;;  %v3304_v37 = vrot.slane %v3303_v12, 2 }
 0xc28   :  { %v3296_v19 = vadd.f32 %v3295_v58, %v3294_v55  ;;  %v3313_v30 = vrot.slane %v3312_v44, 2 }
 0xc29   :  { %v3288_v7 = vrot.slane %v3287_v16, 1  ;;  %v3305_v2 = vadd.f32 %v3304_v37, %v3303_v12 }
 0xc2a   :  { %v3297_v47 = vrot.slane %v3296_v19, 1  ;;  %v3314_v63 = vadd.f32 %v3313_v30, %v3312_v44 }
 0xc2b   :  { %v3306_v51 = vrot.slane %v3305_v2, 1  ;;  %v3289_v31 = vadd.f32 %v3288_v7, %v3287_v16 }
 0xc2c   :  { %v3298_v48 = vadd.f32 %v3297_v47, %v3296_v19  ;;  %v3315_v57 = vrot.slane %v3314_v63, 1 }
 0xc2d   :  { %v3307_v36 = vadd.f32 %v3306_v51, %v3305_v2 }
 0xc2e   :  { %v3316_v34 = vadd.f32 %v3315_v57, %v3314_v63  ;;  %v3321_v39 = vsel %vm777_vm12, %v3298_v48, %v3289_v31 }
 0xc2f   :  { %v3322_v41 = vsel %vm779_vm13, %v3307_v36, %v3321_v39 }
 0xc30   :  { %v3323_v60 = vsel %vm781_vm14, %v3316_v34, %v3322_v41  ;;  %v9405_v41 = vld [vmem:[%s12764_s9 + $0x8] sm:$0xff]  }
 0xc31   :  { %8503 = vmatmul.mubr.msk.f32.vlgmr.msra.gmra.mrb[22].mxu0 %vm335_vm0, %v3323_v60 }
 0xc32   :  { %8506 = vmatpush3.bf16.msra.mxu0 %v9400_v3 }
 0xc33   :  { %8507 = vmatprep.subr.bf16.mxu0 %v9401_v38 }
 0xc36   :  { %8508 = vmatpush3.bf16.msra.mxu0 %v9401_v38  ;;  %v9406_v38 = vld [vmem:[%s12764_s9 + $0x10] sm:$0xff]  }
 0xc37   :  { %8509 = vmatprep.subr.bf16.mxu0 %v9402_v11 }
 0xc3a   :  { %8510 = vmatpush3.bf16.msra.mxu0 %v9402_v11 }
 0xc3b   :  { %9315 = vmatprep.subr.msk.bf16.mxu0 %vm348_vm1, %v9403_v59 }
 0xc3e   :  { %8512 = vmatpush3.bf16.msra.mxu0 %v3536_v6 }
 0xc3f   :  { %8521 = vmatprep.subr.bf16.mxu0 %v9404_v46 }
 0xd04   :  { %v3392_v5 = vpop.f32.mrb[22].mxu0 }
 0xd05   :  { %v3393_v33 = vadd.f32 1e-05, %v3392_v5  ;;  %v8504_v45 = vpop.f32.mrb[23].mxu0  ;;  %v9407_v5 = vld [vmem:[%s12764_s9 + $0x18] sm:$0x3f]  }
 0xd06   :  { %v9408_v45 = vld [vmem:[%s12764_s9 + $0x40] sm:$0xff]  }
 0xd07   :  { %9497 = vrsqrt.f32 %v3393_v33  ;;  %v3639_v33 = vsel %vm348_vm1, %v9407_v5, 0 }
 0xd11   :  { %v9498_v52 = vpop.eup %9497 }
 0xd12   :  { %v3404_v56 = vrot.slane %v9498_v52, %v10448_v14 }
 0xd14   :  { %v3405_v43 = vcombine.high %v3404_v56, %v3404_v56  ;;  %v3412_v9 = vrot.slane %v3404_v56, %v10448_v14 }
 0xd16   :  { %v3419_v28 = vrot.slane %v3405_v43, %v10448_v14  ;;  %v3420_v55 = vcombine.high %v3412_v9, %v3412_v9  ;;  %v3425_v17 = vrot.slane %v3412_v9, %v10451_v25 }
 0xd18   :  { %v3421_v61 = vcombine.high %v3419_v28, %v3419_v28  ;;  %v3429_v12 = vrot.slane %v3419_v28, %v10451_v25  ;;  %v3433_v58 = vrot.slane %v3420_v55, %v10451_v25  ;;  %v3442_v44 = vmul.f32 %v3425_v17, %v11163_v20 }
 0xd19   :  { %v3443_v16 = vmul.f32 %v3425_v17, %v11175_v27 }
 0xd1a   :  { %v3437_v37 = vrot.slane %v3421_v61, %v10451_v25  ;;  %v3444_v19 = vmul.f32 %v3429_v12, %v11168_v53  ;;  %v3445_v30 = vmul.f32 %v3429_v12, %v11184_v42  ;;  %v3446_v7 = vmul.f32 %v3433_v58, %v11171_v40 }
 0xd1b   :  { %v3447_v2 = vmul.f32 %v3433_v58, %v11189_v4  ;;  %v11249_v47 = vadd.f32 %v3442_v44, %v10882_v1  ;;  %v11252_v63 = vadd.f32 %v3443_v16, %v10892_v35 }
 0xd1c   :  { %v3448_v20 = vmul.f32 %v3437_v37, %v11180_v15  ;;  %v3449_v27 = vmul.f32 %v3437_v37, %v11196_v0  ;;  %v11257_v51 = vadd.f32 %v3444_v19, %v10879_v54  ;;  %v11260_v53 = vadd.f32 %v3445_v30, %v10887_v50  ;;  %v9409_v19 = vld [vmem:[%s12764_s9 + $0x48] sm:$0xff]  }
 0xd1d   :  { %v11263_v40 = vadd.f32 %v3446_v7, %v10905_v13  ;;  %v11266_v42 = vadd.f32 %v3447_v2, %v10912_v49  ;;  %v3471_v1 = vrot.slane %v11249_v47, 1  ;;  %v3472_v35 = vrot.slane %v11252_v63, 1 }
 0xd1e   :  { %v11271_v15 = vadd.f32 %v3448_v20, %v10901_v62  ;;  %v3473_v4 = vrot.slane %v11257_v51, 1  ;;  %v3474_v54 = vrot.slane %v11260_v53, 1  ;;  %v11276_v50 = vadd.f32 %v3449_v27, %v10909_v23 }
 0xd1f   :  { %v3475_v13 = vrot.slane %v11263_v40, 1  ;;  %v3476_v0 = vrot.slane %v11266_v42, 1  ;;  %v3485_v31 = vsel %vm528_vm3, %v3471_v1, %v3472_v35  ;;  %v3990_v52 = vrot.slane %v11257_v51, 4 }
 0xd20   :  { %v3484_v49 = vsel %vm528_vm3, %v3472_v35, %v3473_v4  ;;  %v3483_v62 = vsel %vm528_vm3, %v3473_v4, %v3474_v54  ;;  %v3477_v48 = vrot.slane %v11271_v15, 1  ;;  %v3478_v3 = vrot.slane %v11276_v50, 1  ;;  %v9410_v35 = vld [vmem:[%s12764_s9 + $0x50] sm:$0xff]  }
 0xd21   :  { %v3487_v57 = vpack.c.bf16 %v3484_v49, %v3485_v31  ;;  %v3482_v23 = vsel %vm528_vm3, %v3474_v54, %v3475_v13  ;;  %v3481_v39 = vsel %vm528_vm3, %v3475_v13, %v3476_v0  ;;  %v3991_v56 = vrot.slane %v11260_v53, 4  ;;  %v9411_v31 = vld [vmem:[%s12764_s9 + $0x58] sm:$0x3f]  }
 0xd22   :  { %v3488_v36 = vpack.c.bf16 %v3482_v23, %v3483_v62  ;;  %v3480_v34 = vsel %vm528_vm3, %v3476_v0, %v3477_v48  ;;  %v3479_v11 = vsel %vm528_vm3, %v3477_v48, %v3478_v3  ;;  %v3486_v59 = vsel %vm528_vm3, %v3478_v3, %v3471_v1 }
 0xd23   :  { %8513 = vmatprep.mubr.msk.bf16.mxu0 %vm335_vm0, %v3487_v57  ;;  %v3489_v60 = vpack.c.bf16 %v3480_v34, %v3481_v39  ;;  %v3490_v6 = vpack.c.bf16 %v3486_v59, %v3479_v11  ;;  %v3992_v43 = vrot.slane %v11263_v40, 4  ;;  %v3993_v9 = vrot.slane %v11266_v42, 4  ;;  %v9412_v34 = vld [vmem:[%s12764_s9 + $0x60] sm:$0xff]   ;;  %v9413_v59 = vld [vmem:[%s12764_s9 + $0x68] sm:$0xff]  }
 0xd24   :  { %8514 = vmatmul.mubr.msk.bf16.vlgmr.msra.gmra.mrb[24].mxu0 %vm335_vm0, %v3488_v36  ;;  %v3994_v28 = vrot.slane %v11271_v15, 4  ;;  %v3988_v55 = vrot.slane %v11249_v47, 4  ;;  %v11330_v17 = vsel %vm3996_vm2, %v3990_v52, %v3991_v56  ;;  %v3995_v12 = vrot.slane %v11276_v50, 4 }
 0xd25   :  { %8517 = vmatprep.mubr.msk.bf16.mxu0 %vm335_vm0, %v3489_v60  ;;  %8522 = vmatpush3.bf16.msra.mxu0 %v9404_v46  ;;  %v3459_v46 = vpack.c.bf16 %v11252_v63, %v11249_v47  ;;  %v11334_v61 = vsel %vm3996_vm2, %v3991_v56, %v3992_v43  ;;  %v11345_v16 = vsel %vm3996_vm2, %v3992_v43, %v3993_v9  ;;  %v3708_v1 = vrot.slane %v11257_v51, 2 }
 0xd26   :  { %8523 = vmatprep.subr.bf16.mxu0 %v9405_v41  ;;  %v4006_v58 = vpack.c.bf16 %v11334_v61, %v11330_v17  ;;  %v11341_v44 = vsel %vm3996_vm2, %v3993_v9, %v3994_v28  ;;  %v3460_v37 = vpack.c.bf16 %v11260_v53, %v11257_v51  ;;  %v11356_v7 = vsel %vm3996_vm2, %v3994_v28, %v3995_v12  ;;  %v4193_v17 = vld [vmem:[%s12773_s18 + $0x10] sm:$0xff]  ;;  %v4194_v61 = vld [vmem:[%s12773_s18 + $0x18] sm:$0xff] }
 0xd27   :  { %v4007_v30 = vpack.c.bf16 %v11341_v44, %v11345_v16  ;;  %v11362_v2 = vsel %vm3996_vm2, %v3995_v12, %v3988_v55  ;;  %v3461_v20 = vpack.c.bf16 %v11266_v42, %v11263_v40  ;;  %v3706_v4 = vrot.slane %v11249_v47, 2  ;;  %v4195_v44 = vld [vmem:[%s12773_s18 + $0x20] sm:$0xff]  ;;  %v4196_v16 = vld [vmem:[%s12773_s18 + $0x28] sm:$0xff] }
 0xd28   :  { %v4008_v27 = vpack.c.bf16 %v11362_v2, %v11356_v7  ;;  %v3707_v54 = vrot.slane %v11252_v63, 2  ;;  %v3462_v0 = vpack.c.bf16 %v11276_v50, %v11271_v15  ;;  %v3709_v62 = vrot.slane %v11260_v53, 2  ;;  %v4197_v7 = vld [vmem:[%s12773_s18 + $0x30] sm:$0xff]  ;;  %v4198_v2 = vld [vmem:[%s12773_s18 + $0x38] sm:$0xff] }
 0xd29   :  { %8524 = vmatpush3.bf16.msra.mxu0 %v9405_v41  ;;  %v3710_v57 = vrot.slane %v11263_v40, 2  ;;  %v3712_v23 = vrot.slane %v11271_v15, 2  ;;  %v3772_v36 = vsel %vm348_vm1, %v9411_v31, 0  ;;  %v3711_v39 = vrot.slane %v11266_v42, 2 }
 0xd2a   :  { %8525 = vmatprep.subr.bf16.mxu0 %v9406_v38  ;;  %v3720_v13 = vsel %vm3714_vm6, %v3707_v54, %v3708_v1  ;;  %v3721_v49 = vsel %vm3714_vm6, %v3706_v4, %v3707_v54  ;;  %v3719_v41 = vsel %vm3714_vm6, %v3708_v1, %v3709_v62  ;;  %v3848_v56 = vrot.slane %v11252_v63, 3 }
 0xd2b   :  { %v3723_v48 = vpack.c.bf16 %v3720_v13, %v3721_v49  ;;  %v3718_v60 = vsel %vm3714_vm6, %v3709_v62, %v3710_v57  ;;  %v3716_v3 = vsel %vm3714_vm6, %v3711_v39, %v3712_v23  ;;  %v3717_v11 = vsel %vm3714_vm6, %v3710_v57, %v3711_v39  ;;  %v9416_v13 = vld [vmem:[%s12764_s9 + $0x80] sm:$0xff]   ;;  %v9417_v62 = vld [vmem:[%s12764_s9 + $0x88] sm:$0xff]   ;;  %v9418_v57 = vld [vmem:[%s12764_s9 + $0x90] sm:$0xff]  }
 0xd2c   :  { %8518 = vmatmul.mubr.msk.bf16.gmra.mrb[28].mxu0 %vm335_vm0, %v3490_v6  ;;  %v3725_v6 = vpack.c.bf16 %v3716_v3, %v3717_v11  ;;  %v4199_v3 = vld [vmem:[%s12773_s18 + $0x40] sm:$0xff] }
 0xd2d   :  { %8526 = vmatpush3.bf16.msra.mxu0 %v9406_v38  ;;  %8529 = vmatprep.mubr.msk.bf16.mxu0 %vm335_vm0, %v3459_v46  ;;  %v3724_v38 = vpack.c.bf16 %v3718_v60, %v3719_v41  ;;  %v3849_v46 = vrot.slane %v11257_v51, 3 }
 0xd2e   :  { %9316 = vmatprep.subr.msk.bf16.mxu0 %vm348_vm1, %v9407_v5  ;;  %v3713_v5 = vrot.slane %v11276_v50, 2 }
 0xd2f   :  { %v3861_v28 = vsel %vm3855_vm7, %v3848_v56, %v3849_v46 }
 0xd30   :  { %v3715_v43 = vsel %vm3714_vm6, %v3712_v23, %v3713_v5  ;;  %v3722_v9 = vsel %vm3714_vm6, %v3713_v5, %v3706_v4  ;;  %v3853_v4 = vrot.slane %v11271_v15, 3  ;;  %v3989_v23 = vrot.slane %v11252_v63, 4  ;;  %v9419_v63 = vld [vmem:[%s12764_s9 + $0x98] sm:$0x3f]  }
 0xd31   :  { %8528 = vmatpush3.bf16.msra.mxu0 %v3639_v33  ;;  %v9414_v33 = vld [vmem:[%s12764_s9 + $0x70] sm:$0xff]   ;;  %v3726_v12 = vpack.c.bf16 %v3722_v9, %v3715_v43  ;;  %v4054_v51 = vsel %vm348_vm1, %v9419_v63, 0 }
 0xd32   :  { %8537 = vmatprep.subr.bf16.mxu0 %v9408_v45  ;;  %v4003_v41 = vsel %vm3996_vm2, %v3988_v55, %v3989_v23 }
 0xd34   :  { %8530 = vmatmul.mubr.msk.bf16.vlgmr.msra.gmra.mrb[24].mxu0 %vm335_vm0, %v3460_v37 }
 0xd35   :  { %8533 = vmatprep.mubr.msk.bf16.mxu0 %vm335_vm0, %v3461_v20  ;;  %8538 = vmatpush3.bf16.msra.mxu0 %v9408_v45  ;;  %v3847_v45 = vrot.slane %v11249_v47, 3  ;;  %v3850_v20 = vrot.slane %v11260_v53, 3  ;;  %v3852_v53 = vrot.slane %v11266_v42, 3  ;;  %v4191_v47 = vld [vmem:[%s12773_s18] sm:$0xff] }
 0xd36   :  { %8539 = vmatprep.subr.bf16.mxu0 %v9409_v19 }
 0xd37   :  { %v3862_v37 = vsel %vm3855_vm7, %v3847_v45, %v3848_v56  ;;  %v3857_v15 = vsel %vm3855_vm7, %v3852_v53, %v3853_v4 }
 0xd38   :  { %v3864_v1 = vpack.c.bf16 %v3861_v28, %v3862_v37 }
 0xd39   :  { %8540 = vmatpush3.bf16.msra.mxu0 %v9409_v19  ;;  %v9415_v19 = vld [vmem:[%s12764_s9 + $0x78] sm:$0x3f]  }
 0xd3a   :  { %8541 = vmatprep.subr.bf16.mxu0 %v9410_v35  ;;  %v3913_v54 = vsel %vm348_vm1, %v9415_v19, 0 }
 0xd3c   :  { %8534 = vmatmul.mubr.msk.bf16.gmra.mrb[28].mxu0 %vm335_vm0, %v3462_v0 }
 0xd3d   :  { %8542 = vmatpush3.bf16.msra.mxu0 %v9410_v35  ;;  %8545 = vmatprep.mubr.msk.bf16.mxu0 %vm335_vm0, %v3723_v48  ;;  %v3851_v35 = vrot.slane %v11263_v40, 3  ;;  %v3860_v40 = vsel %vm3855_vm7, %v3849_v46, %v3850_v20  ;;  %v3854_v48 = vrot.slane %v11276_v50, 3  ;;  %v4002_v50 = vsel %vm3996_vm2, %v3989_v23, %v3990_v52  ;;  %v4192_v52 = vld [vmem:[%s12773_s18 + $0x8] sm:$0xff] }
 0xd3e   :  { %9317 = vmatprep.subr.msk.bf16.mxu0 %vm348_vm1, %v9411_v31  ;;  %v4005_v60 = vpack.c.bf16 %v4002_v50, %v4003_v41  ;;  %v11498_v55 = vpack.c.bf16 %v4192_v52, %v4191_v47 }
 0xd3f   :  { %v3859_v0 = vsel %vm3855_vm7, %v3850_v20, %v3851_v35  ;;  %v3858_v31 = vsel %vm3855_vm7, %v3851_v35, %v3852_v53 }
 0xd40   :  { %v3865_v49 = vpack.c.bf16 %v3859_v0, %v3860_v40  ;;  %v3866_v42 = vpack.c.bf16 %v3857_v15, %v3858_v31  ;;  %9067 = vmatpush3.bf16.msra.mxu1 %v11498_v55 }
 0xd41   :  { %8544 = vmatpush3.bf16.msra.mxu0 %v3772_v36  ;;  %v3856_v36 = vsel %vm3855_vm7, %v3853_v4, %v3854_v48  ;;  %9068 = vmatprep.subr.bf16.mxu1 %v9871_v10 }
 0xd42   :  { %8553 = vmatprep.subr.bf16.mxu0 %v9412_v34 }
 0xd44   :  { %8546 = vmatmul.mubr.msk.bf16.vlgmr.msra.gmra.mrb[24].mxu0 %vm335_vm0, %v3724_v38  ;;  %v4200_v38 = vld [vmem:[%s12773_s18 + $0x48] sm:$0xff] }
 0xd45   :  { %8549 = vmatprep.mubr.msk.bf16.mxu0 %vm335_vm0, %v3725_v6  ;;  %8554 = vmatpush3.bf16.msra.mxu0 %v9412_v34  ;;  %v3863_v34 = vsel %vm3855_vm7, %v3854_v48, %v3847_v45  ;;  %v11537_v11 = vpack.c.bf16 %v4200_v38, %v4199_v3  ;;  %v7510_v6 = vld [vmem:[#allocation16] ss:$0 sm:$0xff]  ;;  %v12806_v48 = vand.u32 15, %v10360_v32 }
 0xd46   :  { %8555 = vmatprep.subr.bf16.mxu0 %v9413_v59  ;;  %v3867_v39 = vpack.c.bf16 %v3863_v34, %v3856_v36 }
 0xd47   :  { %vm11573_vm10 = vcmp.lt.s32.totalorder %v12806_v48, 11 }
 0xd49   :  { %8556 = vmatpush3.bf16.msra.mxu0 %v9413_v59  ;;  %v11545_v59 = vld [vmem:[%s12773_s18 + $0x50] sm:$0xff] }
 0xd4a   :  { %8557 = vmatprep.subr.bf16.mxu0 %v9414_v33 }
 0xd4c   :  { %8550 = vmatmul.mubr.msk.bf16.gmra.mrb[28].mxu0 %vm335_vm0, %v3726_v12 }
 0xd4d   :  { %8558 = vmatpush3.bf16.msra.mxu0 %v9414_v33  ;;  %8561 = vmatprep.mubr.msk.bf16.mxu0 %vm335_vm0, %v3864_v1 }
 0xd4e   :  { %9318 = vmatprep.subr.msk.bf16.mxu0 %vm348_vm1, %v9415_v19 }
 0xd51   :  { %8560 = vmatpush3.bf16.msra.mxu0 %v3913_v54 }
 0xd52   :  { %8569 = vmatprep.subr.bf16.mxu0 %v9416_v13 }
 0xd54   :  { %8562 = vmatmul.mubr.msk.bf16.vlgmr.msra.gmra.mrb[24].mxu0 %vm335_vm0, %v3865_v49 }
 0xd55   :  { %8565 = vmatprep.mubr.msk.bf16.mxu0 %vm335_vm0, %v3866_v42  ;;  %8570 = vmatpush3.bf16.msra.mxu0 %v9416_v13 }
 0xd56   :  { %8571 = vmatprep.subr.bf16.mxu0 %v9417_v62 }
 0xd59   :  { %8572 = vmatpush3.bf16.msra.mxu0 %v9417_v62 }
 0xd5a   :  { %8573 = vmatprep.subr.bf16.mxu0 %v9418_v57 }
 0xd5c   :  { %8566 = vmatmul.mubr.msk.bf16.gmra.mrb[28].mxu0 %vm335_vm0, %v3867_v39 }
 0xd5d   :  { %8574 = vmatpush3.bf16.msra.mxu0 %v9418_v57  ;;  %8577 = vmatprep.mubr.msk.bf16.mxu0 %vm335_vm0, %v4005_v60 }
 0xd5e   :  { %9319 = vmatprep.subr.msk.bf16.mxu0 %vm348_vm1, %v9419_v63  ;;  %vm4160_vm1 = vcmp.lt.s32.totalorder %v254_v26, 11  ;;  %v12803_v26 = vand.u32 15, %v10357_v29 }
 0xd5f   :  { %v7511_v13 = vsel %vm4160_vm1, 1.0, %v9873_v18  ;;  %vm5376_vm1 = vcmask 916480  }
 0xd60   :  { %vm11563_vm9 = vcmp.lt.s32.totalorder %v12803_v26, 11 }
 0xd61   :  { %8576 = vmatpush3.bf16.msra.mxu0 %v4054_v51  ;;  %v7514_v52 = vsel %vm11563_vm9, 1.0, %v9873_v18 }
 0xd62   :  { %9116 = vmatprep.subr.bf16.mxu0 %v9871_v10 }
 0xd64   :  { %8578 = vmatmul.mubr.msk.bf16.vlgmr.msra.gmra.mrb[24].mxu0 %vm335_vm0, %v4006_v58  ;;  %v11508_v58 = vpack.c.bf16 %v4194_v61, %v4193_v17 }
 0xd65   :  { %8581 = vmatprep.mubr.msk.bf16.mxu0 %vm335_vm0, %v4007_v30  ;;  %v11517_v30 = vpack.c.bf16 %v4196_v16, %v4195_v44 }
 0xd66   :  { %9070 = vmatpush3.bf16.msra.mxu1 %v11508_v58 }
 0xd67   :  { %9071 = vmatprep.subr.bf16.mxu1 %v9871_v10 }
 0xd6a   :  { %9073 = vmatpush3.bf16.msra.mxu1 %v11517_v30 }
 0xd6b   :  { %9074 = vmatprep.subr.bf16.mxu1 %v9871_v10 }
 0xd6c   :  { %8582 = vmatmul.mubr.msk.bf16.gmra.mrb[28].mxu0 %vm335_vm0, %v4008_v27  ;;  %v11527_v27 = vpack.c.bf16 %v4198_v2, %v4197_v7  ;;  %vm4162_vm0 = vcmp.lt.s32.totalorder %v256_v24, 11  ;;  %v7513_v7 = vsel %vm11573_vm10, 1.0, %v9873_v18  ;;  %vm6579_vm10 = vcmask 195584  }
 0xd6d   :  { %8794 = vmatprep.mubr.msk.f32.mxu0 %vm9872_vm5, %v9873_v18  ;;  %v7512_v1 = vsel %vm4162_vm0, 1.0, %v9873_v18 }
 0xd6e   :  { %9076 = vmatpush3.bf16.msra.mxu1 %v11527_v27 }
 0xd6f   :  { %9077 = vmatprep.subr.bf16.mxu1 %v9871_v10 }
 0xd72   :  { %9079 = vmatpush3.bf16.msra.mxu1 %v11537_v11 }
 0xd73   :  { %8605 = vmatprep.subr.mxu1 %v9873_v18 }
 0xd76   :  { %8606 = vmatpush3.msra.mxu1 %v11545_v59 }
 0xd77   :  { %9080 = vmatprep.subr.bf16.mxu1 %v9871_v10 }
 0xe37   :  { %v8579_v5 = vpop.f32.mrb[24].mxu0 }
 0xe38   :  { %v4137_v46 = vadd.f32 %v8579_v5, %v7510_v6  ;;  %v4090_v33 = vpop.f32.mrb[25].mxu0 }
 0xe39   :  { %v4135_v45 = vadd.f32 %v7510_v6, %v4090_v33  ;;  %v8580_v56 = vpop.f32.mrb[26].mxu0 }
 0xe3a   :  { %v4145_v43 = vmul.f32 0.01, %v4137_v46  ;;  %v4138_v9 = vadd.f32 %v8580_v56, %v7510_v6  ;;  %v4093_v28 = vpop.f32.mrb[27].mxu0 }
 0xe3b   :  { %v4143_v12 = vmul.f32 0.01, %v4135_v45  ;;  %v4136_v37 = vadd.f32 %v7510_v6, %v4093_v28 }
 0xe3c   :  { %v4146_v19 = vmul.f32 0.01, %v4138_v9  ;;  %v11553_v20 = vmax.f32 %v4137_v46, %v4145_v43 }
 0xe3d   :  { %v4144_v35 = vmul.f32 0.01, %v4136_v37  ;;  %v11556_v4 = vmax.f32 %v4135_v45, %v4143_v12 }
 0xe3e   :  { %v4154_v54 = vmax.f32 %v4138_v9, %v4146_v19  ;;  %v4218_v49 = vsel %vm4208_vm8, %v11553_v20, 0.0 }
 0xe3f   :  { %v4152_v21 = vmax.f32 %v4136_v37, %v4144_v35  ;;  %v8583_v24 = vpop.f32.mrb[28].mxu0  ;;  %v4209_v29 = vsel %vm4208_vm8, %v11556_v4, 0.0 }
 0xe40   :  { %v11559_v53 = vmul.f32 %v7512_v1, %v4154_v54  ;;  %v4141_v40 = vadd.f32 %v8583_v24, %v7510_v6  ;;  %v4106_v0 = vpop.f32.mrb[29].mxu0 }
 0xe41   :  { %v11569_v31 = vmul.f32 %v7511_v13, %v4152_v21  ;;  %v4139_v62 = vadd.f32 %v7510_v6, %v4106_v0  ;;  %v8584_v42 = vpop.f32.mrb[30].mxu0 }
 0xe42   :  { %v4219_v23 = vsel %vm4208_vm8, %v11559_v53, 0.0  ;;  %v4149_v36 = vmul.f32 0.01, %v4141_v40  ;;  %v4142_v34 = vadd.f32 %v8584_v42, %v7510_v6  ;;  %v4109_v50 = vpop.f32.mrb[31].mxu0 }
 0xe43   :  { %v4220_v39 = vadd.f32 %v4219_v23, %v4218_v49  ;;  %v4210_v41 = vsel %vm4208_vm8, %v11569_v31, 0.0  ;;  %v4147_v63 = vmul.f32 0.01, %v4139_v62  ;;  %v4140_v60 = vadd.f32 %v7510_v6, %v4109_v50 }
 0xe44   :  { %v4211_v32 = vadd.f32 %v4210_v41, %v4209_v29  ;;  %v4150_v51 = vmul.f32 0.01, %v4142_v34  ;;  %v11586_v44 = vmax.f32 %v4141_v40, %v4149_v36 }
 0xe45   :  { %v4221_v47 = vrot.slane %v4220_v39, 4  ;;  %v4148_v17 = vmul.f32 0.01, %v4140_v60  ;;  %v11591_v3 = vmax.f32 %v4139_v62, %v4147_v63 }
 0xe46   :  { %v4212_v61 = vrot.slane %v4211_v32, 4  ;;  %v4158_v16 = vmax.f32 %v4142_v34, %v4150_v51  ;;  %v4236_v56 = vsel %vm4208_vm8, %v11586_v44, 0.0 }
 0xe47   :  { %v4222_v2 = vadd.f32 %v4221_v47, %v4220_v39  ;;  %v4156_v38 = vmax.f32 %v4140_v60, %v4148_v17  ;;  %v4227_v9 = vsel %vm4208_vm8, %v11591_v3, 0.0 }
 0xe48   :  { %v4213_v6 = vadd.f32 %v4212_v61, %v4211_v32  ;;  %v11593_v5 = vmul.f32 %v7514_v52, %v4158_v16 }
 0xe49   :  { %v4223_v46 = vrot.slane %v4222_v2, 2  ;;  %v11595_v33 = vmul.f32 %v7513_v7, %v4156_v38 }
 0xe4a   :  { %v4214_v45 = vrot.slane %v4213_v6, 2  ;;  %v4237_v43 = vsel %vm4208_vm8, %v11593_v5, 0.0 }
 0xe4b   :  { %v4238_v28 = vadd.f32 %v4237_v43, %v4236_v56  ;;  %v4228_v12 = vsel %vm4208_vm8, %v11595_v33, 0.0  ;;  %v4224_v19 = vadd.f32 %v4223_v46, %v4222_v2 }
 0xe4c   :  { %v4229_v37 = vadd.f32 %v4228_v12, %v4227_v9  ;;  %v4215_v1 = vadd.f32 %v4214_v45, %v4213_v6 }
 0xe4d   :  { %v4239_v35 = vrot.slane %v4238_v28, 4  ;;  %v4225_v24 = vrot.slane %v4224_v19, 1 }
 0xe4e   :  { %v4230_v54 = vrot.slane %v4229_v37, 4  ;;  %v4216_v40 = vrot.slane %v4215_v1, 1 }
 0xe4f   :  { %v4240_v13 = vadd.f32 %v4239_v35, %v4238_v28  ;;  %v4226_v62 = vadd.f32 %v4225_v24, %v4224_v19 }
 0xe50   :  { %v4231_v21 = vadd.f32 %v4230_v54, %v4229_v37  ;;  %v4217_v42 = vadd.f32 %v4216_v40, %v4215_v1 }
 0xe51   :  { %v4241_v0 = vrot.slane %v4240_v13, 2 }
 0xe52   :  { %v4232_v26 = vrot.slane %v4231_v21, 2  ;;  %v4249_v36 = vsel %vm777_vm12, %v4226_v62, %v4217_v42 }
 0xe53   :  { %v4242_v15 = vadd.f32 %v4241_v0, %v4240_v13 }
 0xe54   :  { %v4233_v49 = vadd.f32 %v4232_v26, %v4231_v21 }
 0xe55   :  { %v4243_v48 = vrot.slane %v4242_v15, 1 }
 0xe56   :  { %v4234_v57 = vrot.slane %v4233_v49, 1 }
 0xe57   :  { %v4244_v23 = vadd.f32 %v4243_v48, %v4242_v15 }
 0xe58   :  { %v4235_v29 = vadd.f32 %v4234_v57, %v4233_v49 }
 0xe5a   :  { %v4250_v34 = vsel %vm779_vm13, %v4235_v29, %v4249_v36 }
 0xe5b   :  { %v4251_v50 = vsel %vm781_vm14, %v4244_v23, %v4250_v34 }
 0xe5c   :  { %8608 = vmatmul.mubr.msk.f32.vlgmr.msra.gmra.mrb[24].mxu1 %vm4208_vm8, %v4251_v50 }
 0xe5d   :  { %9082 = vmatpush3.bf16.msra.mxu1 %v11498_v55  ;;  %8632 = vmatprep.mubr.msk.f32.mxu1 %vm9872_vm5, %v9873_v18 }
 0xe5e   :  { %9083 = vmatprep.subr.bf16.mxu1 %v9871_v10 }
 0xe61   :  { %9085 = vmatpush3.bf16.msra.mxu1 %v11508_v58 }
 0xe62   :  { %9086 = vmatprep.subr.bf16.mxu1 %v9871_v10 }
 0xe65   :  { %9088 = vmatpush3.bf16.msra.mxu1 %v11517_v30 }
 0xe66   :  { %9089 = vmatprep.subr.bf16.mxu1 %v9871_v10 }
 0xe69   :  { %9091 = vmatpush3.bf16.msra.mxu1 %v11527_v27 }
 0xe6a   :  { %9092 = vmatprep.subr.bf16.mxu1 %v9871_v10 }
 0xe6d   :  { %9094 = vmatpush3.bf16.msra.mxu1 %v11537_v11  ;;  %v7515_v11 = vsel %vm4203_vm11, 1.0, %v9873_v18 }
 0xe6e   :  { %8630 = vmatprep.subr.mxu1 %v9873_v18 }
 0xe71   :  { %8631 = vmatpush3.msra.mxu1 %v11545_v59 }
 0xf2f   :  { %v4320_v55 = vpop.f32.mrb[24].mxu1 }
 0xf30   :  { %v4331_v39 = vrot.slane %v4320_v55, %v10448_v14  ;;  %v8609_v58 = vpop.f32.mrb[25].mxu1 }
 0xf32   :  { %v4332_v41 = vcombine.high %v4331_v39, %v4331_v39  ;;  %v4339_v30 = vrot.slane %v4331_v39, %v10448_v14 }
 0xf34   :  { %v4346_v63 = vrot.slane %v4332_v41, %v10448_v14  ;;  %v4347_v27 = vcombine.high %v4339_v30, %v4339_v30  ;;  %v4352_v60 = vrot.slane %v4339_v30, %v10451_v25 }
 0xf36   :  { %v4348_v32 = vcombine.high %v4346_v63, %v4346_v63  ;;  %v4356_v51 = vrot.slane %v4346_v63, %v10451_v25  ;;  %v4360_v59 = vrot.slane %v4347_v27, %v10451_v25  ;;  %v11631_v47 = vsub.f32 %v11556_v4, %v4352_v60 }
 0xf37   :  { %v4370_v22 = vsub.f32 %v11569_v31, %v4352_v60 }
 0xf38   :  { %v4364_v52 = vrot.slane %v4348_v32, %v10451_v25  ;;  %v11636_v17 = vsub.f32 %v11553_v20, %v4356_v51  ;;  %v4372_v61 = vsub.f32 %v11559_v53, %v4356_v51  ;;  %v11640_v16 = vsub.f32 %v11591_v3, %v4360_v59 }
 0xf39   :  { %v4374_v7 = vsub.f32 %v11595_v33, %v4360_v59  ;;  %v11643_v2 = vmul.f32 %v7515_v11, %v4370_v22  ;;  %v4385_v4 = vmul.f32 %v11631_v47, %v11631_v47 }
 0xf3a   :  { %v11648_v38 = vsub.f32 %v11586_v44, %v4364_v52  ;;  %v4376_v31 = vsub.f32 %v11593_v5, %v4364_v52  ;;  %v11651_v6 = vmul.f32 %v7515_v11, %v4372_v61  ;;  %v4387_v20 = vmul.f32 %v11636_v17, %v11636_v17  ;;  %v9420_v52 = vld [vmem:[%s12766_s11 + $0x2c] sm:$0xff]   ;;  %v9421_v61 = vld [vmem:[%s12766_s11 + $0x34] sm:$0xff]  }
 0xf3b   :  { %v11655_v53 = vmul.f32 %v7515_v11, %v4374_v7  ;;  %v4386_v3 = vmul.f32 %v11643_v2, %v11643_v2  ;;  %v4389_v46 = vmul.f32 %v11640_v16, %v11640_v16  ;;  %v4393_v56 = vsel %vm4208_vm8, %v4385_v4, 0.0  ;;  %8635 = vmatprep.subr.bf16.mxu1 %v9420_v52  ;;  %v9422_v7 = vld [vmem:[%s12766_s11 + $0x3c] sm:$0xff]   ;;  %v9423_v4 = vld [vmem:[%s12766_s11 + $0x44] sm:$0xff]  }
 0xf3c   :  { %v11661_v33 = vmul.f32 %v7515_v11, %v4376_v31  ;;  %v4388_v44 = vmul.f32 %v11651_v6, %v11651_v6  ;;  %v4391_v5 = vmul.f32 %v11648_v38, %v11648_v38  ;;  %v4402_v12 = vsel %vm4208_vm8, %v4387_v20, 0.0  ;;  %v9424_v31 = vld [vmem:[%s12766_s11 + $0x4c] sm:$0xff]   ;;  %v9425_v20 = vld [vmem:[%s12766_s11 + $0x54] ss:$0 sps:$4 sm:$0xff]  }
 0xf3d   :  { %v4390_v45 = vmul.f32 %v11655_v53, %v11655_v53  ;;  %v4394_v43 = vsel %vm4208_vm8, %v4386_v3, 0.0  ;;  %v4411_v1 = vsel %vm4208_vm8, %v4389_v46, 0.0  ;;  %v4656_v3 = vsel %vm785_vm4, %v9425_v20, 0  ;;  %v9426_v46 = vld [vmem:[%s12766_s11] sm:$0xff]  }
 0xf3e   :  { %v4392_v9 = vmul.f32 %v11661_v33, %v11661_v33  ;;  %v4395_v28 = vadd.f32 %v4394_v43, %v4393_v56  ;;  %v4403_v37 = vsel %vm4208_vm8, %v4388_v44, 0.0  ;;  %v4420_v21 = vsel %vm4208_vm8, %v4391_v5, 0.0 }
 0xf3f   :  { %v4404_v19 = vadd.f32 %v4403_v37, %v4402_v12  ;;  %v4412_v35 = vsel %vm4208_vm8, %v4390_v45, 0.0 }
 0xf40   :  { %v4396_v54 = vrot.slane %v4395_v28, 4  ;;  %v4413_v13 = vadd.f32 %v4412_v35, %v4411_v1  ;;  %v4421_v24 = vsel %vm4208_vm8, %v4392_v9, 0.0 }
 0xf41   :  { %v4405_v40 = vrot.slane %v4404_v19, 4  ;;  %v4422_v0 = vadd.f32 %v4421_v24, %v4420_v21 }
 0xf42   :  { %v4397_v26 = vadd.f32 %v4396_v54, %v4395_v28  ;;  %v4414_v15 = vrot.slane %v4413_v13, 4 }
 0xf43   :  { %v4406_v49 = vadd.f32 %v4405_v40, %v4404_v19  ;;  %v4423_v62 = vrot.slane %v4422_v0, 4 }
 0xf44   :  { %v4398_v42 = vrot.slane %v4397_v26, 2  ;;  %v4415_v48 = vadd.f32 %v4414_v15, %v4413_v13 }
 0xf45   :  { %v4407_v57 = vrot.slane %v4406_v49, 2  ;;  %v4424_v29 = vadd.f32 %v4423_v62, %v4422_v0 }
 0xf46   :  { %v4399_v23 = vadd.f32 %v4398_v42, %v4397_v26  ;;  %v4416_v36 = vrot.slane %v4415_v48, 2 }
 0xf47   :  { %v4408_v34 = vadd.f32 %v4407_v57, %v4406_v49  ;;  %v4425_v50 = vrot.slane %v4424_v29, 2 }
 0xf48   :  { %v4400_v55 = vrot.slane %v4399_v23, 1  ;;  %v4417_v39 = vadd.f32 %v4416_v36, %v4415_v48 }
 0xf49   :  { %v4409_v58 = vrot.slane %v4408_v34, 1  ;;  %v4426_v41 = vadd.f32 %v4425_v50, %v4424_v29  ;;  %v9427_v50 = vld [vmem:[%s12766_s11 + $0x8] sm:$0xff]  }
 0xf4a   :  { %v4418_v30 = vrot.slane %v4417_v39, 1  ;;  %v4401_v63 = vadd.f32 %v4400_v55, %v4399_v23 }
 0xf4b   :  { %v4410_v27 = vadd.f32 %v4409_v58, %v4408_v34  ;;  %v4427_v60 = vrot.slane %v4426_v41, 1  ;;  %v9428_v58 = vld [vmem:[%s12766_s11 + $0x10] sm:$0xff]  }
 0xf4c   :  { %v4419_v11 = vadd.f32 %v4418_v30, %v4417_v39 }
 0xf4d   :  { %v4428_v32 = vadd.f32 %v4427_v60, %v4426_v41  ;;  %v4433_v51 = vsel %vm777_vm12, %v4410_v27, %v4401_v63 }
 0xf4e   :  { %v4434_v59 = vsel %vm779_vm13, %v4419_v11, %v4433_v51  ;;  %v9429_v51 = vld [vmem:[%s12766_s11 + $0x18] sm:$0xff]  }
 0xf4f   :  { %v4435_v22 = vsel %vm781_vm14, %v4428_v32, %v4434_v59 }
 0xf50   :  { %8633 = vmatmul.mubr.msk.f32.vlgmr.msra.gmra.mrb[26].mxu1 %vm4208_vm8, %v4435_v22 }
 0xf51   :  { %8636 = vmatpush3.bf16.msra.mxu1 %v9420_v52 }
 0xf52   :  { %8637 = vmatprep.subr.bf16.mxu1 %v9421_v61 }
 0xf55   :  { %8638 = vmatpush3.bf16.msra.mxu1 %v9421_v61 }
 0xf56   :  { %8639 = vmatprep.subr.bf16.mxu1 %v9422_v7 }
 0xf59   :  { %8640 = vmatpush3.bf16.msra.mxu1 %v9422_v7 }
 0xf5a   :  { %8641 = vmatprep.subr.bf16.mxu1 %v9423_v4 }
 0xf5d   :  { %8642 = vmatpush3.bf16.msra.mxu1 %v9423_v4 }
 0xf5e   :  { %8643 = vmatprep.subr.bf16.mxu1 %v9424_v31 }
 0xf61   :  { %8644 = vmatpush3.bf16.msra.mxu1 %v9424_v31 }
 0xf62   :  { %9320 = vmatprep.subr.msk.bf16.mxu1 %vm785_vm4, %v9425_v20 }
 0xf65   :  { %8646 = vmatpush3.bf16.msra.mxu1 %v4656_v3 }
 0xf66   :  { %8655 = vmatprep.subr.bf16.mxu1 %v9426_v46 }
0x1023   :  { %v4504_v44 = vpop.f32.mrb[26].mxu1 }
0x1024   :  { %v4505_v5 = vadd.f32 1e-05, %v4504_v44  ;;  %v8634_v45 = vpop.f32.mrb[27].mxu1 }
0x1026   :  { %9499 = vrsqrt.f32 %v4505_v5 }
0x1030   :  { %v9500_v56 = vpop.eup %9499 }
0x1031   :  { %v4516_v43 = vrot.slane %v9500_v56, %v10448_v14 }
0x1033   :  { %v4517_v9 = vcombine.high %v4516_v43, %v4516_v43  ;;  %v4524_v28 = vrot.slane %v4516_v43, %v10448_v14  ;;  %v9430_v43 = vld [vmem:[%s12766_s11 + $0x20] sm:$0xff]  }
0x1035   :  { %v4531_v12 = vrot.slane %v4517_v9, %v10448_v14  ;;  %v4532_v37 = vcombine.high %v4524_v28, %v4524_v28  ;;  %v4537_v19 = vrot.slane %v4524_v28, %v10451_v25 }
0x1037   :  { %v4533_v1 = vcombine.high %v4531_v12, %v4531_v12  ;;  %v4541_v35 = vrot.slane %v4531_v12, %v10451_v25  ;;  %v4545_v54 = vrot.slane %v4532_v37, %v10451_v25  ;;  %v11713_v13 = vmul.f32 %v4537_v19, %v11631_v47 }
0x1038   :  { %v11716_v21 = vmul.f32 %v4537_v19, %v11643_v2 }
0x1039   :  { %v4549_v24 = vrot.slane %v4533_v1, %v10451_v25  ;;  %v11720_v40 = vmul.f32 %v4541_v35, %v11636_v17  ;;  %v11723_v0 = vmul.f32 %v4541_v35, %v11651_v6  ;;  %v11726_v26 = vmul.f32 %v4545_v54, %v11640_v16 }
0x103a   :  { %v11729_v15 = vmul.f32 %v4545_v54, %v11655_v53  ;;  %v4578_v47 = vrot.slane %v11713_v13, 1  ;;  %v4579_v49 = vrot.slane %v11716_v21, 1  ;;  %v4563_v63 = vpack.c.bf16 %v11716_v21, %v11713_v13 }
0x103b   :  { %v11734_v2 = vmul.f32 %v4549_v24, %v11648_v38  ;;  %v4580_v62 = vrot.slane %v11720_v40, 1  ;;  %v4581_v17 = vrot.slane %v11723_v0, 1  ;;  %v11739_v6 = vmul.f32 %v4549_v24, %v11661_v33 }
0x103c   :  { %v4582_v16 = vrot.slane %v11726_v26, 1  ;;  %v4583_v42 = vrot.slane %v11729_v15, 1  ;;  %v4592_v48 = vsel %vm528_vm3, %v4578_v47, %v4579_v49  ;;  %v4991_v27 = vrot.slane %v11720_v40, 3 }
0x103d   :  { %v4591_v53 = vsel %vm528_vm3, %v4579_v49, %v4580_v62  ;;  %v4590_v38 = vsel %vm528_vm3, %v4580_v62, %v4581_v17  ;;  %v4584_v57 = vrot.slane %v11734_v2, 1  ;;  %v4585_v39 = vrot.slane %v11739_v6, 1 }
0x103e   :  { %v4594_v29 = vpack.c.bf16 %v4591_v53, %v4592_v48  ;;  %v4589_v33 = vsel %vm528_vm3, %v4581_v17, %v4582_v16  ;;  %v4588_v34 = vsel %vm528_vm3, %v4582_v16, %v4583_v42  ;;  %v4992_v60 = vrot.slane %v11723_v0, 3  ;;  %v9431_v53 = vld [vmem:[%s12766_s11 + $0x28] ss:$0 sps:$4 sm:$0xff]  }
0x103f   :  { %v4595_v23 = vpack.c.bf16 %v4589_v33, %v4590_v38  ;;  %v4587_v36 = vsel %vm528_vm3, %v4583_v42, %v4584_v57  ;;  %v4586_v41 = vsel %vm528_vm3, %v4584_v57, %v4585_v39  ;;  %v4593_v30 = vsel %vm528_vm3, %v4585_v39, %v4578_v47  ;;  %v9434_v39 = vld [vmem:[%s12766_s11 + $0x68] sm:$0xff]  }
0x1040   :  { %8647 = vmatprep.mubr.msk.bf16.mxu1 %vm4208_vm8, %v4594_v29  ;;  %v4596_v55 = vpack.c.bf16 %v4587_v36, %v4588_v34  ;;  %v4993_v11 = vrot.slane %v11726_v26, 3  ;;  %v4597_v32 = vpack.c.bf16 %v4593_v30, %v4586_v41  ;;  %v4994_v59 = vrot.slane %v11729_v15, 3  ;;  %v9433_v34 = vld [vmem:[%s12766_s11 + $0x60] sm:$0xff]  }
0x1041   :  { %8648 = vmatmul.mubr.msk.bf16.vlgmr.msra.gmra.mrb[28].mxu1 %vm4208_vm8, %v4595_v23  ;;  %v4995_v22 = vrot.slane %v11734_v2, 3  ;;  %v4996_v52 = vrot.slane %v11739_v6, 3  ;;  %v4989_v61 = vrot.slane %v11713_v13, 3  ;;  %v11786_v7 = vsel %vm3855_vm7, %v4991_v27, %v4992_v60  ;;  %v9432_v23 = vld [vmem:[%s12766_s11 + $0x58] sm:$0xff]  }
0x1042   :  { %8656 = vmatpush3.bf16.msra.mxu1 %v9426_v46  ;;  %8651 = vmatprep.mubr.msk.bf16.mxu1 %vm4208_vm8, %v4596_v55  ;;  %v11790_v4 = vsel %vm3855_vm7, %v4992_v60, %v4993_v11  ;;  %v5142_v31 = vrot.slane %v11713_v13, 4  ;;  %v11802_v46 = vsel %vm3855_vm7, %v4993_v11, %v4994_v59  ;;  %v5143_v56 = vrot.slane %v11716_v21, 4  ;;  %v9435_v11 = vld [vmem:[%s12766_s11 + $0x70] sm:$0xff]  }
0x1043   :  { %8657 = vmatprep.subr.bf16.mxu1 %v9427_v50  ;;  %v5006_v20 = vpack.c.bf16 %v11790_v4, %v11786_v7  ;;  %v11798_v3 = vsel %vm3855_vm7, %v4994_v59, %v4995_v22  ;;  %v11809_v5 = vsel %vm3855_vm7, %v4995_v22, %v4996_v52  ;;  %v11815_v45 = vsel %vm3855_vm7, %v4996_v52, %v4989_v61  ;;  %v9437_v59 = vld [vmem:[%s12766_s11 + $0x80] ss:$0 sps:$4 sm:$0xff]   ;;  %v9448_v7 = vld [vmem:[%s12766_s11 + $0xd0] sm:$0xff]   ;;  %v9449_v4 = vld [vmem:[%s12766_s11 + $0xd8] ss:$0 sps:$4 sm:$0xff]  }
0x1044   :  { %v5007_v44 = vpack.c.bf16 %v11798_v3, %v11802_v46  ;;  %v5008_v9 = vpack.c.bf16 %v11815_v45, %v11809_v5  ;;  %v5144_v28 = vrot.slane %v11720_v40, 4  ;;  %v5145_v12 = vrot.slane %v11723_v0, 4  ;;  %v5357_v3 = vld [vmem:[%s12774_s19] sm:$0xff]  ;;  %v5358_v46 = vld [vmem:[%s12774_s19 + $0x8] sm:$0xff]  ;;  %v5359_v5 = vld [vmem:[%s12774_s19 + $0x10] sm:$0xff] }
0x1045   :  { %v5146_v37 = vrot.slane %v11726_v26, 4  ;;  %v11828_v19 = vsel %vm3996_vm2, %v5142_v31, %v5143_v56  ;;  %v5147_v1 = vrot.slane %v11729_v15, 4  ;;  %v5148_v35 = vrot.slane %v11734_v2, 4  ;;  %v5360_v45 = vld [vmem:[%s12774_s19 + $0x18] sm:$0xff] }
0x1046   :  { %8658 = vmatpush3.bf16.msra.mxu1 %v9427_v50  ;;  %v5149_v54 = vrot.slane %v11739_v6, 4  ;;  %v11835_v24 = vsel %vm3996_vm2, %v5144_v28, %v5145_v12  ;;  %v11839_v47 = vsel %vm3996_vm2, %v5143_v56, %v5144_v28  ;;  %v4769_v33 = vsel %vm785_vm4, %v9431_v53, 0 }
0x1047   :  { %8659 = vmatprep.subr.bf16.mxu1 %v9428_v58  ;;  %v11843_v49 = vsel %vm3996_vm2, %v5145_v12, %v5146_v37  ;;  %v5158_v62 = vpack.c.bf16 %v11839_v47, %v11828_v19  ;;  %v11851_v16 = vsel %vm3996_vm2, %v5147_v1, %v5148_v35  ;;  %v11855_v42 = vsel %vm3996_vm2, %v5146_v37, %v5147_v1  ;;  %v9439_v1 = vld [vmem:[%s12766_s11 + $0x8c] sm:$0xff]   ;;  %v5361_v19 = vld [vmem:[%s12774_s19 + $0x20] sm:$0xff] }
0x1048   :  { %v5159_v17 = vpack.c.bf16 %v11843_v49, %v11835_v24  ;;  %v5160_v48 = vpack.c.bf16 %v11851_v16, %v11855_v42  ;;  %v11864_v38 = vsel %vm3996_vm2, %v5148_v35, %v5149_v54  ;;  %v11868_v57 = vsel %vm3996_vm2, %v5149_v54, %v5142_v31  ;;  %v9440_v54 = vld [vmem:[%s12766_s11 + $0x94] sm:$0xff]   ;;  %v5362_v24 = vld [vmem:[%s12774_s19 + $0x28] sm:$0xff]  ;;  %v5365_v16 = vld [vmem:[%s12774_s19 + $0x40] sm:$0xff] }
0x1049   :  { %8652 = vmatmul.mubr.msk.bf16.gmra.mrb[32].mxu1 %vm4208_vm8, %v4597_v32  ;;  %v5161_v29 = vpack.c.bf16 %v11868_v57, %v11864_v38  ;;  %v4564_v36 = vpack.c.bf16 %v11723_v0, %v11720_v40  ;;  %v4565_v50 = vpack.c.bf16 %v11729_v15, %v11726_v26  ;;  %v4838_v55 = vrot.slane %v11720_v40, 2  ;;  %v9442_v40 = vld [vmem:[%s12766_s11 + $0xa4] sm:$0xff]   ;;  %v5363_v49 = vld [vmem:[%s12774_s19 + $0x30] sm:$0xff]  ;;  %v5368_v57 = vld [vmem:[%s12774_s19 + $0x58] sm:$0xff] }
0x104a   :  { %8660 = vmatpush3.bf16.msra.mxu1 %v9428_v58  ;;  %8667 = vmatprep.mubr.msk.bf16.mxu1 %vm4208_vm8, %v4563_v63  ;;  %v4836_v58 = vrot.slane %v11713_v13, 2  ;;  %v4837_v41 = vrot.slane %v11716_v21, 2  ;;  %v4566_v63 = vpack.c.bf16 %v11739_v6, %v11734_v2  ;;  %v4839_v22 = vrot.slane %v11723_v0, 2  ;;  %v9443_v13 = vld [vmem:[%s12766_s11 + $0xac] ss:$0 sps:$4 sm:$0xff]   ;;  %v5367_v38 = vld [vmem:[%s12774_s19 + $0x50] sm:$0xff] }
0x104b   :  { %8661 = vmatprep.subr.bf16.mxu1 %v9429_v51  ;;  %v4840_v52 = vrot.slane %v11726_v26, 2  ;;  %v4842_v31 = vrot.slane %v11734_v2, 2  ;;  %v4914_v56 = vsel %vm785_vm4, %v9437_v59, 0  ;;  %v4841_v28 = vrot.slane %v11729_v15, 2  ;;  %v5366_v42 = vld [vmem:[%s12774_s19 + $0x48] sm:$0xff] }
0x104c   :  { %v4849_v30 = vsel %vm3714_vm6, %v4837_v41, %v4838_v55  ;;  %v4850_v60 = vsel %vm3714_vm6, %v4836_v58, %v4837_v41  ;;  %v4848_v12 = vsel %vm3714_vm6, %v4838_v55, %v4839_v22  ;;  %v4843_v35 = vrot.slane %v11739_v6, 2  ;;  %v9445_v55 = vld [vmem:[%s12766_s11 + $0xb8] sm:$0xff]   ;;  %v5369_v41 = vld [vmem:[%s12774_s19 + $0x60] sm:$0xff] }
0x104d   :  { %v4852_v32 = vpack.c.bf16 %v4849_v30, %v4850_v60  ;;  %v4847_v0 = vsel %vm3714_vm6, %v4839_v22, %v4840_v52  ;;  %v4845_v26 = vsel %vm3714_vm6, %v4841_v28, %v4842_v31  ;;  %v4846_v37 = vsel %vm3714_vm6, %v4840_v52, %v4841_v28  ;;  %v5370_v30 = vld [vmem:[%s12774_s19 + $0x68] sm:$0xff] }
0x104e   :  { %8662 = vmatpush3.bf16.msra.mxu1 %v9429_v51  ;;  %v9436_v51 = vld [vmem:[%s12766_s11 + $0x78] sm:$0xff]   ;;  %v4853_v2 = vpack.c.bf16 %v4847_v0, %v4848_v12  ;;  %v4854_v15 = vpack.c.bf16 %v4845_v26, %v4846_v37  ;;  %v9102_v47 = vpack.c.bf16 %v5362_v24, %v5361_v19  ;;  %v247_v60 = vadd.s32 16, %v10179_v8 }
0x104f   :  { %8663 = vmatprep.subr.bf16.mxu1 %v9430_v43 }
0x1052   :  { %8664 = vmatpush3.bf16.msra.mxu1 %v9430_v43  ;;  %v9438_v43 = vld [vmem:[%s12766_s11 + $0x84] sm:$0xff]  }
0x1053   :  { %9321 = vmatprep.subr.msk.bf16.mxu1 %vm785_vm4, %v9431_v53  ;;  %v4990_v53 = vrot.slane %v11716_v21, 3  ;;  %v9441_v21 = vld [vmem:[%s12766_s11 + $0x9c] sm:$0xff]  }
0x1055   :  { %v5002_v6 = vsel %vm3855_vm7, %v4990_v53, %v4991_v27  ;;  %v5067_v27 = vsel %vm785_vm4, %v9443_v13, 0 }
0x1056   :  { %8666 = vmatpush3.bf16.msra.mxu1 %v4769_v33  ;;  %v4844_v33 = vsel %vm3714_vm6, %v4842_v31, %v4843_v35 }
0x1057   :  { %8675 = vmatprep.subr.bf16.mxu1 %v9432_v23 }
0x1059   :  { %8668 = vmatmul.mubr.msk.bf16.vlgmr.msra.gmra.mrb[28].mxu1 %vm4208_vm8, %v4564_v36 }
0x105a   :  { %8671 = vmatprep.mubr.msk.bf16.mxu1 %vm4208_vm8, %v4565_v50  ;;  %8676 = vmatpush3.bf16.msra.mxu1 %v9432_v23  ;;  %v4851_v23 = vsel %vm3714_vm6, %v4843_v35, %v4836_v58  ;;  %v9447_v58 = vld [vmem:[%s12766_s11 + $0xc8] sm:$0xff]  }
0x105b   :  { %8677 = vmatprep.subr.bf16.mxu1 %v9433_v34  ;;  %v4855_v36 = vpack.c.bf16 %v4851_v23, %v4844_v33 }
0x105e   :  { %8678 = vmatpush3.bf16.msra.mxu1 %v9433_v34  ;;  %v5003_v34 = vsel %vm3855_vm7, %v4989_v61, %v4990_v53  ;;  %v9444_v61 = vld [vmem:[%s12766_s11 + $0xb0] sm:$0xff]  }
0x105f   :  { %8679 = vmatprep.subr.bf16.mxu1 %v9434_v39  ;;  %v5005_v50 = vpack.c.bf16 %v5002_v6, %v5003_v34 }
0x1061   :  { %8672 = vmatmul.mubr.msk.bf16.gmra.mrb[32].mxu1 %vm4208_vm8, %v4566_v63  ;;  %v9114_v63 = vpack.c.bf16 %v5370_v30, %v5369_v41 }
0x1062   :  { %8680 = vmatpush3.bf16.msra.mxu1 %v9434_v39  ;;  %8687 = vmatprep.mubr.msk.bf16.mxu1 %vm4208_vm8, %v4852_v32  ;;  %v9446_v39 = vld [vmem:[%s12766_s11 + $0xc0] sm:$0xff]   ;;  %v7612_v32 = vld [vmem:[#allocation17] ss:$0 sm:$0xff] }
0x1063   :  { %8681 = vmatprep.subr.bf16.mxu1 %v9435_v11 }
0x1066   :  { %8682 = vmatpush3.bf16.msra.mxu1 %v9435_v11  ;;  %v12068_v11 = vand.u32 15, %v247_v60 }
0x1067   :  { %8683 = vmatprep.subr.bf16.mxu1 %v9436_v51 }
0x1068   :  { %vm5327_vm15 = vcmp.lt.s32.totalorder %v12068_v11, 7 }
0x1069   :  { %v7614_v37 = vsel %vm5327_vm15, 1.0, %v9873_v18 }
0x106a   :  { %8684 = vmatpush3.bf16.msra.mxu1 %v9436_v51  ;;  %v12071_v51 = vand.u32 15, %v10179_v8 }
0x106b   :  { %9322 = vmatprep.subr.msk.bf16.mxu1 %vm785_vm4, %v9437_v59  ;;  %v251_v59 = vadd.s32 48, %v10179_v8 }
0x106c   :  { %vm5325_vm0 = vcmp.lt.s32.totalorder %v12071_v51, 7 }
0x106e   :  { %8686 = vmatpush3.bf16.msra.mxu1 %v4914_v56  ;;  %v249_v56 = vadd.s32 32, %v10179_v8 }
0x106f   :  { %8695 = vmatprep.subr.bf16.mxu1 %v9438_v43 }
0x1070   :  { %v12081_v33 = vand.u32 15, %v249_v56 }
0x1071   :  { %8688 = vmatmul.mubr.msk.bf16.vlgmr.msra.gmra.mrb[28].mxu1 %vm4208_vm8, %v4853_v2  ;;  %v12077_v2 = vand.u32 15, %v251_v59 }
0x1072   :  { %8691 = vmatprep.mubr.msk.bf16.mxu1 %vm4208_vm8, %v4854_v15  ;;  %8696 = vmatpush3.bf16.msra.mxu1 %v9438_v43  ;;  %vm5329_vm9 = vcmp.lt.s32.totalorder %v12081_v33, 7  ;;  %vm6542_vm15 = vcmp.lt.s32.totalorder %v12081_v33, 3 }
0x1073   :  { %8697 = vmatprep.subr.bf16.mxu1 %v9439_v1  ;;  %vm6544_vm11 = vcmp.lt.s32.totalorder %v12077_v2, 3 }
0x1076   :  { %8698 = vmatpush3.bf16.msra.mxu1 %v9439_v1 }
0x1077   :  { %8699 = vmatprep.subr.bf16.mxu1 %v9440_v54 }
0x1079   :  { %8692 = vmatmul.mubr.msk.bf16.gmra.mrb[32].mxu1 %vm4208_vm8, %v4855_v36 }
0x107a   :  { %8700 = vmatpush3.bf16.msra.mxu1 %v9440_v54  ;;  %8707 = vmatprep.mubr.msk.bf16.mxu1 %vm4208_vm8, %v5005_v50  ;;  %v7613_v54 = vsel %vm5325_vm0, 1.0, %v9873_v18  ;;  %vm6573_vm0 = vcmp.lt.s32.totalorder %v10179_v8, 3 }
0x107b   :  { %8701 = vmatprep.subr.bf16.mxu1 %v9441_v21 }
0x107e   :  { %8702 = vmatpush3.bf16.msra.mxu1 %v9441_v21 }
0x107f   :  { %8703 = vmatprep.subr.bf16.mxu1 %v9442_v40 }
0x1082   :  { %8704 = vmatpush3.bf16.msra.mxu1 %v9442_v40 }
0x1083   :  { %9323 = vmatprep.subr.msk.bf16.mxu1 %vm785_vm4, %v9443_v13 }
0x1086   :  { %8706 = vmatpush3.bf16.msra.mxu1 %v5067_v27 }
0x1087   :  { %8715 = vmatprep.subr.bf16.mxu1 %v9444_v61 }
0x1089   :  { %8708 = vmatmul.mubr.msk.bf16.vlgmr.msra.gmra.mrb[28].mxu1 %vm4208_vm8, %v5006_v20  ;;  %v5220_v20 = vsel %vm785_vm4, %v9449_v4, 0 }
0x108a   :  { %8711 = vmatprep.mubr.msk.bf16.mxu1 %vm4208_vm8, %v5007_v44  ;;  %8716 = vmatpush3.bf16.msra.mxu1 %v9444_v61  ;;  %v9096_v44 = vpack.c.bf16 %v5358_v46, %v5357_v3 }
0x108b   :  { %8717 = vmatprep.subr.bf16.mxu1 %v9445_v55 }
0x108c   :  { %9118 = vmatpush3.bf16.msra.mxu0 %v9096_v44 }
0x108d   :  { %9119 = vmatprep.subr.bf16.mxu0 %v9871_v10 }
0x108e   :  { %8718 = vmatpush3.bf16.msra.mxu1 %v9445_v55 }
0x108f   :  { %8719 = vmatprep.subr.bf16.mxu1 %v9446_v39 }
0x1091   :  { %8712 = vmatmul.mubr.msk.bf16.gmra.mrb[32].mxu1 %vm4208_vm8, %v5008_v9  ;;  %v9099_v9 = vpack.c.bf16 %v5360_v45, %v5359_v5 }
0x1092   :  { %8720 = vmatpush3.bf16.msra.mxu1 %v9446_v39  ;;  %8727 = vmatprep.mubr.msk.bf16.mxu1 %vm4208_vm8, %v5158_v62  ;;  %v5364_v62 = vld [vmem:[%s12774_s19 + $0x38] sm:$0xff] }
0x1093   :  { %8721 = vmatprep.subr.bf16.mxu1 %v9447_v58  ;;  %9121 = vmatpush3.bf16.msra.mxu0 %v9099_v9 }
0x1094   :  { %9122 = vmatprep.subr.bf16.mxu0 %v9871_v10 }
0x1096   :  { %8722 = vmatpush3.bf16.msra.mxu1 %v9447_v58 }
0x1097   :  { %8723 = vmatprep.subr.bf16.mxu1 %v9448_v7  ;;  %9124 = vmatpush3.bf16.msra.mxu0 %v9102_v47 }
0x1098   :  { %9125 = vmatprep.subr.bf16.mxu0 %v9871_v10 }
0x109a   :  { %8724 = vmatpush3.bf16.msra.mxu1 %v9448_v7 }
0x109b   :  { %9324 = vmatprep.subr.msk.bf16.mxu1 %vm785_vm4, %v9449_v4 }
0x109e   :  { %8726 = vmatpush3.bf16.msra.mxu1 %v5220_v20 }
0x109f   :  { %9095 = vmatprep.subr.bf16.mxu1 %v9871_v10 }
0x10a1   :  { %8728 = vmatmul.mubr.msk.bf16.vlgmr.msra.gmra.mrb[28].mxu1 %vm4208_vm8, %v5159_v17  ;;  %v9105_v17 = vpack.c.bf16 %v5364_v62, %v5363_v49  ;;  %v7615_v62 = vsel %vm5329_vm9, 1.0, %v9873_v18 }
0x10a2   :  { %8731 = vmatprep.mubr.msk.bf16.mxu1 %vm4208_vm8, %v5160_v48  ;;  %9097 = vmatpush3.bf16.msra.mxu1 %v9096_v44  ;;  %v9108_v48 = vpack.c.bf16 %v5366_v42, %v5365_v16 }
0x10a3   :  { %9098 = vmatprep.subr.bf16.mxu1 %v9871_v10  ;;  %9127 = vmatpush3.bf16.msra.mxu0 %v9105_v17 }
0x10a4   :  { %9128 = vmatprep.subr.bf16.mxu0 %v9871_v10 }
0x10a6   :  { %9100 = vmatpush3.bf16.msra.mxu1 %v9099_v9 }
0x10a7   :  { %9101 = vmatprep.subr.bf16.mxu1 %v9871_v10  ;;  %9130 = vmatpush3.bf16.msra.mxu0 %v9108_v48 }
0x10a8   :  { %9131 = vmatprep.subr.bf16.mxu0 %v9871_v10 }
0x10a9   :  { %8732 = vmatmul.mubr.msk.bf16.gmra.mrb[32].mxu1 %vm4208_vm8, %v5161_v29  ;;  %v9111_v29 = vpack.c.bf16 %v5368_v57, %v5367_v38  ;;  %vm5331_vm8 = vcmp.lt.s32.totalorder %v12077_v2, 7 }
0x10aa   :  { %8763 = vmatprep.mubr.msk.f32.mxu1 %vm9872_vm5, %v9873_v18  ;;  %9103 = vmatpush3.bf16.msra.mxu1 %v9102_v47  ;;  %v7616_v58 = vsel %vm5331_vm8, 1.0, %v9873_v18 }
0x10ab   :  { %9104 = vmatprep.subr.bf16.mxu1 %v9871_v10  ;;  %9133 = vmatpush3.bf16.msra.mxu0 %v9111_v29 }
0x10ac   :  { %9134 = vmatprep.subr.bf16.mxu0 %v9871_v10 }
0x10ae   :  { %9106 = vmatpush3.bf16.msra.mxu1 %v9105_v17 }
0x10af   :  { %9107 = vmatprep.subr.bf16.mxu1 %v9871_v10  ;;  %9136 = vmatpush3.bf16.msra.mxu0 %v9114_v63 }
0x10b2   :  { %9109 = vmatpush3.bf16.msra.mxu1 %v9108_v48 }
0x10b3   :  { %9110 = vmatprep.subr.bf16.mxu1 %v9871_v10 }
0x10b6   :  { %9112 = vmatpush3.bf16.msra.mxu1 %v9111_v29 }
0x10b7   :  { %9113 = vmatprep.subr.bf16.mxu1 %v9871_v10 }
0x10ba   :  { %9115 = vmatpush3.bf16.msra.mxu1 %v9114_v63 }
0x10bb   :  { %9137 = vmatprep.subr.bf16.mxu1 %v9871_v10 }
0x1174   :  { %v8729_v22 = vpop.f32.mrb[28].mxu1 }
0x1175   :  { %v5303_v52 = vadd.f32 %v8729_v22, %v7612_v32  ;;  %v5256_v31 = vpop.f32.mrb[29].mxu1 }
0x1176   :  { %v5301_v43 = vadd.f32 %v7612_v32, %v5256_v31  ;;  %v8730_v28 = vpop.f32.mrb[30].mxu1 }
0x1177   :  { %v5311_v12 = vmul.f32 0.01, %v5303_v52  ;;  %v5304_v0 = vadd.f32 %v8730_v28, %v7612_v32  ;;  %v5259_v26 = vpop.f32.mrb[31].mxu1 }
0x1178   :  { %v5309_v1 = vmul.f32 0.01, %v5301_v43  ;;  %v5302_v15 = vadd.f32 %v7612_v32, %v5259_v26 }
0x1179   :  { %v5319_v35 = vmax.f32 %v5303_v52, %v5311_v12  ;;  %v5312_v53 = vmul.f32 0.01, %v5304_v0 }
0x117a   :  { %v5317_v23 = vmax.f32 %v5301_v43, %v5309_v1  ;;  %v5310_v6 = vmul.f32 0.01, %v5302_v15 }
0x117b   :  { %v12083_v36 = vmul.f32 %v7614_v37, %v5319_v35  ;;  %v5320_v34 = vmax.f32 %v5304_v0, %v5312_v53 }
0x117c   :  { %v12086_v21 = vmul.f32 %v7613_v54, %v5317_v23  ;;  %v5318_v50 = vmax.f32 %v5302_v15, %v5310_v6  ;;  %v8733_v40 = vpop.f32.mrb[32].mxu1 }
0x117d   :  { %v12088_v13 = vmul.f32 0.0, %v5320_v34  ;;  %v5307_v27 = vadd.f32 %v8733_v40, %v7612_v32  ;;  %v5272_v61 = vpop.f32.mrb[33].mxu1  ;;  %v5386_v55 = vsel %vm5376_vm1, %v12083_v36, 0.0 }
0x117e   :  { %v12093_v39 = vmul.f32 0.0, %v5318_v50  ;;  %v5305_v7 = vadd.f32 %v7612_v32, %v5272_v61  ;;  %v8734_v4 = vpop.f32.mrb[34].mxu1  ;;  %v5377_v20 = vsel %vm5376_vm1, %v12086_v21, 0.0 }
0x117f   :  { %v5387_v3 = vsel %vm5376_vm1, %v12088_v13, 0.0  ;;  %v5315_v46 = vmul.f32 0.01, %v5307_v27  ;;  %v5308_v44 = vadd.f32 %v8734_v4, %v7612_v32  ;;  %v5275_v5 = vpop.f32.mrb[35].mxu1 }
0x1180   :  { %v5388_v45 = vadd.f32 %v5387_v3, %v5386_v55  ;;  %v5378_v9 = vsel %vm5376_vm1, %v12093_v39, 0.0  ;;  %v5313_v19 = vmul.f32 0.01, %v5305_v7  ;;  %v5306_v24 = vadd.f32 %v7612_v32, %v5275_v5 }
0x1181   :  { %v5379_v47 = vadd.f32 %v5378_v9, %v5377_v20  ;;  %v5323_v49 = vmax.f32 %v5307_v27, %v5315_v46  ;;  %v5316_v17 = vmul.f32 0.01, %v5308_v44 }
0x1182   :  { %v5389_v16 = vrot.slane %v5388_v45, 4  ;;  %v5321_v42 = vmax.f32 %v5305_v7, %v5313_v19  ;;  %v5314_v48 = vmul.f32 0.01, %v5306_v24 }
0x1183   :  { %v5380_v38 = vrot.slane %v5379_v47, 4  ;;  %v12105_v57 = vmul.f32 %v7616_v58, %v5323_v49  ;;  %v5324_v29 = vmax.f32 %v5308_v44, %v5316_v17 }
0x1184   :  { %v5390_v41 = vadd.f32 %v5389_v16, %v5388_v45  ;;  %v5353_v30 = vmul.f32 %v7615_v62, %v5321_v42  ;;  %v5322_v63 = vmax.f32 %v5306_v24, %v5314_v48  ;;  %v7617_v62 = vsel %vm528_vm3, 1.0, %v9873_v18 }
0x1185   :  { %v5381_v60 = vadd.f32 %v5380_v38, %v5379_v47  ;;  %v12107_v59 = vmul.f32 0.0, %v5324_v29  ;;  %v5404_v31 = vsel %vm5376_vm1, %v12105_v57, 0.0 }
0x1186   :  { %v5391_v32 = vrot.slane %v5390_v41, 2  ;;  %v5354_v22 = vmul.f32 0.0, %v5322_v63  ;;  %v5395_v43 = vsel %vm5376_vm1, %v5353_v30, 0.0 }
0x1187   :  { %v5382_v52 = vrot.slane %v5381_v60, 2  ;;  %v5405_v56 = vsel %vm5376_vm1, %v12107_v59, 0.0 }
0x1188   :  { %v5406_v28 = vadd.f32 %v5405_v56, %v5404_v31  ;;  %v5396_v12 = vsel %vm5376_vm1, %v5354_v22, 0.0  ;;  %v5392_v26 = vadd.f32 %v5391_v32, %v5390_v41 }
0x1189   :  { %v5397_v0 = vadd.f32 %v5396_v12, %v5395_v43  ;;  %v5383_v37 = vadd.f32 %v5382_v52, %v5381_v60 }
0x118a   :  { %v5407_v1 = vrot.slane %v5406_v28, 4  ;;  %v5393_v53 = vrot.slane %v5392_v26, 1 }
0x118b   :  { %v5398_v15 = vrot.slane %v5397_v0, 4  ;;  %v5384_v23 = vrot.slane %v5383_v37, 1 }
0x118c   :  { %v5408_v35 = vadd.f32 %v5407_v1, %v5406_v28  ;;  %v5394_v27 = vadd.f32 %v5393_v53, %v5392_v26 }
0x118d   :  { %v5399_v54 = vadd.f32 %v5398_v15, %v5397_v0  ;;  %v5385_v61 = vadd.f32 %v5384_v23, %v5383_v37 }
0x118e   :  { %v5409_v6 = vrot.slane %v5408_v35, 2 }
0x118f   :  { %v5400_v34 = vrot.slane %v5399_v54, 2  ;;  %v5417_v20 = vsel %vm777_vm12, %v5394_v27, %v5385_v61 }
0x1190   :  { %v5410_v50 = vadd.f32 %v5409_v6, %v5408_v35 }
0x1191   :  { %v5401_v40 = vadd.f32 %v5400_v34, %v5399_v54 }
0x1192   :  { %v5411_v55 = vrot.slane %v5410_v50, 1 }
0x1193   :  { %v5402_v58 = vrot.slane %v5401_v40, 1 }
0x1194   :  { %v5412_v4 = vadd.f32 %v5411_v55, %v5410_v50 }
0x1195   :  { %v5403_v7 = vadd.f32 %v5402_v58, %v5401_v40 }
0x1197   :  { %v5418_v3 = vsel %vm779_vm13, %v5403_v7, %v5417_v20 }
0x1198   :  { %v5419_v46 = vsel %vm781_vm14, %v5412_v4, %v5418_v3 }
0x1199   :  { %8764 = vmatmul.mubr.msk.f32.vlgmr.msra.gmra.mrb[36].mxu1 %vm5376_vm1, %v5419_v46 }
0x119a   :  { %8913 = vmatprep.mubr.msk.f32.mxu1 %vm9872_vm5, %v9873_v18 }
0x126c   :  { %v5488_v44 = vpop.f32.mrb[36].mxu1 }
0x126d   :  { %v5499_v5 = vrot.slane %v5488_v44, %v10448_v14  ;;  %v8765_v45 = vpop.f32.mrb[37].mxu1 }
0x126f   :  { %v5500_v9 = vcombine.high %v5499_v5, %v5499_v5  ;;  %v5507_v19 = vrot.slane %v5499_v5, %v10448_v14 }
0x1271   :  { %v5514_v24 = vrot.slane %v5500_v9, %v10448_v14  ;;  %v5515_v47 = vcombine.high %v5507_v19, %v5507_v19  ;;  %v5520_v49 = vrot.slane %v5507_v19, %v10451_v25 }
0x1273   :  { %v5516_v17 = vcombine.high %v5514_v24, %v5514_v24  ;;  %v5524_v16 = vrot.slane %v5514_v24, %v10451_v25  ;;  %v5528_v42 = vrot.slane %v5515_v47, %v10451_v25  ;;  %v5537_v48 = vsub.f32 %v12086_v21, %v5520_v49 }
0x1274   :  { %v5538_v38 = vsub.f32 %v12093_v39, %v5520_v49 }
0x1275   :  { %v5532_v29 = vrot.slane %v5516_v17, %v10451_v25  ;;  %v5539_v41 = vsub.f32 %v12083_v36, %v5524_v16  ;;  %v5540_v63 = vsub.f32 %v12088_v13, %v5524_v16  ;;  %v5541_v60 = vsub.f32 %v5353_v30, %v5528_v42 }
0x1276   :  { %v5542_v32 = vsub.f32 %v5354_v22, %v5528_v42  ;;  %v12135_v52 = vmul.f32 %v7617_v62, %v5537_v48  ;;  %v12137_v31 = vmul.f32 0.0, %v5538_v38 }
0x1277   :  { %v5543_v56 = vsub.f32 %v12105_v57, %v5532_v29  ;;  %v5544_v43 = vsub.f32 %v12107_v59, %v5532_v29  ;;  %v12141_v28 = vmul.f32 %v7617_v62, %v5539_v41  ;;  %v12143_v21 = vmul.f32 0.0, %v5540_v63 }
0x1278   :  { %v12145_v39 = vmul.f32 %v7617_v62, %v5541_v60  ;;  %v12147_v12 = vmul.f32 0.0, %v5542_v32  ;;  %v5553_v36 = vmul.f32 %v12135_v52, %v12135_v52  ;;  %v5554_v13 = vmul.f32 %v12137_v31, %v12137_v31 }
0x1279   :  { %v12153_v30 = vmul.f32 %v7617_v62, %v5543_v56  ;;  %v12155_v22 = vmul.f32 0.0, %v5544_v43  ;;  %v5555_v57 = vmul.f32 %v12141_v28, %v12141_v28  ;;  %v5556_v59 = vmul.f32 %v12143_v21, %v12143_v21 }
0x127a   :  { %v5557_v0 = vmul.f32 %v12145_v39, %v12145_v39  ;;  %v5558_v26 = vmul.f32 %v12147_v12, %v12147_v12  ;;  %v5561_v37 = vsel %vm5376_vm1, %v5553_v36, 0.0  ;;  %v5562_v1 = vsel %vm5376_vm1, %v5554_v13, 0.0  ;;  %v9450_v36 = vld [vmem:[%s12768_s13 + $0x38] sm:$0xff]   ;;  %v9451_v13 = vld [vmem:[%s12768_s13 + $0x40] sm:$0xff]  }
0x127b   :  { %v5559_v15 = vmul.f32 %v12153_v30, %v12153_v30  ;;  %v5560_v35 = vmul.f32 %v12155_v22, %v12155_v22  ;;  %v5563_v54 = vadd.f32 %v5562_v1, %v5561_v37  ;;  %v5570_v53 = vsel %vm5376_vm1, %v5555_v57, 0.0  ;;  %8797 = vmatprep.subr.bf16.mxu0 %v9450_v36  ;;  %v9452_v57 = vld [vmem:[%s12768_s13 + $0x48] sm:$0xff]   ;;  %v9457_v1 = vld [vmem:[%s12768_s13] sm:$0xff]  }
0x127c   :  { %v5571_v23 = vsel %vm5376_vm1, %v5556_v59, 0.0  ;;  %v5579_v6 = vsel %vm5376_vm1, %v5557_v0, 0.0  ;;  %v5580_v34 = vsel %vm5376_vm1, %v5558_v26, 0.0  ;;  %v9453_v59 = vld [vmem:[%s12768_s13 + $0x50] sm:$0xff]   ;;  %v9454_v0 = vld [vmem:[%s12768_s13 + $0x58] sm:$0xff]   ;;  %v9455_v26 = vld [vmem:[%s12768_s13 + $0x60] sm:$0xff]  }
0x127d   :  { %v5564_v50 = vrot.slane %v5563_v54, 4  ;;  %v5572_v40 = vadd.f32 %v5571_v23, %v5570_v53  ;;  %v5581_v27 = vadd.f32 %v5580_v34, %v5579_v6  ;;  %v5588_v61 = vsel %vm5376_vm1, %v5559_v15, 0.0  ;;  %v9456_v37 = vld [vmem:[%s12768_s13 + $0x68] sm:$0xff]  }
0x127e   :  { %v5589_v55 = vsel %vm5376_vm1, %v5560_v35, 0.0 }
0x127f   :  { %v5565_v58 = vadd.f32 %v5564_v50, %v5563_v54  ;;  %v5573_v7 = vrot.slane %v5572_v40, 4  ;;  %v5582_v4 = vrot.slane %v5581_v27, 4  ;;  %v5590_v20 = vadd.f32 %v5589_v55, %v5588_v61 }
0x1281   :  { %v5566_v3 = vrot.slane %v5565_v58, 2  ;;  %v5574_v46 = vadd.f32 %v5573_v7, %v5572_v40  ;;  %v5583_v44 = vadd.f32 %v5582_v4, %v5581_v27  ;;  %v5591_v5 = vrot.slane %v5590_v20, 4 }
0x1283   :  { %v5567_v45 = vadd.f32 %v5566_v3, %v5565_v58  ;;  %v5575_v9 = vrot.slane %v5574_v46, 2  ;;  %v5584_v19 = vrot.slane %v5583_v44, 2  ;;  %v5592_v24 = vadd.f32 %v5591_v5, %v5590_v20 }
0x1285   :  { %v5568_v47 = vrot.slane %v5567_v45, 1  ;;  %v5576_v49 = vadd.f32 %v5575_v9, %v5574_v46  ;;  %v5585_v62 = vadd.f32 %v5584_v19, %v5583_v44  ;;  %v5593_v17 = vrot.slane %v5592_v24, 2 }
0x1287   :  { %v5577_v16 = vrot.slane %v5576_v49, 1  ;;  %v5586_v42 = vrot.slane %v5585_v62, 1  ;;  %v5594_v48 = vadd.f32 %v5593_v17, %v5592_v24  ;;  %v5569_v38 = vadd.f32 %v5568_v47, %v5567_v45 }
0x1289   :  { %v5578_v29 = vadd.f32 %v5577_v16, %v5576_v49  ;;  %v5587_v41 = vadd.f32 %v5586_v42, %v5585_v62  ;;  %v5595_v63 = vrot.slane %v5594_v48, 1  ;;  %v9458_v42 = vld [vmem:[%s12768_s13 + $0x8] sm:$0xff]  }
0x128b   :  { %v5596_v60 = vadd.f32 %v5595_v63, %v5594_v48  ;;  %v5601_v32 = vsel %vm777_vm12, %v5578_v29, %v5569_v38  ;;  %v9459_v29 = vld [vmem:[%s12768_s13 + $0x10] sm:$0xff]  }
0x128c   :  { %v5602_v56 = vsel %vm779_vm13, %v5587_v41, %v5601_v32 }
0x128d   :  { %v5603_v43 = vsel %vm781_vm14, %v5596_v60, %v5602_v56 }
0x128e   :  { %8795 = vmatmul.mubr.msk.f32.vlgmr.msra.gmra.mrb[32].mxu0 %vm5376_vm1, %v5603_v43 }
0x128f   :  { %8798 = vmatpush3.bf16.msra.mxu0 %v9450_v36 }
0x1290   :  { %8799 = vmatprep.subr.bf16.mxu0 %v9451_v13 }
0x1293   :  { %8800 = vmatpush3.bf16.msra.mxu0 %v9451_v13 }
0x1294   :  { %8801 = vmatprep.subr.bf16.mxu0 %v9452_v57 }
0x1297   :  { %8802 = vmatpush3.bf16.msra.mxu0 %v9452_v57 }
0x1298   :  { %8803 = vmatprep.subr.bf16.mxu0 %v9453_v59 }
0x129b   :  { %8804 = vmatpush3.bf16.msra.mxu0 %v9453_v59  ;;  %v9460_v59 = vld [vmem:[%s12768_s13 + $0x18] sm:$0xff]  }
0x129c   :  { %8805 = vmatprep.subr.bf16.mxu0 %v9454_v0 }
0x129f   :  { %8806 = vmatpush3.bf16.msra.mxu0 %v9454_v0 }
0x12a0   :  { %8807 = vmatprep.subr.bf16.mxu0 %v9455_v26 }
0x12a3   :  { %8808 = vmatpush3.bf16.msra.mxu0 %v9455_v26 }
0x12a4   :  { %8809 = vmatprep.subr.bf16.mxu0 %v9456_v37 }
0x12a7   :  { %8810 = vmatpush3.bf16.msra.mxu0 %v9456_v37 }
0x12a8   :  { %8819 = vmatprep.subr.bf16.mxu0 %v9457_v1 }
0x1361   :  { %v5672_v15 = vpop.f32.mrb[32].mxu0 }
0x1362   :  { %v5673_v35 = vadd.f32 1e-05, %v5672_v15  ;;  %v8796_v54 = vpop.f32.mrb[33].mxu0 }
0x1364   :  { %9501 = vrsqrt.f32 %v5673_v35 }
0x136e   :  { %v9502_v53 = vpop.eup %9501 }
0x136f   :  { %v5684_v23 = vrot.slane %v9502_v53, %v10448_v14 }
0x1371   :  { %v5685_v6 = vcombine.high %v5684_v23, %v5684_v23  ;;  %v5692_v34 = vrot.slane %v5684_v23, %v10448_v14 }
0x1373   :  { %v5699_v50 = vrot.slane %v5685_v6, %v10448_v14  ;;  %v5700_v40 = vcombine.high %v5692_v34, %v5692_v34  ;;  %v5705_v27 = vrot.slane %v5692_v34, %v10451_v25 }
0x1375   :  { %v5701_v61 = vcombine.high %v5699_v50, %v5699_v50  ;;  %v5709_v55 = vrot.slane %v5699_v50, %v10451_v25  ;;  %v5713_v58 = vrot.slane %v5700_v40, %v10451_v25  ;;  %v12212_v7 = vmul.f32 %v5705_v27, %v12135_v52 }
0x1376   :  { %v12215_v4 = vmul.f32 %v5705_v27, %v12137_v31 }
0x1377   :  { %v5717_v20 = vrot.slane %v5701_v61, %v10451_v25  ;;  %v12219_v3 = vmul.f32 %v5709_v55, %v12141_v28  ;;  %v12222_v46 = vmul.f32 %v5709_v55, %v12143_v21  ;;  %v12225_v44 = vmul.f32 %v5713_v58, %v12145_v39 }
0x1378   :  { %v12228_v5 = vmul.f32 %v5713_v58, %v12147_v12  ;;  %v5749_v52 = vrot.slane %v12212_v7, 1  ;;  %v5750_v45 = vrot.slane %v12215_v4, 1  ;;  %v6184_v60 = vrot.slane %v12212_v7, 3  ;;  %v9461_v58 = vld [vmem:[%s12768_s13 + $0x20] sm:$0xff]  }
0x1379   :  { %v12233_v31 = vmul.f32 %v5717_v20, %v12153_v30  ;;  %v12236_v9 = vmul.f32 %v5717_v20, %v12155_v22  ;;  %v5751_v28 = vrot.slane %v12219_v3, 1  ;;  %v5752_v21 = vrot.slane %v12222_v46, 1 }
0x137a   :  { %v5753_v39 = vrot.slane %v12225_v44, 1  ;;  %v5754_v19 = vrot.slane %v12228_v5, 1  ;;  %v5763_v24 = vsel %vm528_vm3, %v5749_v52, %v5750_v45  ;;  %v5731_v32 = vpack.c.bf16 %v12215_v4, %v12212_v7 }
0x137b   :  { %v5762_v12 = vsel %vm528_vm3, %v5750_v45, %v5751_v28  ;;  %v5761_v30 = vsel %vm528_vm3, %v5751_v28, %v5752_v21  ;;  %v5755_v22 = vrot.slane %v12233_v31, 1  ;;  %v5756_v48 = vrot.slane %v12236_v9, 1 }
0x137c   :  { %v5765_v47 = vpack.c.bf16 %v5762_v12, %v5763_v24  ;;  %v5760_v49 = vsel %vm528_vm3, %v5752_v21, %v5753_v39  ;;  %v5759_v16 = vsel %vm528_vm3, %v5753_v39, %v5754_v19  ;;  %v6185_v56 = vrot.slane %v12215_v4, 3 }
0x137d   :  { %v5766_v62 = vpack.c.bf16 %v5760_v49, %v5761_v30  ;;  %v5758_v17 = vsel %vm528_vm3, %v5754_v19, %v5755_v22  ;;  %v5757_v41 = vsel %vm528_vm3, %v5755_v22, %v5756_v48  ;;  %v5764_v63 = vsel %vm528_vm3, %v5756_v48, %v5749_v52 }
0x137e   :  { %8811 = vmatprep.mubr.msk.bf16.mxu0 %vm5376_vm1, %v5765_v47  ;;  %v5767_v38 = vpack.c.bf16 %v5758_v17, %v5759_v16  ;;  %v5768_v43 = vpack.c.bf16 %v5764_v63, %v5757_v41  ;;  %v6186_v36 = vrot.slane %v12219_v3, 3  ;;  %v6187_v13 = vrot.slane %v12222_v46, 3  ;;  %v9462_v16 = vld [vmem:[%s12768_s13 + $0x28] sm:$0xff]   ;;  %v9463_v41 = vld [vmem:[%s12768_s13 + $0x30] sm:$0xff]  }
0x137f   :  { %8812 = vmatmul.mubr.msk.bf16.vlgmr.msra.gmra.mrb[36].mxu0 %vm5376_vm1, %v5766_v62  ;;  %v6188_v57 = vrot.slane %v12225_v44, 3  ;;  %v12281_v0 = vsel %vm3855_vm7, %v6184_v60, %v6185_v56  ;;  %v6189_v26 = vrot.slane %v12228_v5, 3  ;;  %v6190_v37 = vrot.slane %v12233_v31, 3  ;;  %v9464_v63 = vld [vmem:[%s12768_s13 + $0x70] sm:$0xff]  }
0x1380   :  { %8820 = vmatpush3.bf16.msra.mxu0 %v9457_v1  ;;  %8815 = vmatprep.mubr.msk.bf16.mxu0 %vm5376_vm1, %v5767_v38  ;;  %v6191_v1 = vrot.slane %v12236_v9, 3  ;;  %v12288_v15 = vsel %vm3855_vm7, %v6186_v36, %v6187_v13  ;;  %v12292_v35 = vsel %vm3855_vm7, %v6185_v56, %v6186_v36  ;;  %v6346_v53 = vrot.slane %v12212_v7, 4  ;;  %v9466_v36 = vld [vmem:[%s12768_s13 + $0x80] sm:$0xff]  }
0x1381   :  { %8821 = vmatprep.subr.bf16.mxu0 %v9458_v42  ;;  %v12296_v54 = vsel %vm3855_vm7, %v6187_v13, %v6188_v57  ;;  %v6200_v23 = vpack.c.bf16 %v12292_v35, %v12281_v0  ;;  %v12306_v34 = vsel %vm3855_vm7, %v6189_v26, %v6190_v37  ;;  %v12310_v50 = vsel %vm3855_vm7, %v6188_v57, %v6189_v26  ;;  %v9478_v0 = vld [vmem:[%s12768_s13 + $0xe0] sm:$0xff]   ;;  %v9479_v35 = vld [vmem:[%s12768_s13 + $0xe8] sm:$0xff]  }
0x1382   :  { %v6201_v6 = vpack.c.bf16 %v12296_v54, %v12288_v15  ;;  %v6202_v40 = vpack.c.bf16 %v12306_v34, %v12310_v50  ;;  %v12317_v27 = vsel %vm3855_vm7, %v6190_v37, %v6191_v1  ;;  %v12321_v61 = vsel %vm3855_vm7, %v6191_v1, %v6184_v60  ;;  %v9467_v37 = vld [vmem:[%s12768_s13 + $0x88] sm:$0xff]   ;;  %v9482_v15 = vld [vmem:[%s12768_s13 + $0x100] sm:$0xff]   ;;  %v6570_v34 = vld [vmem:[#allocation23] sm:$0xff] }
0x1383   :  { %v6347_v55 = vrot.slane %v12215_v4, 4  ;;  %v6203_v20 = vpack.c.bf16 %v12321_v61, %v12317_v27  ;;  %v6348_v52 = vrot.slane %v12219_v3, 4  ;;  %v6349_v45 = vrot.slane %v12222_v46, 4  ;;  %v9483_v54 = vld [vmem:[%s12768_s13 + $0x108] sm:$0xff]   ;;  %v6571_v50 = vld [vmem:[#allocation23 + $0x8] sm:$0xff]  ;;  %v12517_v27 = vld [vmem:[#allocation23 + $0x10] sm:$0xff] }
0x1384   :  { %8822 = vmatpush3.bf16.msra.mxu0 %v9458_v42  ;;  %v6350_v28 = vrot.slane %v12225_v44, 4  ;;  %v6351_v39 = vrot.slane %v12228_v5, 4  ;;  %v6352_v19 = vrot.slane %v12233_v31, 4  ;;  %v6353_v12 = vrot.slane %v12236_v9, 4  ;;  %v7731_v61 = vld [vmem:[#allocation19] ss:$0 sm:$0xff] }
0x1385   :  { %8823 = vmatprep.subr.bf16.mxu0 %v9459_v29  ;;  %v12334_v21 = vsel %vm3996_vm2, %v6346_v53, %v6347_v55  ;;  %v12341_v24 = vsel %vm3996_vm2, %v6348_v52, %v6349_v45  ;;  %v12345_v30 = vsel %vm3996_vm2, %v6347_v55, %v6348_v52  ;;  %v5732_v60 = vpack.c.bf16 %v12222_v46, %v12219_v3 }
0x1386   :  { %v12349_v22 = vsel %vm3996_vm2, %v6349_v45, %v6350_v28  ;;  %v6362_v47 = vpack.c.bf16 %v12345_v30, %v12334_v21  ;;  %v12357_v62 = vsel %vm3996_vm2, %v6351_v39, %v6352_v19  ;;  %v12361_v17 = vsel %vm3996_vm2, %v6350_v28, %v6351_v39  ;;  %v9471_v45 = vld [vmem:[%s12768_s13 + $0xa8] sm:$0xff]  }
0x1387   :  { %8816 = vmatmul.mubr.msk.bf16.gmra.mrb[40].mxu0 %vm5376_vm1, %v5768_v43  ;;  %v6363_v49 = vpack.c.bf16 %v12349_v22, %v12341_v24  ;;  %v6364_v42 = vpack.c.bf16 %v12357_v62, %v12361_v17  ;;  %v12370_v48 = vsel %vm3996_vm2, %v6352_v19, %v6353_v12  ;;  %v12374_v38 = vsel %vm3996_vm2, %v6353_v12, %v6346_v53  ;;  %v9470_v53 = vld [vmem:[%s12768_s13 + $0xa0] sm:$0xff]   ;;  %v9472_v12 = vld [vmem:[%s12768_s13 + $0xb0] sm:$0xff]  }
0x1388   :  { %8824 = vmatpush3.bf16.msra.mxu0 %v9459_v29  ;;  %8833 = vmatprep.mubr.msk.bf16.mxu0 %vm5376_vm1, %v5731_v32  ;;  %v6365_v29 = vpack.c.bf16 %v12374_v38, %v12370_v48  ;;  %v9465_v32 = vld [vmem:[%s12768_s13 + $0x78] sm:$0xff]   ;;  %v5733_v56 = vpack.c.bf16 %v12228_v5, %v12225_v44  ;;  %v6024_v43 = vrot.slane %v12219_v3, 2  ;;  %v6022_v13 = vrot.slane %v12212_v7, 2  ;;  %v9468_v7 = vld [vmem:[%s12768_s13 + $0x90] sm:$0xff]  }
0x1389   :  { %8825 = vmatprep.subr.bf16.mxu0 %v9460_v59  ;;  %v6023_v57 = vrot.slane %v12215_v4, 2  ;;  %v5734_v26 = vpack.c.bf16 %v12236_v9, %v12233_v31  ;;  %v9469_v4 = vld [vmem:[%s12768_s13 + $0x98] sm:$0xff]   ;;  %v6025_v55 = vrot.slane %v12222_v46, 2  ;;  %v6028_v52 = vrot.slane %v12233_v31, 2 }
0x138a   :  { %v6027_v28 = vrot.slane %v12228_v5, 2  ;;  %vm6540_vm2 = vcmp.lt.s32.totalorder %v12068_v11, 3  ;;  %vm6538_vm7 = vcmp.lt.s32.totalorder %v12071_v51, 3 }
0x138b   :  { %v6036_v3 = vsel %vm3714_vm6, %v6022_v13, %v6023_v57  ;;  %v6034_v39 = vsel %vm3714_vm6, %v6024_v43, %v6025_v55  ;;  %v7733_v17 = vsel %vm6540_vm2, 1.0, %v9873_v18 }
0x138c   :  { %8826 = vmatpush3.bf16.msra.mxu0 %v9460_v59  ;;  %v6035_v59 = vsel %vm3714_vm6, %v6023_v57, %v6024_v43  ;;  %v6031_v46 = vsel %vm3714_vm6, %v6027_v28, %v6028_v52  ;;  %v9476_v43 = vld [vmem:[%s12768_s13 + $0xd0] sm:$0xff]  }
0x138d   :  { %8827 = vmatprep.subr.bf16.mxu0 %v9461_v58  ;;  %v6038_v1 = vpack.c.bf16 %v6035_v59, %v6036_v3 }
0x1390   :  { %8828 = vmatpush3.bf16.msra.mxu0 %v9461_v58  ;;  %v6026_v58 = vrot.slane %v12225_v44, 2 }
0x1391   :  { %8829 = vmatprep.subr.bf16.mxu0 %v9462_v16 }
0x1392   :  { %v6033_v19 = vsel %vm3714_vm6, %v6025_v55, %v6026_v58  ;;  %v6032_v31 = vsel %vm3714_vm6, %v6026_v58, %v6027_v28 }
0x1393   :  { %v6039_v44 = vpack.c.bf16 %v6033_v19, %v6034_v39  ;;  %v6040_v5 = vpack.c.bf16 %v6031_v46, %v6032_v31 }
0x1394   :  { %8830 = vmatpush3.bf16.msra.mxu0 %v9462_v16  ;;  %v6029_v16 = vrot.slane %v12236_v9, 2  ;;  %v9474_v9 = vld [vmem:[%s12768_s13 + $0xc0] sm:$0xff]  }
0x1395   :  { %8831 = vmatprep.subr.bf16.mxu0 %v9463_v41 }
0x1398   :  { %8832 = vmatpush3.bf16.msra.mxu0 %v9463_v41  ;;  %v9473_v41 = vld [vmem:[%s12768_s13 + $0xb8] sm:$0xff]  }
0x1399   :  { %8841 = vmatprep.subr.bf16.mxu0 %v9464_v63 }
0x139b   :  { %8834 = vmatmul.mubr.msk.bf16.vlgmr.msra.gmra.mrb[36].mxu0 %vm5376_vm1, %v5732_v60  ;;  %v6037_v60 = vsel %vm3714_vm6, %v6029_v16, %v6022_v13  ;;  %v9481_v13 = vld [vmem:[%s12768_s13 + $0xf8] sm:$0xff]  }
0x139c   :  { %8837 = vmatprep.mubr.msk.bf16.mxu0 %vm5376_vm1, %v5733_v56  ;;  %8842 = vmatpush3.bf16.msra.mxu0 %v9464_v63  ;;  %v6030_v63 = vsel %vm3714_vm6, %v6028_v52, %v6029_v16  ;;  %v9475_v56 = vld [vmem:[%s12768_s13 + $0xc8] sm:$0xff]  }
0x139d   :  { %8843 = vmatprep.subr.bf16.mxu0 %v9465_v32 }
0x13a0   :  { %8844 = vmatpush3.bf16.msra.mxu0 %v9465_v32  ;;  %v6041_v32 = vpack.c.bf16 %v6037_v60, %v6030_v63 }
0x13a1   :  { %8845 = vmatprep.subr.bf16.mxu0 %v9466_v36 }
0x13a3   :  { %8838 = vmatmul.mubr.msk.bf16.gmra.mrb[40].mxu0 %vm5376_vm1, %v5734_v26 }
0x13a4   :  { %8846 = vmatpush3.bf16.msra.mxu0 %v9466_v36  ;;  %8855 = vmatprep.mubr.msk.bf16.mxu0 %vm5376_vm1, %v6038_v1  ;;  %v9477_v36 = vld [vmem:[%s12768_s13 + $0xd8] sm:$0xff]  }
0x13a5   :  { %8847 = vmatprep.subr.bf16.mxu0 %v9467_v37 }
0x13a8   :  { %8848 = vmatpush3.bf16.msra.mxu0 %v9467_v37 }
0x13a9   :  { %8849 = vmatprep.subr.bf16.mxu0 %v9468_v7 }
0x13ac   :  { %8850 = vmatpush3.bf16.msra.mxu0 %v9468_v7 }
0x13ad   :  { %8851 = vmatprep.subr.bf16.mxu0 %v9469_v4 }
0x13b0   :  { %8852 = vmatpush3.bf16.msra.mxu0 %v9469_v4 }
0x13b1   :  { %8853 = vmatprep.subr.bf16.mxu0 %v9470_v53 }
0x13b4   :  { %8854 = vmatpush3.bf16.msra.mxu0 %v9470_v53 }
0x13b5   :  { %8863 = vmatprep.subr.bf16.mxu0 %v9471_v45 }
0x13b7   :  { %8856 = vmatmul.mubr.msk.bf16.vlgmr.msra.gmra.mrb[36].mxu0 %vm5376_vm1, %v6039_v44 }
0x13b8   :  { %8859 = vmatprep.mubr.msk.bf16.mxu0 %vm5376_vm1, %v6040_v5  ;;  %8864 = vmatpush3.bf16.msra.mxu0 %v9471_v45  ;;  %v7735_v45 = vsel %vm6544_vm11, 1.0, %v9873_v18 }
0x13b9   :  { %8865 = vmatprep.subr.bf16.mxu0 %v9472_v12 }
0x13bc   :  { %8866 = vmatpush3.bf16.msra.mxu0 %v9472_v12 }
0x13bd   :  { %8867 = vmatprep.subr.bf16.mxu0 %v9473_v41 }
0x13bf   :  { %8860 = vmatmul.mubr.msk.bf16.gmra.mrb[40].mxu0 %vm5376_vm1, %v6041_v32 }
0x13c0   :  { %8868 = vmatpush3.bf16.msra.mxu0 %v9473_v41  ;;  %8877 = vmatprep.mubr.msk.bf16.mxu0 %vm5376_vm1, %v6200_v23  ;;  %v9480_v23 = vld [vmem:[%s12768_s13 + $0xf0] sm:$0xff]  }
0x13c1   :  { %8869 = vmatprep.subr.bf16.mxu0 %v9474_v9 }
0x13c4   :  { %8870 = vmatpush3.bf16.msra.mxu0 %v9474_v9  ;;  %v7734_v9 = vsel %vm6542_vm15, 1.0, %v9873_v18 }
0x13c5   :  { %8871 = vmatprep.subr.bf16.mxu0 %v9475_v56 }
0x13c8   :  { %8872 = vmatpush3.bf16.msra.mxu0 %v9475_v56 }
0x13c9   :  { %8873 = vmatprep.subr.bf16.mxu0 %v9476_v43 }
0x13cc   :  { %8874 = vmatpush3.bf16.msra.mxu0 %v9476_v43 }
0x13cd   :  { %8875 = vmatprep.subr.bf16.mxu0 %v9477_v36 }
0x13d0   :  { %8876 = vmatpush3.bf16.msra.mxu0 %v9477_v36 }
0x13d1   :  { %8885 = vmatprep.subr.bf16.mxu0 %v9478_v0 }
0x13d3   :  { %8878 = vmatmul.mubr.msk.bf16.vlgmr.msra.gmra.mrb[36].mxu0 %vm5376_vm1, %v6201_v6  ;;  %v9484_v6 = vld [vmem:[%s12768_s13 + $0x110] sm:$0xff]  }
0x13d4   :  { %8881 = vmatprep.mubr.msk.bf16.mxu0 %vm5376_vm1, %v6202_v40  ;;  %8886 = vmatpush3.bf16.msra.mxu0 %v9478_v0  ;;  %v12513_v40 = vpack.c.bf16 %v6571_v50, %v6570_v34 }
0x13d5   :  { %8887 = vmatprep.subr.bf16.mxu0 %v9479_v35 }
0x13d6   :  { %9139 = vmatpush3.bf16.msra.mxu1 %v12513_v40 }
0x13d7   :  { %8911 = vmatprep.subr.mxu1 %v9873_v18 }
0x13d8   :  { %8888 = vmatpush3.bf16.msra.mxu0 %v9479_v35 }
0x13d9   :  { %8889 = vmatprep.subr.bf16.mxu0 %v9480_v23 }
0x13da   :  { %8912 = vmatpush3.msra.mxu1 %v12517_v27 }
0x13db   :  { %8882 = vmatmul.mubr.msk.bf16.gmra.mrb[40].mxu0 %vm5376_vm1, %v6203_v20  ;;  %9140 = vmatprep.subr.bf16.mxu1 %v9871_v10  ;;  %v7732_v10 = vsel %vm6538_vm7, 1.0, %v9873_v18 }
0x13dc   :  { %8890 = vmatpush3.bf16.msra.mxu0 %v9480_v23  ;;  %8899 = vmatprep.mubr.msk.bf16.mxu0 %vm5376_vm1, %v6362_v47 }
0x13dd   :  { %8891 = vmatprep.subr.bf16.mxu0 %v9481_v13 }
0x13e0   :  { %8892 = vmatpush3.bf16.msra.mxu0 %v9481_v13 }
0x13e1   :  { %8893 = vmatprep.subr.bf16.mxu0 %v9482_v15 }
0x13e4   :  { %8894 = vmatpush3.bf16.msra.mxu0 %v9482_v15 }
0x13e5   :  { %8895 = vmatprep.subr.bf16.mxu0 %v9483_v54 }
0x13e8   :  { %8896 = vmatpush3.bf16.msra.mxu0 %v9483_v54 }
0x13e9   :  { %8897 = vmatprep.subr.bf16.mxu0 %v9484_v6 }
0x13ec   :  { %8898 = vmatpush3.bf16.msra.mxu0 %v9484_v6 }
0x13ef   :  { %8900 = vmatmul.mubr.msk.bf16.vlgmr.msra.gmra.mrb[36].mxu0 %vm5376_vm1, %v6363_v49 }
0x13f0   :  { %8903 = vmatprep.mubr.msk.bf16.mxu0 %vm5376_vm1, %v6364_v42 }
0x13f7   :  { %8904 = vmatmul.mubr.msk.bf16.gmra.mrb[40].mxu0 %vm5376_vm1, %v6365_v29  ;;  %vm7293_vm1 = vcmask 60416  }
0x14c2   :  { %v8901_v20 = vpop.f32.mrb[36].mxu0 }
0x14c3   :  { %v6516_v21 = vadd.f32 %v8901_v20, %v7731_v61  ;;  %v6469_v24 = vpop.f32.mrb[37].mxu0 }
0x14c4   :  { %v6514_v30 = vadd.f32 %v7731_v61, %v6469_v24  ;;  %v8902_v22 = vpop.f32.mrb[38].mxu0 }
0x14c5   :  { %v6524_v47 = vmul.f32 0.01, %v6516_v21  ;;  %v6517_v49 = vadd.f32 %v8902_v22, %v7731_v61  ;;  %v6472_v62 = vpop.f32.mrb[39].mxu0 }
0x14c6   :  { %v6522_v42 = vmul.f32 0.01, %v6514_v30  ;;  %v6515_v48 = vadd.f32 %v7731_v61, %v6472_v62 }
0x14c7   :  { %v6532_v38 = vmax.f32 %v6516_v21, %v6524_v47  ;;  %v6525_v29 = vmul.f32 0.01, %v6517_v49 }
0x14c8   :  { %v6530_v57 = vmax.f32 %v6514_v30, %v6522_v42  ;;  %v6523_v59 = vmul.f32 0.01, %v6515_v48 }
0x14c9   :  { %v12525_v26 = vmul.f32 %v7733_v17, %v6532_v38  ;;  %v6533_v3 = vmax.f32 %v6517_v49, %v6525_v29 }
0x14ca   :  { %v12528_v37 = vmul.f32 %v7732_v10, %v6530_v57  ;;  %v6531_v1 = vmax.f32 %v6515_v48, %v6523_v59  ;;  %v8905_v7 = vpop.f32.mrb[40].mxu0 }
0x14cb   :  { %v12530_v4 = vmul.f32 0.0, %v6533_v3  ;;  %v6520_v53 = vadd.f32 %v8905_v7, %v7731_v61  ;;  %v6485_v55 = vpop.f32.mrb[41].mxu0  ;;  %v6589_v58 = vsel %vm6579_vm10, %v12525_v26, 0.0 }
0x14cc   :  { %v12535_v52 = vmul.f32 0.0, %v6531_v1  ;;  %v6518_v28 = vadd.f32 %v7731_v61, %v6485_v55  ;;  %v8906_v39 = vpop.f32.mrb[42].mxu0  ;;  %v6580_v19 = vsel %vm6579_vm10, %v12528_v37, 0.0 }
0x14cd   :  { %v6590_v46 = vsel %vm6579_vm10, %v12530_v4, 0.0  ;;  %v6528_v44 = vmul.f32 0.01, %v6520_v53  ;;  %v6521_v31 = vadd.f32 %v8906_v39, %v7731_v61  ;;  %v6488_v12 = vpop.f32.mrb[43].mxu0 }
0x14ce   :  { %v6591_v5 = vadd.f32 %v6590_v46, %v6589_v58  ;;  %v6581_v16 = vsel %vm6579_vm10, %v12535_v52, 0.0  ;;  %v6526_v41 = vmul.f32 0.01, %v6518_v28  ;;  %v6519_v63 = vadd.f32 %v7731_v61, %v6488_v12 }
0x14cf   :  { %v6582_v60 = vadd.f32 %v6581_v16, %v6580_v19  ;;  %v6536_v32 = vmax.f32 %v6520_v53, %v6528_v44  ;;  %v6529_v56 = vmul.f32 0.01, %v6521_v31 }
0x14d0   :  { %v6592_v43 = vrot.slane %v6591_v5, 4  ;;  %v6534_v36 = vmax.f32 %v6518_v28, %v6526_v41  ;;  %v6527_v0 = vmul.f32 0.01, %v6519_v63 }
0x14d1   :  { %v6583_v35 = vrot.slane %v6582_v60, 4  ;;  %v12547_v23 = vmul.f32 %v7735_v45, %v6536_v32  ;;  %v6537_v13 = vmax.f32 %v6521_v31, %v6529_v56 }
0x14d2   :  { %v6593_v15 = vadd.f32 %v6592_v43, %v6591_v5  ;;  %v12549_v54 = vmul.f32 %v7734_v9, %v6534_v36  ;;  %v6535_v6 = vmax.f32 %v6519_v63, %v6527_v0  ;;  %v7736_v9 = vsel %vm6573_vm0, 1.0, %v9873_v18 }
0x14d3   :  { %v6584_v34 = vadd.f32 %v6583_v35, %v6582_v60  ;;  %v12551_v50 = vmul.f32 0.0, %v6537_v13  ;;  %v6607_v24 = vsel %vm6579_vm10, %v12547_v23, 0.0 }
0x14d4   :  { %v6594_v61 = vrot.slane %v6593_v15, 2  ;;  %v6567_v20 = vmul.f32 0.0, %v6535_v6  ;;  %v6598_v22 = vsel %vm6579_vm10, %v12549_v54, 0.0 }
0x14d5   :  { %v6585_v21 = vrot.slane %v6584_v34, 2  ;;  %v6608_v30 = vsel %vm6579_vm10, %v12551_v50, 0.0 }
0x14d6   :  { %v6609_v47 = vadd.f32 %v6608_v30, %v6607_v24  ;;  %v6599_v49 = vsel %vm6579_vm10, %v6567_v20, 0.0  ;;  %v6595_v17 = vadd.f32 %v6594_v61, %v6593_v15 }
0x14d7   :  { %v6600_v62 = vadd.f32 %v6599_v49, %v6598_v22  ;;  %v6586_v42 = vadd.f32 %v6585_v21, %v6584_v34 }
0x14d8   :  { %v6610_v48 = vrot.slane %v6609_v47, 4  ;;  %v6596_v57 = vrot.slane %v6595_v17, 1 }
0x14d9   :  { %v6601_v38 = vrot.slane %v6600_v62, 4  ;;  %v6587_v59 = vrot.slane %v6586_v42, 1 }
0x14da   :  { %v6611_v10 = vadd.f32 %v6610_v48, %v6609_v47  ;;  %v6597_v55 = vadd.f32 %v6596_v57, %v6595_v17 }
0x14db   :  { %v6602_v29 = vadd.f32 %v6601_v38, %v6600_v62  ;;  %v6588_v58 = vadd.f32 %v6587_v59, %v6586_v42 }
0x14dc   :  { %v6612_v3 = vrot.slane %v6611_v10, 2 }
0x14dd   :  { %v6603_v1 = vrot.slane %v6602_v29, 2  ;;  %v6620_v46 = vsel %vm777_vm12, %v6597_v55, %v6588_v58 }
0x14de   :  { %v6613_v7 = vadd.f32 %v6612_v3, %v6611_v10 }
0x14df   :  { %v6604_v53 = vadd.f32 %v6603_v1, %v6602_v29 }
0x14e0   :  { %v6614_v45 = vrot.slane %v6613_v7, 1 }
0x14e1   :  { %v6605_v28 = vrot.slane %v6604_v53, 1 }
0x14e2   :  { %v6615_v19 = vadd.f32 %v6614_v45, %v6613_v7 }
0x14e3   :  { %v6606_v39 = vadd.f32 %v6605_v28, %v6604_v53 }
0x14e5   :  { %v6621_v44 = vsel %vm779_vm13, %v6606_v39, %v6620_v46 }
0x14e6   :  { %v6622_v31 = vsel %vm781_vm14, %v6615_v19, %v6621_v44 }
0x14e7   :  { %8914 = vmatmul.mubr.msk.f32.vlgmr.msra.gmra.mrb[38].mxu1 %vm6579_vm10, %v6622_v31 }
0x14e8   :  { %9142 = vmatpush3.bf16.msra.mxu1 %v12513_v40  ;;  %8922 = vmatprep.mubr.msk.f32.mxu1 %vm9872_vm5, %v9873_v18  ;;  %vm7269_vm5 = vcmp.lt.s32.totalorder %v12077_v2, 1 }
0x14e9   :  { %8920 = vmatprep.subr.mxu1 %v9873_v18 }
0x14ec   :  { %8921 = vmatpush3.msra.mxu1 %v12517_v27 }
0x15ba   :  { %v6691_v12 = vpop.f32.mrb[38].mxu1 }
0x15bb   :  { %v6702_v5 = vrot.slane %v6691_v12, %v10448_v14  ;;  %v8915_v16 = vpop.f32.mrb[39].mxu1 }
0x15bd   :  { %v6703_v41 = vcombine.high %v6702_v5, %v6702_v5  ;;  %v6710_v63 = vrot.slane %v6702_v5, %v10448_v14 }
0x15bf   :  { %v6717_v60 = vrot.slane %v6703_v41, %v10448_v14  ;;  %v6718_v32 = vcombine.high %v6710_v63, %v6710_v63  ;;  %v6723_v40 = vrot.slane %v6710_v63, %v10451_v25 }
0x15c1   :  { %v6719_v56 = vcombine.high %v6717_v60, %v6717_v60  ;;  %v6727_v43 = vrot.slane %v6717_v60, %v10451_v25  ;;  %v6731_v27 = vrot.slane %v6718_v32, %v10451_v25  ;;  %v6740_v36 = vsub.f32 %v12528_v37, %v6723_v40 }
0x15c2   :  { %v6741_v0 = vsub.f32 %v12535_v52, %v6723_v40 }
0x15c3   :  { %v6735_v35 = vrot.slane %v6719_v56, %v10451_v25  ;;  %v6742_v13 = vsub.f32 %v12525_v26, %v6727_v43  ;;  %v6743_v15 = vsub.f32 %v12530_v4, %v6727_v43  ;;  %v6744_v6 = vsub.f32 %v12549_v54, %v6731_v27 }
0x15c4   :  { %v6745_v34 = vsub.f32 %v6567_v20, %v6731_v27  ;;  %v12583_v61 = vmul.f32 %v7736_v9, %v6740_v36  ;;  %v12585_v21 = vmul.f32 0.0, %v6741_v0 }
0x15c5   :  { %v6746_v24 = vsub.f32 %v12547_v23, %v6735_v35  ;;  %v6747_v30 = vsub.f32 %v12551_v50, %v6735_v35  ;;  %v12589_v37 = vmul.f32 %v7736_v9, %v6742_v13  ;;  %v12591_v52 = vmul.f32 0.0, %v6743_v15 }
0x15c6   :  { %v12593_v22 = vmul.f32 %v7736_v9, %v6744_v6  ;;  %v12595_v26 = vmul.f32 0.0, %v6745_v34  ;;  %v6756_v4 = vmul.f32 %v12583_v61, %v12583_v61  ;;  %v6757_v54 = vmul.f32 %v12585_v21, %v12585_v21 }
0x15c7   :  { %v12601_v20 = vmul.f32 %v7736_v9, %v6746_v24  ;;  %v12603_v47 = vmul.f32 0.0, %v6747_v30  ;;  %v6758_v23 = vmul.f32 %v12589_v37, %v12589_v37  ;;  %v6759_v50 = vmul.f32 %v12591_v52, %v12591_v52  ;;  %v9485_v30 = vld [vmem:[%s12770_s15 + $0xc] sm:$0xff]  }
0x15c8   :  { %v6760_v49 = vmul.f32 %v12593_v22, %v12593_v22  ;;  %v6761_v62 = vmul.f32 %v12595_v26, %v12595_v26  ;;  %v6764_v17 = vsel %vm6579_vm10, %v6756_v4, 0.0  ;;  %v6765_v42 = vsel %vm6579_vm10, %v6757_v54, 0.0  ;;  %v9486_v4 = vld [vmem:[%s12770_s15 + $0x14] ss:$0 sps:$4 sm:$0xff]   ;;  %8925 = vmatprep.subr.bf16.mxu1 %v9485_v30 }
0x15c9   :  { %v6762_v48 = vmul.f32 %v12601_v20, %v12601_v20  ;;  %v6763_v38 = vmul.f32 %v12603_v47, %v12603_v47  ;;  %v6766_v10 = vadd.f32 %v6765_v42, %v6764_v17  ;;  %v6773_v29 = vsel %vm6579_vm10, %v6758_v23, 0.0  ;;  %v9487_v23 = vld [vmem:[%s12770_s15] sm:$0xff]  }
0x15ca   :  { %v6774_v57 = vsel %vm6579_vm10, %v6759_v50, 0.0  ;;  %v6782_v59 = vsel %vm6579_vm10, %v6760_v49, 0.0  ;;  %v6783_v3 = vsel %vm6579_vm10, %v6761_v62, 0.0  ;;  %v6987_v54 = vsel %vm785_vm4, %v9486_v4, 0 }
0x15cb   :  { %v6767_v1 = vrot.slane %v6766_v10, 4  ;;  %v6775_v7 = vadd.f32 %v6774_v57, %v6773_v29  ;;  %v6784_v53 = vadd.f32 %v6783_v3, %v6782_v59  ;;  %v6791_v55 = vsel %vm6579_vm10, %v6762_v48, 0.0 }
0x15cc   :  { %v6792_v58 = vsel %vm6579_vm10, %v6763_v38, 0.0 }
0x15cd   :  { %v6768_v45 = vadd.f32 %v6767_v1, %v6766_v10  ;;  %v6776_v28 = vrot.slane %v6775_v7, 4  ;;  %v6785_v39 = vrot.slane %v6784_v53, 4  ;;  %v6793_v19 = vadd.f32 %v6792_v58, %v6791_v55 }
0x15cf   :  { %v6769_v46 = vrot.slane %v6768_v45, 2  ;;  %v6777_v44 = vadd.f32 %v6776_v28, %v6775_v7  ;;  %v6786_v31 = vadd.f32 %v6785_v39, %v6784_v53  ;;  %v6794_v12 = vrot.slane %v6793_v19, 4 }
0x15d1   :  { %v6770_v5 = vadd.f32 %v6769_v46, %v6768_v45  ;;  %v6778_v16 = vrot.slane %v6777_v44, 2  ;;  %v6787_v41 = vrot.slane %v6786_v31, 2  ;;  %v6795_v63 = vadd.f32 %v6794_v12, %v6793_v19 }
0x15d3   :  { %v6771_v60 = vrot.slane %v6770_v5, 1  ;;  %v6779_v32 = vadd.f32 %v6778_v16, %v6777_v44  ;;  %v6788_v40 = vadd.f32 %v6787_v41, %v6786_v31  ;;  %v6796_v9 = vrot.slane %v6795_v63, 2 }
0x15d5   :  { %v6780_v56 = vrot.slane %v6779_v32, 1  ;;  %v6789_v43 = vrot.slane %v6788_v40, 1  ;;  %v6797_v27 = vadd.f32 %v6796_v9, %v6795_v63  ;;  %v6772_v36 = vadd.f32 %v6771_v60, %v6770_v5 }
0x15d7   :  { %v6781_v0 = vadd.f32 %v6780_v56, %v6779_v32  ;;  %v6790_v35 = vadd.f32 %v6789_v43, %v6788_v40  ;;  %v6798_v13 = vrot.slane %v6797_v27, 1  ;;  %v9489_v40 = vld [vmem:[%s12770_s15 + $0x18] sm:$0xff]  }
0x15d9   :  { %v6799_v15 = vadd.f32 %v6798_v13, %v6797_v27  ;;  %v6804_v6 = vsel %vm777_vm12, %v6781_v0, %v6772_v36  ;;  %v9490_v0 = vld [vmem:[%s12770_s15 + $0x20] ss:$0 sps:$4 sm:$0xff]  }
0x15da   :  { %v6805_v34 = vsel %vm779_vm13, %v6790_v35, %v6804_v6 }
0x15db   :  { %v6806_v24 = vsel %vm781_vm14, %v6799_v15, %v6805_v34  ;;  %v7181_v15 = vsel %vm785_vm4, %v9490_v0, 0 }
0x15dc   :  { %8923 = vmatmul.mubr.msk.f32.vlgmr.msra.gmra.mrb[40].mxu1 %vm6579_vm10, %v6806_v24 }
0x15dd   :  { %8926 = vmatpush3.bf16.msra.mxu1 %v9485_v30 }
0x15de   :  { %9325 = vmatprep.subr.msk.bf16.mxu1 %vm785_vm4, %v9486_v4 }
0x15e1   :  { %8928 = vmatpush3.bf16.msra.mxu1 %v6987_v54 }
0x15e2   :  { %8937 = vmatprep.subr.bf16.mxu1 %v9487_v23 }
0x16af   :  { %v6875_v50 = vpop.f32.mrb[40].mxu1 }
0x16b0   :  { %v6876_v49 = vadd.f32 1e-05, %v6875_v50  ;;  %v8924_v62 = vpop.f32.mrb[41].mxu1 }
0x16b2   :  { %9503 = vrsqrt.f32 %v6876_v49 }
0x16bc   :  { %v9504_v17 = vpop.eup %9503 }
0x16bd   :  { %v6887_v42 = vrot.slane %v9504_v17, %v10448_v14 }
0x16bf   :  { %v6888_v48 = vcombine.high %v6887_v42, %v6887_v42  ;;  %v6895_v38 = vrot.slane %v6887_v42, %v10448_v14 }
0x16c1   :  { %v6902_v10 = vrot.slane %v6888_v48, %v10448_v14  ;;  %v6903_v29 = vcombine.high %v6895_v38, %v6895_v38  ;;  %v6908_v57 = vrot.slane %v6895_v38, %v10451_v25 }
0x16c3   :  { %v6904_v59 = vcombine.high %v6902_v10, %v6902_v10  ;;  %v6912_v3 = vrot.slane %v6902_v10, %v10451_v25  ;;  %v6916_v1 = vrot.slane %v6903_v29, %v10451_v25  ;;  %v12647_v7 = vmul.f32 %v6908_v57, %v12583_v61 }
0x16c4   :  { %v6926_v53 = vmul.f32 %v6908_v57, %v12585_v21 }
0x16c5   :  { %v12651_v55 = vmul.f32 %v6912_v3, %v12591_v52  ;;  %v12654_v58 = vmul.f32 %v6916_v1, %v12593_v22  ;;  %v6927_v14 = vmul.f32 %v6912_v3, %v12589_v37  ;;  %v6941_v45 = vrot.slane %v12647_v7, 1 }
0x16c6   :  { %v6942_v28 = vrot.slane %v6926_v53, 1  ;;  %v6920_v39 = vrot.slane %v6904_v59, %v10451_v25  ;;  %v6930_v19 = vmul.f32 %v6916_v1, %v12595_v26  ;;  %v6934_v27 = vpack.c.bf16 %v6926_v53, %v12647_v7 }
0x16c7   :  { %v6943_v46 = vrot.slane %v6927_v14, 1  ;;  %v6944_v61 = vrot.slane %v12651_v55, 1  ;;  %v6945_v21 = vrot.slane %v12654_v58, 1  ;;  %v6935_v36 = vpack.c.bf16 %v12651_v55, %v6927_v14 }
0x16c8   :  { %v12663_v52 = vmul.f32 %v6920_v39, %v12601_v20  ;;  %v6946_v44 = vrot.slane %v6930_v19, 1  ;;  %v6932_v22 = vmul.f32 %v6920_v39, %v12603_v47  ;;  %v6955_v31 = vsel %vm528_vm3, %v6941_v45, %v6942_v28  ;;  %v9488_v47 = vld [vmem:[%s12770_s15 + $0x8] ss:$0 sps:$4 sm:$0xff]   ;;  %s9876_s15 = smov [#allocation25]  }
0x16c9   :  { %v6954_v37 = vsel %vm528_vm3, %v6942_v28, %v6943_v46  ;;  %v6952_v25 = vsel %vm528_vm3, %v6944_v61, %v6945_v21  ;;  %v6953_v26 = vsel %vm528_vm3, %v6943_v46, %v6944_v61  ;;  %v7072_v32 = vsel %vm785_vm4, %v9488_v47, 0  ;;  %s7301_s1 = sshll.u32 %s9876_s15, 4  ;;  %s7302_s1 = int_to_ptr.vmem [resolvable:$true] %s7301_s1 }
0x16ca   :  { %v6957_v12 = vpack.c.bf16 %v6954_v37, %v6955_v31  ;;  %v6958_v5 = vpack.c.bf16 %v6952_v25, %v6953_v26  ;;  %v6947_v20 = vrot.slane %v12663_v52, 1  ;;  %v6951_v41 = vsel %vm528_vm3, %v6945_v21, %v6946_v44  ;;  %s9813_s28 = scalar_lea.vmem %s7302_s1, 64  ;;  %p9818_p1 = scmp.lt.s32.totalorder %s7302_s1, %s7302_s1 }
0x16cb   :  { %v6948_v63 = vrot.slane %v6932_v22, 1  ;;  %v6936_v35 = vpack.c.bf16 %v6930_v19, %v12654_v58  ;;  %v7137_v13 = vrot.slane %v6927_v14, 2  ;;  %v7135_v6 = vrot.slane %v12647_v7, 2  ;;  %p9814_p0 = scmp.ne.s32.totalorder %s7302_s1, %s9813_s28  ;;  %p9819_p2 = scmp.lt.s32.totalorder %s9813_s28, %s9813_s28 }
0x16cc   :  { %8929 = vmatprep.mubr.msk.bf16.mxu1 %vm6579_vm10, %v6957_v12  ;;  %v6950_v16 = vsel %vm528_vm3, %v6946_v44, %v6947_v20  ;;  %v7136_v34 = vrot.slane %v6926_v53, 2  ;;  %v6937_v30 = vpack.c.bf16 %v6932_v22, %v12663_v52  ;;  %v7138_v54 = vrot.slane %v12651_v55, 2  ;;  %v7763_v12 = vld [vmem:[#allocation20] ss:$0 sm:$0xff] }
0x16cd   :  { %8930 = vmatmul.mubr.msk.bf16.vlgmr.msra.gmra.mrb[44].mxu1 %vm6579_vm10, %v6958_v5  ;;  %v6959_v60 = vpack.c.bf16 %v6950_v16, %v6951_v41  ;;  %v6949_v9 = vsel %vm528_vm3, %v6947_v20, %v6948_v63  ;;  %v6956_v56 = vsel %vm528_vm3, %v6948_v63, %v6941_v45  ;;  %v7139_v50 = vrot.slane %v12654_v58, 2  ;;  %p9820_p3 = por %p9819_p2, %p9818_p1 }
0x16ce   :  { %8938 = vmatpush3.bf16.msra.mxu1 %v9487_v23  ;;  %v6960_v43 = vpack.c.bf16 %v6956_v56, %v6949_v9  ;;  %v7148_v24 = vsel %vm3714_vm6, %v7136_v34, %v7137_v13  ;;  %v7149_v4 = vsel %vm3714_vm6, %v7135_v6, %v7136_v34  ;;  %v7141_v49 = vrot.slane %v12663_v52, 2 }
0x16cf   :  { %8933 = vmatprep.mubr.msk.bf16.mxu1 %vm6579_vm10, %v6959_v60  ;;  %9326 = vmatprep.subr.msk.bf16.mxu1 %vm785_vm4, %v9488_v47  ;;  %v7151_v23 = vpack.c.bf16 %v7148_v24, %v7149_v4  ;;  %v7140_v62 = vrot.slane %v6930_v19, 2  ;;  %v7147_v17 = vsel %vm3714_vm6, %v7137_v13, %v7138_v54  ;;  %v7146_v42 = vsel %vm3714_vm6, %v7138_v54, %v7139_v50  ;;  %p9821_p4 = pnand %p9820_p3, %p9814_p0 }
0x16d0   :  { %v7152_v38 = vpack.c.bf16 %v7146_v42, %v7147_v17  ;;  %v7142_v57 = vrot.slane %v6932_v22, 2  ;;  %vm7267_vm3 = vcmp.lt.s32.totalorder %v12068_v11, 1 }
0x16d1   :  { %v7144_v48 = vsel %vm3714_vm6, %v7140_v62, %v7141_v49  ;;  %v7145_v10 = vsel %vm3714_vm6, %v7139_v50, %v7140_v62  ;;  %v7765_v9 = vsel %vm7267_vm3, 1.0, %v9873_v18  ;;  %v7767_v50 = vsel %vm7269_vm5, 1.0, %v9873_v18 }
0x16d2   :  { %8940 = vmatpush3.bf16.msra.mxu1 %v7072_v32  ;;  %v7153_v29 = vpack.c.bf16 %v7144_v48, %v7145_v10  ;;  %v7143_v59 = vsel %vm3714_vm6, %v7141_v49, %v7142_v57  ;;  %v7150_v3 = vsel %vm3714_vm6, %v7142_v57, %v7135_v6  ;;  %vm7268_vm6 = vcmp.lt.s32.totalorder %v12081_v33, 1 }
0x16d3   :  { %8949 = vmatprep.subr.bf16.mxu1 %v9489_v40  ;;  %v7154_v1 = vpack.c.bf16 %v7150_v3, %v7143_v59  ;;  %v7766_v17 = vsel %vm7268_vm6, 1.0, %v9873_v18 }
0x16d5   :  { %8934 = vmatmul.mubr.msk.bf16.gmra.mrb[48].mxu1 %vm6579_vm10, %v6960_v43 }
0x16d6   :  { %8941 = vmatprep.mubr.msk.bf16.mxu1 %vm6579_vm10, %v6934_v27 }
0x16dd   :  { %8942 = vmatmul.mubr.msk.bf16.vlgmr.msra.gmra.mrb[52].mxu1 %vm6579_vm10, %v6935_v36 }
0x16de   :  { %8945 = vmatprep.mubr.msk.bf16.mxu1 %vm6579_vm10, %v6936_v35  ;;  %8950 = vmatpush3.bf16.msra.mxu1 %v9489_v40 }
0x16df   :  { %9327 = vmatprep.subr.msk.bf16.mxu1 %vm785_vm4, %v9490_v0  ;;  %vm7266_vm4 = vcmp.lt.s32.totalorder %v12071_v51, 1 }
0x16e0   :  { %v7764_v27 = vsel %vm7266_vm4, 1.0, %v9873_v18 }
0x16e2   :  { %8952 = vmatpush3.bf16.msra.mxu1 %v7181_v15 }
0x16e5   :  { %8946 = vmatmul.mubr.msk.bf16.gmra.mrb[56].mxu1 %vm6579_vm10, %v6937_v30 }
0x16e6   :  { %8953 = vmatprep.mubr.msk.bf16.mxu1 %vm6579_vm10, %v7151_v23 }
0x16ed   :  { %8954 = vmatmul.mubr.msk.bf16.vlgmr.msra.gmra.mrb[60].mxu1 %vm6579_vm10, %v7152_v38 }
0x16ee   :  { %8957 = vmatprep.mubr.msk.bf16.mxu1 %vm6579_vm10, %v7153_v29 }
0x16f5   :  { %8958 = vmatmul.mubr.msk.bf16.gmra.mrb[64].mxu1 %vm6579_vm10, %v7154_v1 }
0x17a0   :  { %v8931_v7 = vpop.f32.mrb[44].mxu1 }
0x17a1   :  { %v7023_v53 = vpop.f32.mrb[45].mxu1 }
0x17a2   :  { %v8932_v55 = vpop.f32.mrb[46].mxu1 }
0x17a3   :  { %v7026_v58 = vpop.f32.mrb[47].mxu1 }
0x17a8   :  { %v8935_v14 = vpop.f32.mrb[48].mxu1 }
0x17a9   :  { %v7037_v45 = vpop.f32.mrb[49].mxu1 }
0x17aa   :  { %v8936_v28 = vpop.f32.mrb[50].mxu1 }
0x17ab   :  { %v7040_v39 = vpop.f32.mrb[51].mxu1 }
0x17b0   :  { %v8943_v19 = vpop.f32.mrb[52].mxu1 }
0x17b1   :  { %v7116_v46 = vadd.f32 %v8943_v19, %v8931_v7  ;;  %v7108_v61 = vpop.f32.mrb[53].mxu1 }
0x17b2   :  { %v7109_v21 = vadd.f32 %v7108_v61, %v7023_v53  ;;  %v8944_v52 = vpop.f32.mrb[54].mxu1 }
0x17b3   :  { %v7111_v44 = vpop.f32.mrb[55].mxu1 }
0x17b8   :  { %v8947_v22 = vpop.f32.mrb[56].mxu1 }
0x17b9   :  { %v7130_v8 = vadd.f32 %v8947_v22, %v8935_v14  ;;  %v7122_v37 = vpop.f32.mrb[57].mxu1 }
0x17ba   :  { %v7123_v31 = vadd.f32 %v7122_v37, %v7037_v45  ;;  %v8948_v25 = vpop.f32.mrb[58].mxu1 }
0x17bb   :  { %v7125_v26 = vpop.f32.mrb[59].mxu1 }
0x17c0   :  { %v8955_v5 = vpop.f32.mrb[60].mxu1 }
0x17c1   :  { %v7245_v20 = vadd.f32 %v8955_v5, %v7116_v46  ;;  %v7217_v47 = vpop.f32.mrb[61].mxu1 }
0x17c2   :  { %v7244_v16 = vadd.f32 %v7217_v47, %v7109_v21  ;;  %v8956_v41 = vpop.f32.mrb[62].mxu1 }
0x17c3   :  { %v7255_v63 = vadd.f32 %v7763_v12, %v7245_v20  ;;  %v7220_v60 = vpop.f32.mrb[63].mxu1 }
0x17c4   :  { %v7254_v32 = vadd.f32 %v7763_v12, %v7244_v16 }
0x17c5   :  { %v7259_v40 = vmul.f32 0.01, %v7255_v63 }
0x17c6   :  { %v7258_v56 = vmul.f32 0.01, %v7254_v32 }
0x17c7   :  { %v7263_v43 = vmax.f32 %v7255_v63, %v7259_v40 }
0x17c8   :  { %v7262_v36 = vmax.f32 %v7254_v32, %v7258_v56  ;;  %v8959_v0 = vpop.f32.mrb[64].mxu1 }
0x17c9   :  { %v7279_v35 = vmul.f32 %v7765_v9, %v7263_v43  ;;  %v7247_v13 = vadd.f32 %v8959_v0, %v7130_v8  ;;  %v7231_v15 = vpop.f32.mrb[65].mxu1 }
0x17ca   :  { %v7278_v6 = vmul.f32 %v7764_v27, %v7262_v36  ;;  %v7246_v34 = vadd.f32 %v7231_v15, %v7123_v31  ;;  %v8960_v24 = vpop.f32.mrb[66].mxu1 }
0x17cb   :  { %v7286_v11 = vrot.slane %v7279_v35, 7  ;;  %v7257_v30 = vadd.f32 %v7763_v12, %v7247_v13  ;;  %v7234_v51 = vpop.f32.mrb[67].mxu1 }
0x17cc   :  { %v7256_v4 = vadd.f32 %v7763_v12, %v7246_v34 }
0x17cd   :  { %v7261_v54 = vmul.f32 0.01, %v7257_v30  ;;  %v7287_v23 = vsel %vm777_vm12, %v7286_v11, %v7278_v6 }
0x17ce   :  { %v7260_v49 = vmul.f32 0.01, %v7256_v4 }
0x17cf   :  { %v7265_v62 = vmax.f32 %v7257_v30, %v7261_v54 }
0x17d0   :  { %v7264_v42 = vmax.f32 %v7256_v4, %v7260_v49 }
0x17d1   :  { %v7281_v48 = vmul.f32 %v7767_v50, %v7265_v62 }
0x17d2   :  { %v7280_v38 = vmul.f32 %v7766_v17, %v7264_v42 }
0x17d3   :  { %v7290_v2 = vrot.slane %v7281_v48, 5 }
0x17d4   :  { %v7288_v10 = vrot.slane %v7280_v38, 6 }
0x17d6   :  { %v7289_v29 = vsel %vm779_vm13, %v7288_v10, %v7287_v23 }
0x17d7   :  { %v7291_v33 = vsel %vm781_vm14, %v7290_v2, %v7289_v29 }
0x17d8   :  { %7294 = vst.msk [vmem:[#allocation25] sm:$0xf] %vm7293_vm1, %v7291_v33 }
0x17d9   :  { %9824 = shalt.err (!%p9821_p4)
}
0x17da   :  { %s9825_s30 = scalar_lea.hbm %s12776_s21, 64 }
0x17db   :  { %p9826_p5 = scmp.ne.s32.totalorder %s12776_s21, %s9825_s30  ;;  %p9829_p6 = scmp.lt.u32.totalorder %s9825_s30, %s12776_s21 }
0x17dd   :  { %p9831_p7 = pnand %p9829_p6, %p9826_p5 }
0x17df   :  { %9834 = shalt.err (!%p9831_p7)
}
0x17e0   :  { %7304 = dma.vmem_to_hbm [thread:$0]  %s7302_s1, 64, %s12776_s21, [#allocation4]  }
0x17e1   :  { %9851 = dma.done.wait [#allocation4], 64  }
0x17e2   :  { %9852 = vsyncadd [#allocation4], 4294967232 }
0x17e3   :  { %7308 = vsyncpa [#allocation3], 1 }
0x17e4   :  { %7309 = vsyncpa [#allocation6], 1 }
0x17e5   :  { %7310 = vsyncpa [#allocation9], 1 }
0x17e6   :  { %7311 = vsyncpa [#allocation12], 1 }
0x17e7   :  { %7312 = vsyncpa [#allocation15], 1 }
0x17e8   :  { %7313 = vsyncpa [#allocation18], 1 }
0x17e9   :  { %7314 = vsyncpa [#allocation21], 1 }
0x17ea   :  { %7315 = vsyncpa [#allocation24], 1 }
0x17eb   :  { %7316 = vsyncpa [#allocation4], 1 }

</bundles_post_ra>
